<compile_context>
chip_gen: v7x
topology: tpu7x:2x2x1
jax: 0.10.0
libtpu: 0.0.40
codegen_flags: <defaults>
</compile_context>

<pallas_src>
import functools

import jax
import jax.numpy as jnp
from jax import lax
from jax.experimental import pallas as pl
from jax.experimental.pallas import tpu as pltpu

NUM_GROUPS = 32
EPS = 1e-5  # PyTorch GroupNorm default


def _round_up(v, m):
    return (v + m - 1) // m * m


def _pick_batch_tile(n, hw):
    """Largest divisor of n with tile*hw <= 256 rows (fill the MXU M dimension)."""
    cap = max(1, 256 // hw)
    bt = 1
    for d in range(1, min(n, cap) + 1):
        if n % d == 0:
            bt = d
    return bt


def _gn_silu(x, msum_ref, mbc_ref, w_ref, b_ref):
    """GroupNorm(32) + SiLU on x: (B, HW, C) float32.

    msum_ref: (C, G) group-sum matrix, msum[c, g] = 1/(HW*cpg) if channel c is in group g.
    mbc_ref : (G, C) 0/1 broadcast matrix.  Two tiny dots yield per-channel mean and E[x^2].
    """
    bt = x.shape[0]
    s1 = jnp.sum(x, axis=1)                              # (B, C)
    s2 = jnp.sum(x * x, axis=1)                          # (B, C)
    stats = jnp.concatenate([s1, s2], axis=0)            # (2B, C) -> one MXU dot each stage
    grp = jnp.dot(stats, msum_ref[...], preferred_element_type=jnp.float32)   # (2B, G)
    mom = jnp.dot(grp, mbc_ref[...], preferred_element_type=jnp.float32)      # (2B, C)
    mean = mom[:bt]
    msq = mom[bt:]
    var = jnp.maximum(msq - mean * mean, 0.0)            # clamp single-pass variance
    inv = lax.rsqrt(var + EPS)
    scale = inv * w_ref[...]                             # fold affine: x*scale + shift
    shift = b_ref[...] - mean * scale
    xn = x * scale[:, None, :] + shift[:, None, :]
    return xn * jax.nn.sigmoid(xn)                       # SiLU, f32


def _conv3x3(pad_ref, h, w_ref, b_ref, mask_l, mask_r, H, W, P0):
    """3x3 conv (padding=1) over B images as ONE im2col matmul with M = B*HW.

    pad_ref : (B, P0 + HW + P0, Cin) f32 scratch.  Border rows were zeroed once at
              program_id==0 and are never written again; each call stores only the HW
              valid rows per image.
    h       : (B, HW, Cin) f32 activations.
    w_ref   : (9*Cin, Cout) bf16 weights (taps flattened kh-major, then kw, then cin).
    Out-of-range dh taps read the zero borders; only the dw=-1 / dw=+1 column masks are
    needed (applied in f32, then each tap is cast to bf16 before the lane concat).
    """
    bt, HW, cin = h.shape
    for b in range(bt):
        pad_ref[b, P0:P0 + HW, :] = h[b]                 # store valid rows only

    img_parts = []
    for b in range(bt):
        parts = []
        for dh in (-1, 0, 1):
            for dw in (-1, 0, 1):
                off = dh * W + dw
                patch = pad_ref[b, P0 + off:P0 + off + HW, :]        # (HW, Cin) f32
                if dw == -1:
                    patch = patch * mask_l
                elif dw == 1:
                    patch = patch * mask_r
                parts.append(patch.astype(jnp.bfloat16))
        img_parts.append(jnp.concatenate(parts, axis=1))             # (HW, 9*Cin) bf16
    patches = img_parts[0] if bt == 1 else jnp.concatenate(img_parts, axis=0)  # (B*HW, 9*Cin)
    y = jnp.dot(patches, w_ref[...],
                preferred_element_type=jnp.float32) + b_ref[...]     # (B*HW, Cout) f32
    return y.reshape(bt, HW, -1)


def _resblock_kernel(H, W, has_sc, P0, bt, *refs):
    if has_sc:
        (x_ref, ms1_ref, mb1_ref, g1w_ref, g1b_ref, w1_ref, b1_ref,
         ms2_ref, mb2_ref, g2w_ref, g2b_ref, w2_ref, b2_ref,
         ws_ref, bs_ref, ml_ref, mr_ref,
         o_ref, pad1_ref, pad2_ref) = refs
    else:
        (x_ref, ms1_ref, mb1_ref, g1w_ref, g1b_ref, w1_ref, b1_ref,
         ms2_ref, mb2_ref, g2w_ref, g2b_ref, w2_ref, b2_ref,
         ml_ref, mr_ref,
         o_ref, pad1_ref, pad2_ref) = refs

    # Zero the pad scratches (hence their borders) exactly once; the body only ever writes
    # the middle HW rows afterwards, so the borders stay zero for every later grid step.
    @pl.when(pl.program_id(0) == 0)
    def _init():
        pad1_ref[...] = jnp.zeros_like(pad1_ref)
        pad2_ref[...] = jnp.zeros_like(pad2_ref)

    mask_l = ml_ref[...]                                  # (HW, 1) f32, dw = -1 validity
    mask_r = mr_ref[...]                                  # (HW, 1) f32, dw = +1 validity

    x = x_ref[...]                                        # (B, HW, cin) f32

    h = _gn_silu(x, ms1_ref, mb1_ref, g1w_ref, g1b_ref)
    y = _conv3x3(pad1_ref, h, w1_ref, b1_ref, mask_l, mask_r, H, W, P0)
    h2 = _gn_silu(y, ms2_ref, mb2_ref, g2w_ref, g2b_ref)
    z = _conv3x3(pad2_ref, h2, w2_ref, b2_ref, mask_l, mask_r, H, W, P0)

    if has_sc:   # 1x1 projection shortcut (in_ch != out_ch), bf16 operands / f32 accum
        HW = H * W
        cin = x.shape[-1]
        xs = x.reshape(bt * HW, cin).astype(jnp.bfloat16)
        sc = (jnp.dot(xs, ws_ref[...], preferred_element_type=jnp.float32)
              + bs_ref[...]).reshape(bt, HW, -1)
    else:        # nn.Identity: no matmul at all
        sc = x
    o_ref[...] = (sc + z).astype(o_ref.dtype)


def residual_block(x_nchw, p):
    """x_nchw: (N, in_ch, H, W) float32; p: torch-layout params. Returns NCHW float32."""
    N, cin, H, W = x_nchw.shape
    cout = p["W1"].shape[0]
    HW = H * W
    P0 = _round_up(W + 1, 8)          # sublane-aligned flat padding / border size
    has_sc = (cin != cout)
    bt = _pick_batch_tile(N, HW)      # images per grid step, stacked on the matmul M axis

    # --- glue: layout conversion (plain JAX) ---
    x_flat = jnp.transpose(x_nchw, (0, 2, 3, 1)).reshape(N, HW, cin)

    def conv_w(w):                    # OIHW -> (9*Cin, Cout) bf16, kh-major taps
        o, i = w.shape[0], w.shape[1]
        return jnp.transpose(w, (2, 3, 1, 0)).reshape(9 * i, o).astype(jnp.bfloat16)

    def gn_mats(C):                   # factored group-sum / group-broadcast matrices
        cpg = C // NUM_GROUPS
        onehot = (jnp.arange(C)[:, None] // cpg
                  == jnp.arange(NUM_GROUPS)[None, :]).astype(jnp.float32)   # (C, G)
        return onehot / float(HW * cpg), onehot.T                           # (C,G), (G,C)

    row = lambda v: v.reshape(1, -1).astype(jnp.float32)

    ww = jnp.arange(HW, dtype=jnp.int32) % W
    mask_l = (ww >= 1).astype(jnp.float32).reshape(HW, 1)        # dw = -1 validity
    mask_r = (ww <= W - 2).astype(jnp.float32).reshape(HW, 1)    # dw = +1 validity

    ms1, mb1 = gn_mats(cin)
    ms2, mb2 = gn_mats(cout)
    inputs = [x_flat,
              ms1, mb1, row(p["g1w"]), row(p["g1b"]), conv_w(p["W1"]), row(p["b1"]),
              ms2, mb2, row(p["g2w"]), row(p["g2b"]), conv_w(p["W2"]), row(p["b2"])]
    if has_sc:
        ws = jnp.transpose(p["Ws"][:, :, 0, 0]).astype(jnp.bfloat16)   # (cin, cout)
        inputs += [ws, row(p["bs"])]
    inputs += [mask_l, mask_r]

    def full_spec(a):                 # whole small constant per step (block index pinned to 0)
        nd = a.ndim
        return pl.BlockSpec(a.shape, lambda n, nd=nd: (0,) * nd)

    in_specs = ([pl.BlockSpec((bt, HW, cin), lambda n: (n, 0, 0))]
                + [full_spec(a) for a in inputs[1:]])
    out_specs = pl.BlockSpec((bt, HW, cout), lambda n: (n, 0, 0))

    kernel = functools.partial(_resblock_kernel, H, W, has_sc, P0, bt)
    out_flat = pl.pallas_call(
        kernel,
        out_shape=jax.ShapeDtypeStruct((N, HW, cout), jnp.float32),
        grid_spec=pltpu.PrefetchScalarGridSpec(
            num_scalar_prefetch=0,
            grid=(N // bt,),
            in_specs=in_specs,
            out_specs=out_specs,
            scratch_shapes=[
                pltpu.VMEM((bt, HW + 2 * P0, cin), jnp.float32),
                pltpu.VMEM((bt, HW + 2 * P0, cout), jnp.float32),
            ]),
        compiler_params=pltpu.CompilerParams(
            # "arbitrary": the zero-once pad-scratch borders rely on the grid running
            # sequentially on one core; parallel-vs-arbitrary is a measured no-op here.
            dimension_semantics=("arbitrary",),
            # TODO(synk): re-derive per generation (push higher on v5e/v6e's 128 MiB, keep
            # headroom under v7x's 64 MiB) once the HW row-tile axis lands.
            vmem_limit_bytes=32 * 1024 * 1024),
    )(*inputs)

    return jnp.transpose(out_flat.reshape(N, H, W, cout), (0, 3, 1, 2))


# ---------------- pure-JAX reference (NCHW, mirrors the PyTorch module) ----------------
def ref_residual_block(x, p):
    def gn(v, w, b):
        Nn, C, Hh, Ww = v.shape
        g = NUM_GROUPS
        vg = v.reshape(Nn, g, C // g, Hh, Ww)
        mean = vg.mean(axis=(2, 3, 4), keepdims=True)
        var = ((vg - mean) ** 2).mean(axis=(2, 3, 4), keepdims=True)
        vn = ((vg - mean) / jnp.sqrt(var + EPS)).reshape(Nn, C, Hh, Ww)
        return vn * w[None, :, None, None] + b[None, :, None, None]

    def silu(v):
        return v * jax.nn.sigmoid(v)

    def conv(v, w, b, pad):
        out = lax.conv_general_dilated(
            v, w, (1, 1), [(pad, pad), (pad, pad)],
            dimension_numbers=("NCHW", "OIHW", "NCHW"),
            precision=lax.Precision.HIGHEST)
        return out + b[None, :, None, None]

    h = conv(silu(gn(x, p["g1w"], p["g1b"])), p["W1"], p["b1"], 1)
    h = conv(silu(gn(h, p["g2w"], p["g2b"])), p["W2"], p["b2"], 1)
    sc = conv(x, p["Ws"], p["bs"], 0) if "Ws" in p else x
    return sc + h


if __name__ == "__main__":
    def make_params(key, in_ch, out_ch):
        ks = jax.random.split(key, 10)
        prm = dict(
            g1w=1.0 + 0.1 * jax.random.normal(ks[0], (in_ch,), jnp.float32),
            g1b=0.1 * jax.random.normal(ks[1], (in_ch,), jnp.float32),
            W1=0.1 * jax.random.normal(ks[2], (out_ch, in_ch, 3, 3), jnp.float32),
            b1=0.1 * jax.random.normal(ks[3], (out_ch,), jnp.float32),
            g2w=1.0 + 0.1 * jax.random.normal(ks[4], (out_ch,), jnp.float32),
            g2b=0.1 * jax.random.normal(ks[5], (out_ch,), jnp.float32),
            W2=0.1 * jax.random.normal(ks[6], (out_ch, out_ch, 3, 3), jnp.float32),
            b2=0.1 * jax.random.normal(ks[7], (out_ch,), jnp.float32),
        )
        if in_ch != out_ch:
            prm["Ws"] = 0.1 * jax.random.normal(ks[8], (out_ch, in_ch, 1, 1), jnp.float32)
            prm["bs"] = 0.1 * jax.random.normal(ks[9], (out_ch,), jnp.float32)
        return prm

    key = jax.random.PRNGKey(0)
    k1, k2, kx1, kx2 = jax.random.split(key, 4)

    # Case 1: projection shortcut (in_ch != out_ch). GroupNorm(32, C) requires C % 32 == 0.
    N, in_ch, out_ch, H, W = 2, 32, 64, 8, 8
    p1 = make_params(k1, in_ch, out_ch)
    x1 = jax.random.normal(kx1, (N, in_ch, H, W), jnp.float32)
    out1 = residual_block(x1, p1)
    jax.block_until_ready(out1)
    ref1 = ref_residual_block(x1, p1)
    assert out1.shape == (N, out_ch, H, W)
    err1 = float(jnp.max(jnp.abs(out1 - ref1)))
    assert err1 < 5e-2, f"max abs err (projection shortcut) {err1}"   # bf16 matmuls, f32 accum

    # Case 2: identity shortcut (in_ch == out_ch) -> shortcut matmul statically skipped.
    p2 = make_params(k2, 64, 64)
    x2 = jax.random.normal(kx2, (2, 64, 8, 8), jnp.float32)
    out2 = residual_block(x2, p2)
    jax.block_until_ready(out2)
    ref2 = ref_residual_block(x2, p2)
    err2 = float(jnp.max(jnp.abs(out2 - ref2)))
    assert err2 < 5e-2, f"max abs err (identity shortcut) {err2}"

    print("KERNEL_OK")
</pallas_src>

<mosaic_0001>
module attributes {stable_mosaic.version = 11 : i64} {
  func.func @_resblock_kernel(%arg0: i32, %arg1: memref<2x64x32xf32, #tpu.memory_space<vmem>>, %arg2: memref<32x32xf32, #tpu.memory_space<vmem>>, %arg3: memref<32x32xf32, #tpu.memory_space<vmem>>, %arg4: memref<1x32xf32, #tpu.memory_space<vmem>>, %arg5: memref<1x32xf32, #tpu.memory_space<vmem>>, %arg6: memref<288x64xbf16, #tpu.memory_space<vmem>>, %arg7: memref<1x64xf32, #tpu.memory_space<vmem>>, %arg8: memref<64x32xf32, #tpu.memory_space<vmem>>, %arg9: memref<32x64xf32, #tpu.memory_space<vmem>>, %arg10: memref<1x64xf32, #tpu.memory_space<vmem>>, %arg11: memref<1x64xf32, #tpu.memory_space<vmem>>, %arg12: memref<576x64xbf16, #tpu.memory_space<vmem>>, %arg13: memref<1x64xf32, #tpu.memory_space<vmem>>, %arg14: memref<32x64xbf16, #tpu.memory_space<vmem>>, %arg15: memref<1x64xf32, #tpu.memory_space<vmem>>, %arg16: memref<64x1xf32, #tpu.memory_space<vmem>>, %arg17: memref<64x1xf32, #tpu.memory_space<vmem>>, %arg18: memref<2x64x64xf32, #tpu.memory_space<vmem>>, %arg19: memref<2x96x32xf32, #tpu.memory_space<vmem>>, %arg20: memref<2x96x64xf32, #tpu.memory_space<vmem>>) attributes {dimension_semantics = [#tpu.dimension_semantics<arbitrary>], iteration_bounds = array<i64: 1>, scalar_prefetch = 0 : i64, scratch_operands = 2 : i64, tpu.core_type = #tpu.core_type<tc>, window_params = [{transform_indices = @transform_0, window_bounds = array<i64: 2, 64, 32>}, {pipeline_mode = #tpu.pipeline_mode<synchronous>, transform_indices = @transform_1, window_bounds = array<i64: 32, 32>}, {pipeline_mode = #tpu.pipeline_mode<synchronous>, transform_indices = @transform_2, window_bounds = array<i64: 32, 32>}, {pipeline_mode = #tpu.pipeline_mode<synchronous>, transform_indices = @transform_3, window_bounds = array<i64: 1, 32>}, {pipeline_mode = #tpu.pipeline_mode<synchronous>, transform_indices = @transform_4, window_bounds = array<i64: 1, 32>}, {pipeline_mode = #tpu.pipeline_mode<synchronous>, transform_indices = @transform_5, window_bounds = array<i64: 288, 64>}, {pipeline_mode = #tpu.pipeline_mode<synchronous>, transform_indices = @transform_6, window_bounds = array<i64: 1, 64>}, {pipeline_mode = #tpu.pipeline_mode<synchronous>, transform_indices = @transform_7, window_bounds = array<i64: 64, 32>}, {pipeline_mode = #tpu.pipeline_mode<synchronous>, transform_indices = @transform_8, window_bounds = array<i64: 32, 64>}, {pipeline_mode = #tpu.pipeline_mode<synchronous>, transform_indices = @transform_9, window_bounds = array<i64: 1, 64>}, {pipeline_mode = #tpu.pipeline_mode<synchronous>, transform_indices = @transform_10, window_bounds = array<i64: 1, 64>}, {pipeline_mode = #tpu.pipeline_mode<synchronous>, transform_indices = @transform_11, window_bounds = array<i64: 576, 64>}, {pipeline_mode = #tpu.pipeline_mode<synchronous>, transform_indices = @transform_12, window_bounds = array<i64: 1, 64>}, {pipeline_mode = #tpu.pipeline_mode<synchronous>, transform_indices = @transform_13, window_bounds = array<i64: 32, 64>}, {pipeline_mode = #tpu.pipeline_mode<synchronous>, transform_indices = @transform_14, window_bounds = array<i64: 1, 64>}, {pipeline_mode = #tpu.pipeline_mode<synchronous>, transform_indices = @transform_15, window_bounds = array<i64: 64, 1>}, {pipeline_mode = #tpu.pipeline_mode<synchronous>, transform_indices = @transform_16, window_bounds = array<i64: 64, 1>}, {transform_indices = @transform_17, window_bounds = array<i64: 2, 64, 64>}]} {
    %c0_i32 = arith.constant 0 : i32
    %0 = arith.cmpi eq, %arg0, %c0_i32 : i32
    %1 = arith.extui %0 : i1 to i32
    %c0_i32_0 = arith.constant 0 : i32
    %2 = arith.cmpi ne, %1, %c0_i32_0 : i32
    scf.if %2 {
      %cst_164 = arith.constant 0.000000e+00 : f32
      %282 = vector.broadcast %cst_164 : f32 to vector<2x96x32xf32>
      %c0_165 = arith.constant 0 : index
      %c0_166 = arith.constant 0 : index
      %c0_167 = arith.constant 0 : index
      %283 = vector.load %arg19[%c0_165, %c0_166, %c0_167] : memref<2x96x32xf32, #tpu.memory_space<vmem>>, vector<2x96x32xf32>
      tpu.vector_store %arg19[%c0_165, %c0_166, %c0_167], %282 {strides = array<i32>} : memref<2x96x32xf32, #tpu.memory_space<vmem>>, vector<2x96x32xf32>,
      %cst_168 = arith.constant 0.000000e+00 : f32
      %284 = vector.broadcast %cst_168 : f32 to vector<2x96x64xf32>
      %c0_169 = arith.constant 0 : index
      %c0_170 = arith.constant 0 : index
      %c0_171 = arith.constant 0 : index
      %285 = vector.load %arg20[%c0_169, %c0_170, %c0_171] : memref<2x96x64xf32, #tpu.memory_space<vmem>>, vector<2x96x64xf32>
      tpu.vector_store %arg20[%c0_169, %c0_170, %c0_171], %284 {strides = array<i32>} : memref<2x96x64xf32, #tpu.memory_space<vmem>>, vector<2x96x64xf32>,
    } else {
    }
    %c0 = arith.constant 0 : index
    %c0_1 = arith.constant 0 : index
    %3 = vector.load %arg16[%c0, %c0_1] : memref<64x1xf32, #tpu.memory_space<vmem>>, vector<64x1xf32>
    %c0_2 = arith.constant 0 : index
    %c0_3 = arith.constant 0 : index
    %4 = vector.load %arg17[%c0_2, %c0_3] : memref<64x1xf32, #tpu.memory_space<vmem>>, vector<64x1xf32>
    %c0_4 = arith.constant 0 : index
    %c0_5 = arith.constant 0 : index
    %c0_6 = arith.constant 0 : index
    %5 = vector.load %arg1[%c0_4, %c0_5, %c0_6] : memref<2x64x32xf32, #tpu.memory_space<vmem>>, vector<2x64x32xf32>
    %cst = arith.constant dense<0.000000e+00> : vector<2x32xf32>
    %6 = vector.multi_reduction <add>, %5, %cst [1] : vector<2x64x32xf32> to vector<2x32xf32>
    %7 = arith.mulf %5, %5 : vector<2x64x32xf32>
    %cst_7 = arith.constant dense<0.000000e+00> : vector<2x32xf32>
    %8 = vector.multi_reduction <add>, %7, %cst_7 [1] : vector<2x64x32xf32> to vector<2x32xf32>
    %9 = tpu.concatenate %6, %8 in 0 : vector<2x32xf32>, vector<2x32xf32> -> vector<4x32xf32>
    %c0_8 = arith.constant 0 : index
    %c0_9 = arith.constant 0 : index
    %10 = vector.load %arg2[%c0_8, %c0_9] : memref<32x32xf32, #tpu.memory_space<vmem>>, vector<32x32xf32>
    %cst_10 = arith.constant dense<0.000000e+00> : vector<4x32xf32>
    %11 = tpu.matmul %9, %10, %cst_10 {dimension_numbers = #tpu.dot_dimension_numbers<[1], [0], [0], [1], [0, 0, 1, 1], [], []>} : vector<4x32xf32>, vector<32x32xf32>, vector<4x32xf32> -> vector<4x32xf32>
    %c0_11 = arith.constant 0 : index
    %c0_12 = arith.constant 0 : index
    %12 = vector.load %arg3[%c0_11, %c0_12] : memref<32x32xf32, #tpu.memory_space<vmem>>, vector<32x32xf32>
    %cst_13 = arith.constant dense<0.000000e+00> : vector<4x32xf32>
    %13 = tpu.matmul %11, %12, %cst_13 {dimension_numbers = #tpu.dot_dimension_numbers<[1], [0], [0], [1], [0, 0, 1, 1], [], []>} : vector<4x32xf32>, vector<32x32xf32>, vector<4x32xf32> -> vector<4x32xf32>
    %14 = vector.extract_strided_slice %13 {offsets = [0, 0], sizes = [2, 32], strides = [1, 1]} : vector<4x32xf32> to vector<2x32xf32>
    %15 = vector.extract_strided_slice %13 {offsets = [2, 0], sizes = [2, 32], strides = [1, 1]} : vector<4x32xf32> to vector<2x32xf32>
    %16 = arith.mulf %14, %14 : vector<2x32xf32>
    %17 = arith.subf %15, %16 : vector<2x32xf32>
    %cst_14 = arith.constant 0.000000e+00 : f32
    %18 = vector.broadcast %cst_14 : f32 to vector<2x32xf32>
    %19 = arith.maximumf %17, %18 : vector<2x32xf32>
    %cst_15 = arith.constant 9.99999974E-6 : f32
    %20 = vector.broadcast %cst_15 : f32 to vector<2x32xf32>
    %21 = arith.addf %19, %20 : vector<2x32xf32>
    %22 = math.rsqrt %21 : vector<2x32xf32>
    %c0_16 = arith.constant 0 : index
    %c0_17 = arith.constant 0 : index
    %23 = vector.load %arg4[%c0_16, %c0_17] : memref<1x32xf32, #tpu.memory_space<vmem>>, vector<1x32xf32>
    %24 = vector.broadcast %23 : vector<1x32xf32> to vector<2x32xf32>
    %25 = arith.mulf %22, %24 : vector<2x32xf32>
    %c0_18 = arith.constant 0 : index
    %c0_19 = arith.constant 0 : index
    %26 = vector.load %arg5[%c0_18, %c0_19] : memref<1x32xf32, #tpu.memory_space<vmem>>, vector<1x32xf32>
    %27 = arith.mulf %14, %25 : vector<2x32xf32>
    %28 = vector.broadcast %26 : vector<1x32xf32> to vector<2x32xf32>
    %29 = arith.subf %28, %27 : vector<2x32xf32>
    %30 = vector.shape_cast %25 : vector<2x32xf32> to vector<2x1x32xf32>
    %31 = vector.broadcast %30 : vector<2x1x32xf32> to vector<2x64x32xf32>
    %32 = arith.mulf %5, %31 : vector<2x64x32xf32>
    %33 = vector.shape_cast %29 : vector<2x32xf32> to vector<2x1x32xf32>
    %34 = vector.broadcast %33 : vector<2x1x32xf32> to vector<2x64x32xf32>
    %35 = arith.addf %32, %34 : vector<2x64x32xf32>
    %36 = arith.negf %35 : vector<2x64x32xf32>
    %37 = math.exp %36 : vector<2x64x32xf32>
    %cst_20 = arith.constant 1.000000e+00 : f32
    %38 = vector.broadcast %cst_20 : f32 to vector<2x64x32xf32>
    %39 = arith.addf %38, %37 : vector<2x64x32xf32>
    %40 = arith.divf %38, %39 : vector<2x64x32xf32>
    %41 = arith.mulf %35, %40 : vector<2x64x32xf32>
    %42 = vector.extract_strided_slice %41 {offsets = [0, 0, 0], sizes = [1, 64, 32], strides = [1, 1, 1]} : vector<2x64x32xf32> to vector<1x64x32xf32>
    %43 = vector.shape_cast %42 : vector<1x64x32xf32> to vector<64x32xf32>
    %c0_21 = arith.constant 0 : index
    %c16 = arith.constant 16 : index
    %c0_22 = arith.constant 0 : index
    %44 = vector.load %arg19[%c0_21, %c16, %c0_22] : memref<2x96x32xf32, #tpu.memory_space<vmem>>, vector<1x64x32xf32>
    %45 = vector.shape_cast %44 : vector<1x64x32xf32> to vector<64x32xf32>
    %46 = vector.shape_cast %43 : vector<64x32xf32> to vector<1x64x32xf32>
    tpu.vector_store %arg19[%c0_21, %c16, %c0_22], %46 {strides = array<i32>} : memref<2x96x32xf32, #tpu.memory_space<vmem>>, vector<1x64x32xf32>,
    %47 = vector.extract_strided_slice %41 {offsets = [1, 0, 0], sizes = [1, 64, 32], strides = [1, 1, 1]} : vector<2x64x32xf32> to vector<1x64x32xf32>
    %48 = vector.shape_cast %47 : vector<1x64x32xf32> to vector<64x32xf32>
    %c1 = arith.constant 1 : index
    %c16_23 = arith.constant 16 : index
    %c0_24 = arith.constant 0 : index
    %49 = vector.load %arg19[%c1, %c16_23, %c0_24] : memref<2x96x32xf32, #tpu.memory_space<vmem>>, vector<1x64x32xf32>
    %50 = vector.shape_cast %49 : vector<1x64x32xf32> to vector<64x32xf32>
    %51 = vector.shape_cast %48 : vector<64x32xf32> to vector<1x64x32xf32>
    tpu.vector_store %arg19[%c1, %c16_23, %c0_24], %51 {strides = array<i32>} : memref<2x96x32xf32, #tpu.memory_space<vmem>>, vector<1x64x32xf32>,
    %c0_25 = arith.constant 0 : index
    %c7 = arith.constant 7 : index
    %c0_26 = arith.constant 0 : index
    %52 = vector.load %arg19[%c0_25, %c7, %c0_26] : memref<2x96x32xf32, #tpu.memory_space<vmem>>, vector<1x64x32xf32>
    %53 = vector.shape_cast %52 : vector<1x64x32xf32> to vector<64x32xf32>
    %54 = vector.broadcast %3 : vector<64x1xf32> to vector<64x32xf32>
    %55 = arith.mulf %53, %54 : vector<64x32xf32>
    %56 = arith.truncf %55 : vector<64x32xf32> to vector<64x32xbf16>
    %c0_27 = arith.constant 0 : index
    %c8 = arith.constant 8 : index
    %c0_28 = arith.constant 0 : index
    %57 = vector.load %arg19[%c0_27, %c8, %c0_28] : memref<2x96x32xf32, #tpu.memory_space<vmem>>, vector<1x64x32xf32>
    %58 = vector.shape_cast %57 : vector<1x64x32xf32> to vector<64x32xf32>
    %59 = arith.truncf %58 : vector<64x32xf32> to vector<64x32xbf16>
    %c0_29 = arith.constant 0 : index
    %c9 = arith.constant 9 : index
    %c0_30 = arith.constant 0 : index
    %60 = vector.load %arg19[%c0_29, %c9, %c0_30] : memref<2x96x32xf32, #tpu.memory_space<vmem>>, vector<1x64x32xf32>
    %61 = vector.shape_cast %60 : vector<1x64x32xf32> to vector<64x32xf32>
    %62 = vector.broadcast %4 : vector<64x1xf32> to vector<64x32xf32>
    %63 = arith.mulf %61, %62 : vector<64x32xf32>
    %64 = arith.truncf %63 : vector<64x32xf32> to vector<64x32xbf16>
    %c0_31 = arith.constant 0 : index
    %c15 = arith.constant 15 : index
    %c0_32 = arith.constant 0 : index
    %65 = vector.load %arg19[%c0_31, %c15, %c0_32] : memref<2x96x32xf32, #tpu.memory_space<vmem>>, vector<1x64x32xf32>
    %66 = vector.shape_cast %65 : vector<1x64x32xf32> to vector<64x32xf32>
    %67 = vector.broadcast %3 : vector<64x1xf32> to vector<64x32xf32>
    %68 = arith.mulf %66, %67 : vector<64x32xf32>
    %69 = arith.truncf %68 : vector<64x32xf32> to vector<64x32xbf16>
    %c0_33 = arith.constant 0 : index
    %c16_34 = arith.constant 16 : index
    %c0_35 = arith.constant 0 : index
    %70 = vector.load %arg19[%c0_33, %c16_34, %c0_35] : memref<2x96x32xf32, #tpu.memory_space<vmem>>, vector<1x64x32xf32>
    %71 = vector.shape_cast %70 : vector<1x64x32xf32> to vector<64x32xf32>
    %72 = arith.truncf %71 : vector<64x32xf32> to vector<64x32xbf16>
    %c0_36 = arith.constant 0 : index
    %c17 = arith.constant 17 : index
    %c0_37 = arith.constant 0 : index
    %73 = vector.load %arg19[%c0_36, %c17, %c0_37] : memref<2x96x32xf32, #tpu.memory_space<vmem>>, vector<1x64x32xf32>
    %74 = vector.shape_cast %73 : vector<1x64x32xf32> to vector<64x32xf32>
    %75 = vector.broadcast %4 : vector<64x1xf32> to vector<64x32xf32>
    %76 = arith.mulf %74, %75 : vector<64x32xf32>
    %77 = arith.truncf %76 : vector<64x32xf32> to vector<64x32xbf16>
    %c0_38 = arith.constant 0 : index
    %c23 = arith.constant 23 : index
    %c0_39 = arith.constant 0 : index
    %78 = vector.load %arg19[%c0_38, %c23, %c0_39] : memref<2x96x32xf32, #tpu.memory_space<vmem>>, vector<1x64x32xf32>
    %79 = vector.shape_cast %78 : vector<1x64x32xf32> to vector<64x32xf32>
    %80 = vector.broadcast %3 : vector<64x1xf32> to vector<64x32xf32>
    %81 = arith.mulf %79, %80 : vector<64x32xf32>
    %82 = arith.truncf %81 : vector<64x32xf32> to vector<64x32xbf16>
    %c0_40 = arith.constant 0 : index
    %c24 = arith.constant 24 : index
    %c0_41 = arith.constant 0 : index
    %83 = vector.load %arg19[%c0_40, %c24, %c0_41] : memref<2x96x32xf32, #tpu.memory_space<vmem>>, vector<1x64x32xf32>
    %84 = vector.shape_cast %83 : vector<1x64x32xf32> to vector<64x32xf32>
    %85 = arith.truncf %84 : vector<64x32xf32> to vector<64x32xbf16>
    %c0_42 = arith.constant 0 : index
    %c25 = arith.constant 25 : index
    %c0_43 = arith.constant 0 : index
    %86 = vector.load %arg19[%c0_42, %c25, %c0_43] : memref<2x96x32xf32, #tpu.memory_space<vmem>>, vector<1x64x32xf32>
    %87 = vector.shape_cast %86 : vector<1x64x32xf32> to vector<64x32xf32>
    %88 = vector.broadcast %4 : vector<64x1xf32> to vector<64x32xf32>
    %89 = arith.mulf %87, %88 : vector<64x32xf32>
    %90 = arith.truncf %89 : vector<64x32xf32> to vector<64x32xbf16>
    %91 = tpu.concatenate %56, %59, %64, %69, %72, %77, %82, %85, %90 in 1 : vector<64x32xbf16>, vector<64x32xbf16>, vector<64x32xbf16>, vector<64x32xbf16>, vector<64x32xbf16>, vector<64x32xbf16>, vector<64x32xbf16>, vector<64x32xbf16>, vector<64x32xbf16> -> vector<64x288xbf16>
    %c1_44 = arith.constant 1 : index
    %c7_45 = arith.constant 7 : index
    %c0_46 = arith.constant 0 : index
    %92 = vector.load %arg19[%c1_44, %c7_45, %c0_46] : memref<2x96x32xf32, #tpu.memory_space<vmem>>, vector<1x64x32xf32>
    %93 = vector.shape_cast %92 : vector<1x64x32xf32> to vector<64x32xf32>
    %94 = vector.broadcast %3 : vector<64x1xf32> to vector<64x32xf32>
    %95 = arith.mulf %93, %94 : vector<64x32xf32>
    %96 = arith.truncf %95 : vector<64x32xf32> to vector<64x32xbf16>
    %c1_47 = arith.constant 1 : index
    %c8_48 = arith.constant 8 : index
    %c0_49 = arith.constant 0 : index
    %97 = vector.load %arg19[%c1_47, %c8_48, %c0_49] : memref<2x96x32xf32, #tpu.memory_space<vmem>>, vector<1x64x32xf32>
    %98 = vector.shape_cast %97 : vector<1x64x32xf32> to vector<64x32xf32>
    %99 = arith.truncf %98 : vector<64x32xf32> to vector<64x32xbf16>
    %c1_50 = arith.constant 1 : index
    %c9_51 = arith.constant 9 : index
    %c0_52 = arith.constant 0 : index
    %100 = vector.load %arg19[%c1_50, %c9_51, %c0_52] : memref<2x96x32xf32, #tpu.memory_space<vmem>>, vector<1x64x32xf32>
    %101 = vector.shape_cast %100 : vector<1x64x32xf32> to vector<64x32xf32>
    %102 = vector.broadcast %4 : vector<64x1xf32> to vector<64x32xf32>
    %103 = arith.mulf %101, %102 : vector<64x32xf32>
    %104 = arith.truncf %103 : vector<64x32xf32> to vector<64x32xbf16>
    %c1_53 = arith.constant 1 : index
    %c15_54 = arith.constant 15 : index
    %c0_55 = arith.constant 0 : index
    %105 = vector.load %arg19[%c1_53, %c15_54, %c0_55] : memref<2x96x32xf32, #tpu.memory_space<vmem>>, vector<1x64x32xf32>
    %106 = vector.shape_cast %105 : vector<1x64x32xf32> to vector<64x32xf32>
    %107 = vector.broadcast %3 : vector<64x1xf32> to vector<64x32xf32>
    %108 = arith.mulf %106, %107 : vector<64x32xf32>
    %109 = arith.truncf %108 : vector<64x32xf32> to vector<64x32xbf16>
    %c1_56 = arith.constant 1 : index
    %c16_57 = arith.constant 16 : index
    %c0_58 = arith.constant 0 : index
    %110 = vector.load %arg19[%c1_56, %c16_57, %c0_58] : memref<2x96x32xf32, #tpu.memory_space<vmem>>, vector<1x64x32xf32>
    %111 = vector.shape_cast %110 : vector<1x64x32xf32> to vector<64x32xf32>
    %112 = arith.truncf %111 : vector<64x32xf32> to vector<64x32xbf16>
    %c1_59 = arith.constant 1 : index
    %c17_60 = arith.constant 17 : index
    %c0_61 = arith.constant 0 : index
    %113 = vector.load %arg19[%c1_59, %c17_60, %c0_61] : memref<2x96x32xf32, #tpu.memory_space<vmem>>, vector<1x64x32xf32>
    %114 = vector.shape_cast %113 : vector<1x64x32xf32> to vector<64x32xf32>
    %115 = vector.broadcast %4 : vector<64x1xf32> to vector<64x32xf32>
    %116 = arith.mulf %114, %115 : vector<64x32xf32>
    %117 = arith.truncf %116 : vector<64x32xf32> to vector<64x32xbf16>
    %c1_62 = arith.constant 1 : index
    %c23_63 = arith.constant 23 : index
    %c0_64 = arith.constant 0 : index
    %118 = vector.load %arg19[%c1_62, %c23_63, %c0_64] : memref<2x96x32xf32, #tpu.memory_space<vmem>>, vector<1x64x32xf32>
    %119 = vector.shape_cast %118 : vector<1x64x32xf32> to vector<64x32xf32>
    %120 = vector.broadcast %3 : vector<64x1xf32> to vector<64x32xf32>
    %121 = arith.mulf %119, %120 : vector<64x32xf32>
    %122 = arith.truncf %121 : vector<64x32xf32> to vector<64x32xbf16>
    %c1_65 = arith.constant 1 : index
    %c24_66 = arith.constant 24 : index
    %c0_67 = arith.constant 0 : index
    %123 = vector.load %arg19[%c1_65, %c24_66, %c0_67] : memref<2x96x32xf32, #tpu.memory_space<vmem>>, vector<1x64x32xf32>
    %124 = vector.shape_cast %123 : vector<1x64x32xf32> to vector<64x32xf32>
    %125 = arith.truncf %124 : vector<64x32xf32> to vector<64x32xbf16>
    %c1_68 = arith.constant 1 : index
    %c25_69 = arith.constant 25 : index
    %c0_70 = arith.constant 0 : index
    %126 = vector.load %arg19[%c1_68, %c25_69, %c0_70] : memref<2x96x32xf32, #tpu.memory_space<vmem>>, vector<1x64x32xf32>
    %127 = vector.shape_cast %126 : vector<1x64x32xf32> to vector<64x32xf32>
    %128 = vector.broadcast %4 : vector<64x1xf32> to vector<64x32xf32>
    %129 = arith.mulf %127, %128 : vector<64x32xf32>
    %130 = arith.truncf %129 : vector<64x32xf32> to vector<64x32xbf16>
    %131 = tpu.concatenate %96, %99, %104, %109, %112, %117, %122, %125, %130 in 1 : vector<64x32xbf16>, vector<64x32xbf16>, vector<64x32xbf16>, vector<64x32xbf16>, vector<64x32xbf16>, vector<64x32xbf16>, vector<64x32xbf16>, vector<64x32xbf16>, vector<64x32xbf16> -> vector<64x288xbf16>
    %132 = tpu.concatenate %91, %131 in 0 : vector<64x288xbf16>, vector<64x288xbf16> -> vector<128x288xbf16>
    %c0_71 = arith.constant 0 : index
    %c0_72 = arith.constant 0 : index
    %133 = vector.load %arg6[%c0_71, %c0_72] : memref<288x64xbf16, #tpu.memory_space<vmem>>, vector<288x64xbf16>
    %cst_73 = arith.constant dense<0.000000e+00> : vector<128x64xf32>
    %134 = tpu.matmul %132, %133, %cst_73 {dimension_numbers = #tpu.dot_dimension_numbers<[1], [0], [0], [1], [0, 0, 1, 1], [], []>} : vector<128x288xbf16>, vector<288x64xbf16>, vector<128x64xf32> -> vector<128x64xf32>
    %c0_74 = arith.constant 0 : index
    %c0_75 = arith.constant 0 : index
    %135 = vector.load %arg7[%c0_74, %c0_75] : memref<1x64xf32, #tpu.memory_space<vmem>>, vector<1x64xf32>
    %136 = vector.broadcast %135 : vector<1x64xf32> to vector<128x64xf32>
    %137 = arith.addf %134, %136 : vector<128x64xf32>
    %138 = vector.shape_cast %137 : vector<128x64xf32> to vector<2x64x64xf32>
    %cst_76 = arith.constant dense<0.000000e+00> : vector<2x64xf32>
    %139 = vector.multi_reduction <add>, %138, %cst_76 [1] : vector<2x64x64xf32> to vector<2x64xf32>
    %140 = arith.mulf %138, %138 : vector<2x64x64xf32>
    %cst_77 = arith.constant dense<0.000000e+00> : vector<2x64xf32>
    %141 = vector.multi_reduction <add>, %140, %cst_77 [1] : vector<2x64x64xf32> to vector<2x64xf32>
    %142 = tpu.concatenate %139, %141 in 0 : vector<2x64xf32>, vector<2x64xf32> -> vector<4x64xf32>
    %c0_78 = arith.constant 0 : index
    %c0_79 = arith.constant 0 : index
    %143 = vector.load %arg8[%c0_78, %c0_79] : memref<64x32xf32, #tpu.memory_space<vmem>>, vector<64x32xf32>
    %cst_80 = arith.constant dense<0.000000e+00> : vector<4x32xf32>
    %144 = tpu.matmul %142, %143, %cst_80 {dimension_numbers = #tpu.dot_dimension_numbers<[1], [0], [0], [1], [0, 0, 1, 1], [], []>} : vector<4x64xf32>, vector<64x32xf32>, vector<4x32xf32> -> vector<4x32xf32>
    %c0_81 = arith.constant 0 : index
    %c0_82 = arith.constant 0 : index
    %145 = vector.load %arg9[%c0_81, %c0_82] : memref<32x64xf32, #tpu.memory_space<vmem>>, vector<32x64xf32>
    %cst_83 = arith.constant dense<0.000000e+00> : vector<4x64xf32>
    %146 = tpu.matmul %144, %145, %cst_83 {dimension_numbers = #tpu.dot_dimension_numbers<[1], [0], [0], [1], [0, 0, 1, 1], [], []>} : vector<4x32xf32>, vector<32x64xf32>, vector<4x64xf32> -> vector<4x64xf32>
    %147 = vector.extract_strided_slice %146 {offsets = [0, 0], sizes = [2, 64], strides = [1, 1]} : vector<4x64xf32> to vector<2x64xf32>
    %148 = vector.extract_strided_slice %146 {offsets = [2, 0], sizes = [2, 64], strides = [1, 1]} : vector<4x64xf32> to vector<2x64xf32>
    %149 = arith.mulf %147, %147 : vector<2x64xf32>
    %150 = arith.subf %148, %149 : vector<2x64xf32>
    %cst_84 = arith.constant 0.000000e+00 : f32
    %151 = vector.broadcast %cst_84 : f32 to vector<2x64xf32>
    %152 = arith.maximumf %150, %151 : vector<2x64xf32>
    %cst_85 = arith.constant 9.99999974E-6 : f32
    %153 = vector.broadcast %cst_85 : f32 to vector<2x64xf32>
    %154 = arith.addf %152, %153 : vector<2x64xf32>
    %155 = math.rsqrt %154 : vector<2x64xf32>
    %c0_86 = arith.constant 0 : index
    %c0_87 = arith.constant 0 : index
    %156 = vector.load %arg10[%c0_86, %c0_87] : memref<1x64xf32, #tpu.memory_space<vmem>>, vector<1x64xf32>
    %157 = vector.broadcast %156 : vector<1x64xf32> to vector<2x64xf32>
    %158 = arith.mulf %155, %157 : vector<2x64xf32>
    %c0_88 = arith.constant 0 : index
    %c0_89 = arith.constant 0 : index
    %159 = vector.load %arg11[%c0_88, %c0_89] : memref<1x64xf32, #tpu.memory_space<vmem>>, vector<1x64xf32>
    %160 = arith.mulf %147, %158 : vector<2x64xf32>
    %161 = vector.broadcast %159 : vector<1x64xf32> to vector<2x64xf32>
    %162 = arith.subf %161, %160 : vector<2x64xf32>
    %163 = vector.shape_cast %158 : vector<2x64xf32> to vector<2x1x64xf32>
    %164 = vector.broadcast %163 : vector<2x1x64xf32> to vector<2x64x64xf32>
    %165 = arith.mulf %138, %164 : vector<2x64x64xf32>
    %166 = vector.shape_cast %162 : vector<2x64xf32> to vector<2x1x64xf32>
    %167 = vector.broadcast %166 : vector<2x1x64xf32> to vector<2x64x64xf32>
    %168 = arith.addf %165, %167 : vector<2x64x64xf32>
    %169 = arith.negf %168 : vector<2x64x64xf32>
    %170 = math.exp %169 : vector<2x64x64xf32>
    %cst_90 = arith.constant 1.000000e+00 : f32
    %171 = vector.broadcast %cst_90 : f32 to vector<2x64x64xf32>
    %172 = arith.addf %171, %170 : vector<2x64x64xf32>
    %173 = arith.divf %171, %172 : vector<2x64x64xf32>
    %174 = arith.mulf %168, %173 : vector<2x64x64xf32>
    %175 = vector.extract_strided_slice %174 {offsets = [0, 0, 0], sizes = [1, 64, 64], strides = [1, 1, 1]} : vector<2x64x64xf32> to vector<1x64x64xf32>
    %176 = vector.shape_cast %175 : vector<1x64x64xf32> to vector<64x64xf32>
    %c0_91 = arith.constant 0 : index
    %c16_92 = arith.constant 16 : index
    %c0_93 = arith.constant 0 : index
    %177 = vector.load %arg20[%c0_91, %c16_92, %c0_93] : memref<2x96x64xf32, #tpu.memory_space<vmem>>, vector<1x64x64xf32>
    %178 = vector.shape_cast %177 : vector<1x64x64xf32> to vector<64x64xf32>
    %179 = vector.shape_cast %176 : vector<64x64xf32> to vector<1x64x64xf32>
    tpu.vector_store %arg20[%c0_91, %c16_92, %c0_93], %179 {strides = array<i32>} : memref<2x96x64xf32, #tpu.memory_space<vmem>>, vector<1x64x64xf32>,
    %180 = vector.extract_strided_slice %174 {offsets = [1, 0, 0], sizes = [1, 64, 64], strides = [1, 1, 1]} : vector<2x64x64xf32> to vector<1x64x64xf32>
    %181 = vector.shape_cast %180 : vector<1x64x64xf32> to vector<64x64xf32>
    %c1_94 = arith.constant 1 : index
    %c16_95 = arith.constant 16 : index
    %c0_96 = arith.constant 0 : index
    %182 = vector.load %arg20[%c1_94, %c16_95, %c0_96] : memref<2x96x64xf32, #tpu.memory_space<vmem>>, vector<1x64x64xf32>
    %183 = vector.shape_cast %182 : vector<1x64x64xf32> to vector<64x64xf32>
    %184 = vector.shape_cast %181 : vector<64x64xf32> to vector<1x64x64xf32>
    tpu.vector_store %arg20[%c1_94, %c16_95, %c0_96], %184 {strides = array<i32>} : memref<2x96x64xf32, #tpu.memory_space<vmem>>, vector<1x64x64xf32>,
    %c0_97 = arith.constant 0 : index
    %c7_98 = arith.constant 7 : index
    %c0_99 = arith.constant 0 : index
    %185 = vector.load %arg20[%c0_97, %c7_98, %c0_99] : memref<2x96x64xf32, #tpu.memory_space<vmem>>, vector<1x64x64xf32>
    %186 = vector.shape_cast %185 : vector<1x64x64xf32> to vector<64x64xf32>
    %187 = vector.broadcast %3 : vector<64x1xf32> to vector<64x64xf32>
    %188 = arith.mulf %186, %187 : vector<64x64xf32>
    %189 = arith.truncf %188 : vector<64x64xf32> to vector<64x64xbf16>
    %c0_100 = arith.constant 0 : index
    %c8_101 = arith.constant 8 : index
    %c0_102 = arith.constant 0 : index
    %190 = vector.load %arg20[%c0_100, %c8_101, %c0_102] : memref<2x96x64xf32, #tpu.memory_space<vmem>>, vector<1x64x64xf32>
    %191 = vector.shape_cast %190 : vector<1x64x64xf32> to vector<64x64xf32>
    %192 = arith.truncf %191 : vector<64x64xf32> to vector<64x64xbf16>
    %c0_103 = arith.constant 0 : index
    %c9_104 = arith.constant 9 : index
    %c0_105 = arith.constant 0 : index
    %193 = vector.load %arg20[%c0_103, %c9_104, %c0_105] : memref<2x96x64xf32, #tpu.memory_space<vmem>>, vector<1x64x64xf32>
    %194 = vector.shape_cast %193 : vector<1x64x64xf32> to vector<64x64xf32>
    %195 = vector.broadcast %4 : vector<64x1xf32> to vector<64x64xf32>
    %196 = arith.mulf %194, %195 : vector<64x64xf32>
    %197 = arith.truncf %196 : vector<64x64xf32> to vector<64x64xbf16>
    %c0_106 = arith.constant 0 : index
    %c15_107 = arith.constant 15 : index
    %c0_108 = arith.constant 0 : index
    %198 = vector.load %arg20[%c0_106, %c15_107, %c0_108] : memref<2x96x64xf32, #tpu.memory_space<vmem>>, vector<1x64x64xf32>
    %199 = vector.shape_cast %198 : vector<1x64x64xf32> to vector<64x64xf32>
    %200 = vector.broadcast %3 : vector<64x1xf32> to vector<64x64xf32>
    %201 = arith.mulf %199, %200 : vector<64x64xf32>
    %202 = arith.truncf %201 : vector<64x64xf32> to vector<64x64xbf16>
    %c0_109 = arith.constant 0 : index
    %c16_110 = arith.constant 16 : index
    %c0_111 = arith.constant 0 : index
    %203 = vector.load %arg20[%c0_109, %c16_110, %c0_111] : memref<2x96x64xf32, #tpu.memory_space<vmem>>, vector<1x64x64xf32>
    %204 = vector.shape_cast %203 : vector<1x64x64xf32> to vector<64x64xf32>
    %205 = arith.truncf %204 : vector<64x64xf32> to vector<64x64xbf16>
    %c0_112 = arith.constant 0 : index
    %c17_113 = arith.constant 17 : index
    %c0_114 = arith.constant 0 : index
    %206 = vector.load %arg20[%c0_112, %c17_113, %c0_114] : memref<2x96x64xf32, #tpu.memory_space<vmem>>, vector<1x64x64xf32>
    %207 = vector.shape_cast %206 : vector<1x64x64xf32> to vector<64x64xf32>
    %208 = vector.broadcast %4 : vector<64x1xf32> to vector<64x64xf32>
    %209 = arith.mulf %207, %208 : vector<64x64xf32>
    %210 = arith.truncf %209 : vector<64x64xf32> to vector<64x64xbf16>
    %c0_115 = arith.constant 0 : index
    %c23_116 = arith.constant 23 : index
    %c0_117 = arith.constant 0 : index
    %211 = vector.load %arg20[%c0_115, %c23_116, %c0_117] : memref<2x96x64xf32, #tpu.memory_space<vmem>>, vector<1x64x64xf32>
    %212 = vector.shape_cast %211 : vector<1x64x64xf32> to vector<64x64xf32>
    %213 = vector.broadcast %3 : vector<64x1xf32> to vector<64x64xf32>
    %214 = arith.mulf %212, %213 : vector<64x64xf32>
    %215 = arith.truncf %214 : vector<64x64xf32> to vector<64x64xbf16>
    %c0_118 = arith.constant 0 : index
    %c24_119 = arith.constant 24 : index
    %c0_120 = arith.constant 0 : index
    %216 = vector.load %arg20[%c0_118, %c24_119, %c0_120] : memref<2x96x64xf32, #tpu.memory_space<vmem>>, vector<1x64x64xf32>
    %217 = vector.shape_cast %216 : vector<1x64x64xf32> to vector<64x64xf32>
    %218 = arith.truncf %217 : vector<64x64xf32> to vector<64x64xbf16>
    %c0_121 = arith.constant 0 : index
    %c25_122 = arith.constant 25 : index
    %c0_123 = arith.constant 0 : index
    %219 = vector.load %arg20[%c0_121, %c25_122, %c0_123] : memref<2x96x64xf32, #tpu.memory_space<vmem>>, vector<1x64x64xf32>
    %220 = vector.shape_cast %219 : vector<1x64x64xf32> to vector<64x64xf32>
    %221 = vector.broadcast %4 : vector<64x1xf32> to vector<64x64xf32>
    %222 = arith.mulf %220, %221 : vector<64x64xf32>
    %223 = arith.truncf %222 : vector<64x64xf32> to vector<64x64xbf16>
    %224 = tpu.concatenate %189, %192, %197, %202, %205, %210, %215, %218, %223 in 1 : vector<64x64xbf16>, vector<64x64xbf16>, vector<64x64xbf16>, vector<64x64xbf16>, vector<64x64xbf16>, vector<64x64xbf16>, vector<64x64xbf16>, vector<64x64xbf16>, vector<64x64xbf16> -> vector<64x576xbf16>
    %c1_124 = arith.constant 1 : index
    %c7_125 = arith.constant 7 : index
    %c0_126 = arith.constant 0 : index
    %225 = vector.load %arg20[%c1_124, %c7_125, %c0_126] : memref<2x96x64xf32, #tpu.memory_space<vmem>>, vector<1x64x64xf32>
    %226 = vector.shape_cast %225 : vector<1x64x64xf32> to vector<64x64xf32>
    %227 = vector.broadcast %3 : vector<64x1xf32> to vector<64x64xf32>
    %228 = arith.mulf %226, %227 : vector<64x64xf32>
    %229 = arith.truncf %228 : vector<64x64xf32> to vector<64x64xbf16>
    %c1_127 = arith.constant 1 : index
    %c8_128 = arith.constant 8 : index
    %c0_129 = arith.constant 0 : index
    %230 = vector.load %arg20[%c1_127, %c8_128, %c0_129] : memref<2x96x64xf32, #tpu.memory_space<vmem>>, vector<1x64x64xf32>
    %231 = vector.shape_cast %230 : vector<1x64x64xf32> to vector<64x64xf32>
    %232 = arith.truncf %231 : vector<64x64xf32> to vector<64x64xbf16>
    %c1_130 = arith.constant 1 : index
    %c9_131 = arith.constant 9 : index
    %c0_132 = arith.constant 0 : index
    %233 = vector.load %arg20[%c1_130, %c9_131, %c0_132] : memref<2x96x64xf32, #tpu.memory_space<vmem>>, vector<1x64x64xf32>
    %234 = vector.shape_cast %233 : vector<1x64x64xf32> to vector<64x64xf32>
    %235 = vector.broadcast %4 : vector<64x1xf32> to vector<64x64xf32>
    %236 = arith.mulf %234, %235 : vector<64x64xf32>
    %237 = arith.truncf %236 : vector<64x64xf32> to vector<64x64xbf16>
    %c1_133 = arith.constant 1 : index
    %c15_134 = arith.constant 15 : index
    %c0_135 = arith.constant 0 : index
    %238 = vector.load %arg20[%c1_133, %c15_134, %c0_135] : memref<2x96x64xf32, #tpu.memory_space<vmem>>, vector<1x64x64xf32>
    %239 = vector.shape_cast %238 : vector<1x64x64xf32> to vector<64x64xf32>
    %240 = vector.broadcast %3 : vector<64x1xf32> to vector<64x64xf32>
    %241 = arith.mulf %239, %240 : vector<64x64xf32>
    %242 = arith.truncf %241 : vector<64x64xf32> to vector<64x64xbf16>
    %c1_136 = arith.constant 1 : index
    %c16_137 = arith.constant 16 : index
    %c0_138 = arith.constant 0 : index
    %243 = vector.load %arg20[%c1_136, %c16_137, %c0_138] : memref<2x96x64xf32, #tpu.memory_space<vmem>>, vector<1x64x64xf32>
    %244 = vector.shape_cast %243 : vector<1x64x64xf32> to vector<64x64xf32>
    %245 = arith.truncf %244 : vector<64x64xf32> to vector<64x64xbf16>
    %c1_139 = arith.constant 1 : index
    %c17_140 = arith.constant 17 : index
    %c0_141 = arith.constant 0 : index
    %246 = vector.load %arg20[%c1_139, %c17_140, %c0_141] : memref<2x96x64xf32, #tpu.memory_space<vmem>>, vector<1x64x64xf32>
    %247 = vector.shape_cast %246 : vector<1x64x64xf32> to vector<64x64xf32>
    %248 = vector.broadcast %4 : vector<64x1xf32> to vector<64x64xf32>
    %249 = arith.mulf %247, %248 : vector<64x64xf32>
    %250 = arith.truncf %249 : vector<64x64xf32> to vector<64x64xbf16>
    %c1_142 = arith.constant 1 : index
    %c23_143 = arith.constant 23 : index
    %c0_144 = arith.constant 0 : index
    %251 = vector.load %arg20[%c1_142, %c23_143, %c0_144] : memref<2x96x64xf32, #tpu.memory_space<vmem>>, vector<1x64x64xf32>
    %252 = vector.shape_cast %251 : vector<1x64x64xf32> to vector<64x64xf32>
    %253 = vector.broadcast %3 : vector<64x1xf32> to vector<64x64xf32>
    %254 = arith.mulf %252, %253 : vector<64x64xf32>
    %255 = arith.truncf %254 : vector<64x64xf32> to vector<64x64xbf16>
    %c1_145 = arith.constant 1 : index
    %c24_146 = arith.constant 24 : index
    %c0_147 = arith.constant 0 : index
    %256 = vector.load %arg20[%c1_145, %c24_146, %c0_147] : memref<2x96x64xf32, #tpu.memory_space<vmem>>, vector<1x64x64xf32>
    %257 = vector.shape_cast %256 : vector<1x64x64xf32> to vector<64x64xf32>
    %258 = arith.truncf %257 : vector<64x64xf32> to vector<64x64xbf16>
    %c1_148 = arith.constant 1 : index
    %c25_149 = arith.constant 25 : index
    %c0_150 = arith.constant 0 : index
    %259 = vector.load %arg20[%c1_148, %c25_149, %c0_150] : memref<2x96x64xf32, #tpu.memory_space<vmem>>, vector<1x64x64xf32>
    %260 = vector.shape_cast %259 : vector<1x64x64xf32> to vector<64x64xf32>
    %261 = vector.broadcast %4 : vector<64x1xf32> to vector<64x64xf32>
    %262 = arith.mulf %260, %261 : vector<64x64xf32>
    %263 = arith.truncf %262 : vector<64x64xf32> to vector<64x64xbf16>
    %264 = tpu.concatenate %229, %232, %237, %242, %245, %250, %255, %258, %263 in 1 : vector<64x64xbf16>, vector<64x64xbf16>, vector<64x64xbf16>, vector<64x64xbf16>, vector<64x64xbf16>, vector<64x64xbf16>, vector<64x64xbf16>, vector<64x64xbf16>, vector<64x64xbf16> -> vector<64x576xbf16>
    %265 = tpu.concatenate %224, %264 in 0 : vector<64x576xbf16>, vector<64x576xbf16> -> vector<128x576xbf16>
    %c0_151 = arith.constant 0 : index
    %c0_152 = arith.constant 0 : index
    %266 = vector.load %arg12[%c0_151, %c0_152] : memref<576x64xbf16, #tpu.memory_space<vmem>>, vector<576x64xbf16>
    %cst_153 = arith.constant dense<0.000000e+00> : vector<128x64xf32>
    %267 = tpu.matmul %265, %266, %cst_153 {dimension_numbers = #tpu.dot_dimension_numbers<[1], [0], [0], [1], [0, 0, 1, 1], [], []>} : vector<128x576xbf16>, vector<576x64xbf16>, vector<128x64xf32> -> vector<128x64xf32>
    %c0_154 = arith.constant 0 : index
    %c0_155 = arith.constant 0 : index
    %268 = vector.load %arg13[%c0_154, %c0_155] : memref<1x64xf32, #tpu.memory_space<vmem>>, vector<1x64xf32>
    %269 = vector.broadcast %268 : vector<1x64xf32> to vector<128x64xf32>
    %270 = arith.addf %267, %269 : vector<128x64xf32>
    %271 = vector.shape_cast %270 : vector<128x64xf32> to vector<2x64x64xf32>
    %272 = vector.shape_cast %5 : vector<2x64x32xf32> to vector<128x32xf32>
    %273 = arith.truncf %272 : vector<128x32xf32> to vector<128x32xbf16>
    %c0_156 = arith.constant 0 : index
    %c0_157 = arith.constant 0 : index
    %274 = vector.load %arg14[%c0_156, %c0_157] : memref<32x64xbf16, #tpu.memory_space<vmem>>, vector<32x64xbf16>
    %cst_158 = arith.constant dense<0.000000e+00> : vector<128x64xf32>
    %275 = tpu.matmul %273, %274, %cst_158 {dimension_numbers = #tpu.dot_dimension_numbers<[1], [0], [0], [1], [0, 0, 1, 1], [], []>} : vector<128x32xbf16>, vector<32x64xbf16>, vector<128x64xf32> -> vector<128x64xf32>
    %c0_159 = arith.constant 0 : index
    %c0_160 = arith.constant 0 : index
    %276 = vector.load %arg15[%c0_159, %c0_160] : memref<1x64xf32, #tpu.memory_space<vmem>>, vector<1x64xf32>
    %277 = vector.broadcast %276 : vector<1x64xf32> to vector<128x64xf32>
    %278 = arith.addf %275, %277 : vector<128x64xf32>
    %279 = vector.shape_cast %278 : vector<128x64xf32> to vector<2x64x64xf32>
    %280 = arith.addf %279, %271 : vector<2x64x64xf32>
    %c0_161 = arith.constant 0 : index
    %c0_162 = arith.constant 0 : index
    %c0_163 = arith.constant 0 : index
    %281 = vector.load %arg18[%c0_161, %c0_162, %c0_163] : memref<2x64x64xf32, #tpu.memory_space<vmem>>, vector<2x64x64xf32>
    tpu.vector_store %arg18[%c0_161, %c0_162, %c0_163], %280 {strides = array<i32>} : memref<2x64x64xf32, #tpu.memory_space<vmem>>, vector<2x64x64xf32>,
    return
  }
  func.func @transform_0(%arg0: i32) -> (i32, i32, i32) {
    %c0_i32 = arith.constant 0 : i32
    %c0_i32_0 = arith.constant 0 : i32
    %c0_i32_1 = arith.constant 0 : i32
    return %arg0, %c0_i32, %c0_i32_0 : i32, i32, i32
  }
  func.func @transform_1(%arg0: i32) -> (i32, i32) {
    %c0_i32 = arith.constant 0 : i32
    %c0_i32_0 = arith.constant 0 : i32
    %c0_i32_1 = arith.constant 0 : i32
    return %c0_i32, %c0_i32_0 : i32, i32
  }
  func.func @transform_2(%arg0: i32) -> (i32, i32) {
    %c0_i32 = arith.constant 0 : i32
    %c0_i32_0 = arith.constant 0 : i32
    %c0_i32_1 = arith.constant 0 : i32
    return %c0_i32, %c0_i32_0 : i32, i32
  }
  func.func @transform_3(%arg0: i32) -> (i32, i32) {
    %c0_i32 = arith.constant 0 : i32
    %c0_i32_0 = arith.constant 0 : i32
    %c0_i32_1 = arith.constant 0 : i32
    return %c0_i32, %c0_i32_0 : i32, i32
  }
  func.func @transform_4(%arg0: i32) -> (i32, i32) {
    %c0_i32 = arith.constant 0 : i32
    %c0_i32_0 = arith.constant 0 : i32
    %c0_i32_1 = arith.constant 0 : i32
    return %c0_i32, %c0_i32_0 : i32, i32
  }
  func.func @transform_5(%arg0: i32) -> (i32, i32) {
    %c0_i32 = arith.constant 0 : i32
    %c0_i32_0 = arith.constant 0 : i32
    %c0_i32_1 = arith.constant 0 : i32
    return %c0_i32, %c0_i32_0 : i32, i32
  }
  func.func @transform_6(%arg0: i32) -> (i32, i32) {
    %c0_i32 = arith.constant 0 : i32
    %c0_i32_0 = arith.constant 0 : i32
    %c0_i32_1 = arith.constant 0 : i32
    return %c0_i32, %c0_i32_0 : i32, i32
  }
  func.func @transform_7(%arg0: i32) -> (i32, i32) {
    %c0_i32 = arith.constant 0 : i32
    %c0_i32_0 = arith.constant 0 : i32
    %c0_i32_1 = arith.constant 0 : i32
    return %c0_i32, %c0_i32_0 : i32, i32
  }
  func.func @transform_8(%arg0: i32) -> (i32, i32) {
    %c0_i32 = arith.constant 0 : i32
    %c0_i32_0 = arith.constant 0 : i32
    %c0_i32_1 = arith.constant 0 : i32
    return %c0_i32, %c0_i32_0 : i32, i32
  }
  func.func @transform_9(%arg0: i32) -> (i32, i32) {
    %c0_i32 = arith.constant 0 : i32
    %c0_i32_0 = arith.constant 0 : i32
    %c0_i32_1 = arith.constant 0 : i32
    return %c0_i32, %c0_i32_0 : i32, i32
  }
  func.func @transform_10(%arg0: i32) -> (i32, i32) {
    %c0_i32 = arith.constant 0 : i32
    %c0_i32_0 = arith.constant 0 : i32
    %c0_i32_1 = arith.constant 0 : i32
    return %c0_i32, %c0_i32_0 : i32, i32
  }
  func.func @transform_11(%arg0: i32) -> (i32, i32) {
    %c0_i32 = arith.constant 0 : i32
    %c0_i32_0 = arith.constant 0 : i32
    %c0_i32_1 = arith.constant 0 : i32
    return %c0_i32, %c0_i32_0 : i32, i32
  }
  func.func @transform_12(%arg0: i32) -> (i32, i32) {
    %c0_i32 = arith.constant 0 : i32
    %c0_i32_0 = arith.constant 0 : i32
    %c0_i32_1 = arith.constant 0 : i32
    return %c0_i32, %c0_i32_0 : i32, i32
  }
  func.func @transform_13(%arg0: i32) -> (i32, i32) {
    %c0_i32 = arith.constant 0 : i32
    %c0_i32_0 = arith.constant 0 : i32
    %c0_i32_1 = arith.constant 0 : i32
    return %c0_i32, %c0_i32_0 : i32, i32
  }
  func.func @transform_14(%arg0: i32) -> (i32, i32) {
    %c0_i32 = arith.constant 0 : i32
    %c0_i32_0 = arith.constant 0 : i32
    %c0_i32_1 = arith.constant 0 : i32
    return %c0_i32, %c0_i32_0 : i32, i32
  }
  func.func @transform_15(%arg0: i32) -> (i32, i32) {
    %c0_i32 = arith.constant 0 : i32
    %c0_i32_0 = arith.constant 0 : i32
    %c0_i32_1 = arith.constant 0 : i32
    return %c0_i32, %c0_i32_0 : i32, i32
  }
  func.func @transform_16(%arg0: i32) -> (i32, i32) {
    %c0_i32 = arith.constant 0 : i32
    %c0_i32_0 = arith.constant 0 : i32
    %c0_i32_1 = arith.constant 0 : i32
    return %c0_i32, %c0_i32_0 : i32, i32
  }
  func.func @transform_17(%arg0: i32) -> (i32, i32, i32) {
    %c0_i32 = arith.constant 0 : i32
    %c0_i32_0 = arith.constant 0 : i32
    %c0_i32_1 = arith.constant 0 : i32
    return %arg0, %c0_i32, %c0_i32_0 : i32, i32, i32
  }
}

</mosaic_0001>

<bundles_post_ra>
// kernel: tpu_custom_call.1
= control target key start
LH: loop header
LB: loop body
LE: loop exit
PB: predicated region body
PF: predicated region fallthrough
CT: control target
= control target key end

     0   :  { %s6606_s0 = inlined_call_operand.vmem [shape: f32[2,64,32], index: 0, kind: input, shape index: {}]   ;;  %s6607_s1 = inlined_call_operand.vmem [shape: f32[32,32], index: 1, kind: input, shape index: {}]   ;;  %s6608_s2 = inlined_call_operand.vmem [shape: f32[32,32], index: 2, kind: input, shape index: {}]   ;;  %s6609_s3 = inlined_call_operand.vmem [shape: f32[1,32], index: 3, kind: input, shape index: {}]   ;;  %s6610_s4 = inlined_call_operand.vmem [shape: f32[1,32], index: 4, kind: input, shape index: {}]   ;;  %s6611_s5 = inlined_call_operand.vmem [shape: bf16[288,64], index: 5, kind: input, shape index: {}]   ;;  %s6612_s6 = inlined_call_operand.vmem [shape: f32[1,64], index: 6, kind: input, shape index: {}]   ;;  %s6613_s7 = inlined_call_operand.vmem [shape: f32[64,32], index: 7, kind: input, shape index: {}]   ;;  %s6614_s8 = inlined_call_operand.vmem [shape: f32[32,64], index: 8, kind: input, shape index: {}]   ;;  %s6615_s9 = inlined_call_operand.vmem [shape: f32[1,64], index: 9, kind: input, shape index: {}]   ;;  %s6616_s10 = inlined_call_operand.vmem [shape: f32[1,64], index: 10, kind: input, shape index: {}]   ;;  %s6617_s11 = inlined_call_operand.vmem [shape: bf16[576,64], index: 11, kind: input, shape index: {}]   ;;  %s6618_s12 = inlined_call_operand.vmem [shape: f32[1,64], index: 12, kind: input, shape index: {}]   ;;  %s6619_s13 = inlined_call_operand.vmem [shape: bf16[32,64], index: 13, kind: input, shape index: {}]   ;;  %s6620_s14 = inlined_call_operand.vmem [shape: f32[1,64], index: 14, kind: input, shape index: {}]   ;;  %s6621_s15 = inlined_call_operand.vmem [shape: f32[64,1], index: 15, kind: input, shape index: {}]   ;;  %s6622_s16 = inlined_call_operand.vmem [shape: f32[64,1], index: 16, kind: input, shape index: {}]   ;;  %s6623_s17 = inlined_call_operand.hbm [shape: f32[2,64,64], index: 17, kind: output, shape index: {}]  }
   0x1   :  { %6699 = sst [smem:[#allocation45_spill]] %s6606_s0 }
   0x2   :  { %6700 = sst [smem:[#allocation46_spill]] %s6607_s1 }
   0x3   :  { %s6701_s26 = sld [smem:[#allocation46_spill]]  ;;  %v6626_v3 = vmov 0.0|0.0   ;;  %vm4203_vm0 = vmmov 0   ;;  %v6628_v6 = vmov 0.0   ;;  %vm62_vm1 = vcmask 261120   ;;  %s6702_s20 = sld [smem:[#allocation45_spill]] }
   0x4   :  { %3875 = vmatprep.subr.bf16.mxu0 %v6626_v3  ;;  %3767 = vmatprep.mubr.msk.f32.mxu0 %vm4203_vm0, %v6628_v6  ;;  %63 = vst.msk [vmem:[#allocation2] sm:$0xff] %vm62_vm1, %v6628_v6  ;;  %64 = vst.msk [vmem:[#allocation2 + $0x8] sm:$0xff] %vm62_vm1, %v6628_v6  ;;  %vm247_vm2 = vcmask 1041409   ;;  %vm252_vm3 = vcmask 1043459   ;;  %vm255_vm4 = vcmask 1041408  }
   0x5   :  { %65 = vst.msk [vmem:[#allocation2 + $0x10] sm:$0xff] %vm62_vm1, %v6628_v6  ;;  %66 = vst.msk [vmem:[#allocation2 + $0x18] sm:$0xff] %vm62_vm1, %v6628_v6  ;;  %3881 = vmatprep.subr.bf16.mxu1 %v6626_v3  ;;  %3778 = vmatprep.mubr.msk.f32.mxu1 %vm4203_vm0, %v6628_v6 }
   0x6   :  { %67 = vst.msk [vmem:[#allocation2 + $0x20] sm:$0xff] %vm62_vm1, %v6628_v6  ;;  %68 = vst.msk [vmem:[#allocation2 + $0x28] sm:$0xff] %vm62_vm1, %v6628_v6 }
   0x7   :  { %69 = vst.msk [vmem:[#allocation2 + $0x30] sm:$0xff] %vm62_vm1, %v6628_v6  ;;  %70 = vst.msk [vmem:[#allocation2 + $0x38] sm:$0xff] %vm62_vm1, %v6628_v6 }
   0x8   :  { %71 = vst.msk [vmem:[#allocation2 + $0x40] sm:$0xff] %vm62_vm1, %v6628_v6  ;;  %72 = vst.msk [vmem:[#allocation2 + $0x48] sm:$0xff] %vm62_vm1, %v6628_v6 }
   0x9   :  { %v257_v0 = vld [vmem:[%s6701_s26] sm:$0xff]  ;;  %v258_v1 = vld [vmem:[%s6701_s26 + $0x8] sm:$0xff]  ;;  %v4312_v2 = vld [vmem:[%s6701_s26 + $0x10] sm:$0xff]  ;;  %73 = vst.msk [vmem:[#allocation2 + $0x50] sm:$0xff] %vm62_vm1, %v6628_v6 }
   0xa   :  { %v3876_v4 = vpack.c.bf16 %v258_v1, %v257_v0  ;;  %v4318_v5 = vld [vmem:[%s6701_s26 + $0x18] sm:$0xff]  ;;  %v4325_v7 = vld [vmem:[%s6702_s20] sm:$0xff]  ;;  %v4330_v8 = vld [vmem:[%s6702_s20 + $0x8] sm:$0xff]  ;;  %74 = vst.msk [vmem:[#allocation2 + $0x58] sm:$0xff] %vm62_vm1, %v6628_v6 }
   0xb   :  { %v4335_v9 = vld [vmem:[%s6702_s20 + $0x10] sm:$0xff]  ;;  %v4340_v10 = vld [vmem:[%s6702_s20 + $0x18] sm:$0xff]  ;;  %v145_v11 = vsel %vm62_vm1, %v4325_v7, 0.0  ;;  %v146_v12 = vsel %vm62_vm1, %v4330_v8, 0.0  ;;  %75 = vst.msk [vmem:[#allocation2 + $0x60] sm:$0xff] %vm62_vm1, %v6628_v6  ;;  %76 = vst.msk [vmem:[#allocation2 + $0x68] sm:$0xff] %vm62_vm1, %v6628_v6  ;;  %v3879_v13 = vpack.c.bf16 %v4318_v5, %v4312_v2  ;;  %v187_v45 = vmul.f32 %v4325_v7, %v4325_v7 }
   0xc   :  { %77 = vst.msk [vmem:[#allocation2 + $0x70] sm:$0xff] %vm62_vm1, %v6628_v6  ;;  %78 = vst.msk [vmem:[#allocation2 + $0x78] sm:$0xff] %vm62_vm1, %v6628_v6  ;;  %3877 = vmatpush3.bf16.msra.mxu0 %v3876_v4  ;;  %v4402_v14 = vld [vmem:[%s6702_s20 + $0x20] sm:$0xff]  ;;  %v4407_v15 = vld [vmem:[%s6702_s20 + $0x28] sm:$0xff]  ;;  %v147_v17 = vadd.f32 %v146_v12, %v145_v11  ;;  %v148_v18 = vsel %vm62_vm1, %v4335_v9, 0.0  ;;  %v150_v19 = vsel %vm62_vm1, %v4340_v10, 0.0  ;;  %v188_v46 = vmul.f32 %v4330_v8, %v4330_v8 }
   0xd   :  { %79 = vst.msk [vmem:[#allocation2 + $0x80] sm:$0xff] %vm62_vm1, %v6628_v6  ;;  %80 = vst.msk [vmem:[#allocation2 + $0x88] sm:$0xff] %vm62_vm1, %v6628_v6  ;;  %v4412_v16 = vld [vmem:[%s6702_s20 + $0x30] sm:$0xff]  ;;  %3878 = vmatprep.subr.bf16.mxu0 %v6626_v3  ;;  %v4422_v20 = vld [vmem:[%s6702_s20 + $0x40] sm:$0xff]  ;;  %v152_v23 = vsel %vm62_vm1, %v4402_v14, 0.0  ;;  %v154_v24 = vsel %vm62_vm1, %v4407_v15, 0.0  ;;  %v189_v48 = vmul.f32 %v4335_v9, %v4335_v9  ;;  %v190_v50 = vmul.f32 %v4340_v10, %v4340_v10 }
   0xe   :  { %81 = vst.msk [vmem:[#allocation2 + $0x90] sm:$0xff] %vm62_vm1, %v6628_v6  ;;  %82 = vst.msk [vmem:[#allocation2 + $0x98] sm:$0xff] %vm62_vm1, %v6628_v6  ;;  %v4427_v21 = vld [vmem:[%s6702_s20 + $0x48] sm:$0xff]  ;;  %v4432_v22 = vld [vmem:[%s6702_s20 + $0x50] sm:$0xff]  ;;  %v156_v25 = vsel %vm62_vm1, %v4412_v16, 0.0  ;;  %v149_v29 = vadd.f32 %v148_v18, %v147_v17  ;;  %v166_v30 = vsel %vm62_vm1, %v4422_v20, 0.0  ;;  %v191_v51 = vmul.f32 %v4402_v14, %v4402_v14 }
   0xf   :  { %83 = vst.msk [vmem:[#allocation2 + $0xa0] sm:$0xff] %vm62_vm1, %v6628_v6  ;;  %84 = vst.msk [vmem:[#allocation2 + $0xa8] sm:$0xff] %vm62_vm1, %v6628_v6  ;;  %v4443_v26 = vld [vmem:[%s6702_s20 + $0x38] sm:$0xff]  ;;  %v4453_v28 = vld [vmem:[%s6702_s20 + $0x60] sm:$0xff]  ;;  %v167_v31 = vsel %vm62_vm1, %v4427_v21, 0.0  ;;  %v169_v32 = vsel %vm62_vm1, %v4432_v22, 0.0  ;;  %v192_v52 = vmul.f32 %v4407_v15, %v4407_v15  ;;  %v193_v54 = vmul.f32 %v4412_v16, %v4412_v16 }
  0x10   :  { %85 = vst.msk [vmem:[#allocation2 + $0xb0] sm:$0xff] %vm62_vm1, %v6628_v6  ;;  %86 = vst.msk [vmem:[#allocation2 + $0xb8] sm:$0xff] %vm62_vm1, %v6628_v6  ;;  %v4448_v27 = vld [vmem:[%s6702_s20 + $0x58] sm:$0xff]  ;;  %v4464_v33 = vld [vmem:[%s6702_s20 + $0x68] sm:$0xff]  ;;  %v158_v36 = vsel %vm62_vm1, %v4443_v26, 0.0  ;;  %v168_v37 = vadd.f32 %v167_v31, %v166_v30  ;;  %v173_v39 = vsel %vm62_vm1, %v4453_v28, 0.0  ;;  %3880 = vmatpush3.bf16.msra.mxu0 %v3879_v13  ;;  %v151_v40 = vadd.f32 %v150_v19, %v149_v29 }
  0x11   :  { %v4469_v34 = vld [vmem:[%s6702_s20 + $0x70] sm:$0xff]  ;;  %v4474_v35 = vld [vmem:[%s6702_s20 + $0x78] sm:$0xff]  ;;  %v171_v38 = vsel %vm62_vm1, %v4448_v27, 0.0  ;;  %v175_v41 = vsel %vm62_vm1, %v4464_v33, 0.0  ;;  %v195_v55 = vmul.f32 %v4422_v20, %v4422_v20  ;;  %v196_v56 = vmul.f32 %v4427_v21, %v4427_v21 }
  0x12   :  { %v177_v42 = vsel %vm62_vm1, %v4469_v34, 0.0  ;;  %v179_v43 = vsel %vm62_vm1, %v4474_v35, 0.0  ;;  %v170_v44 = vadd.f32 %v169_v32, %v168_v37  ;;  %v153_v47 = vadd.f32 %v152_v23, %v151_v40 }
  0x13   :  { %v197_v58 = vmul.f32 %v4432_v22, %v4432_v22  ;;  %v203_v59 = vsel %vm62_vm1, %v187_v45, 0.0  ;;  %v204_v60 = vsel %vm62_vm1, %v188_v46, 0.0  ;;  %v194_v62 = vmul.f32 %v4443_v26, %v4443_v26 }
  0x14   :  { %v172_v49 = vadd.f32 %v171_v38, %v170_v44  ;;  %v155_v53 = vadd.f32 %v154_v24, %v153_v47  ;;  %v205_v63 = vadd.f32 %v204_v60, %v203_v59  ;;  %v206_v0 = vsel %vm62_vm1, %v189_v48, 0.0  ;;  %v337_v47 = vld [vmem:[%s6608_s2 + $0x18] sm:$0xff] }
  0x15   :  { %v198_v2 = vmul.f32 %v4448_v27, %v4448_v27  ;;  %v199_v4 = vmul.f32 %v4453_v28, %v4453_v28  ;;  %v208_v5 = vsel %vm62_vm1, %v190_v50, 0.0  ;;  %v200_v12 = vmul.f32 %v4464_v33, %v4464_v33 }
  0x16   :  { %v174_v57 = vadd.f32 %v173_v39, %v172_v49  ;;  %v157_v61 = vadd.f32 %v156_v25, %v155_v53  ;;  %v207_v13 = vadd.f32 %v206_v0, %v205_v63  ;;  %v224_v17 = vsel %vm62_vm1, %v195_v55, 0.0  ;;  %v334_v25 = vld [vmem:[%s6608_s2] sm:$0xff] }
  0x17   :  { %v210_v19 = vsel %vm62_vm1, %v191_v51, 0.0  ;;  %v225_v23 = vsel %vm62_vm1, %v196_v56, 0.0  ;;  %v227_v24 = vsel %vm62_vm1, %v197_v58, 0.0  ;;  %v201_v30 = vmul.f32 %v4469_v34, %v4469_v34 }
  0x18   :  { %v176_v1 = vadd.f32 %v175_v41, %v174_v57  ;;  %v159_v11 = vadd.f32 %v158_v36, %v157_v61  ;;  %v209_v31 = vadd.f32 %v208_v5, %v207_v13  ;;  %v226_v32 = vadd.f32 %v225_v23, %v224_v17  ;;  %v335_v36 = vld [vmem:[%s6608_s2 + $0x8] sm:$0xff]  ;;  %v336_v41 = vld [vmem:[%s6608_s2 + $0x10] sm:$0xff] }
  0x19   :  { %v212_v38 = vsel %vm62_vm1, %v192_v52, 0.0  ;;  %v214_v39 = vsel %vm62_vm1, %v193_v54, 0.0  ;;  %v229_v40 = vsel %vm62_vm1, %v198_v2, 0.0  ;;  %v216_v45 = vsel %vm62_vm1, %v194_v62, 0.0 }
  0x1a   :  { %v178_v18 = vadd.f32 %v177_v42, %v176_v1  ;;  %v160_v29 = vrot.slane %v159_v11, 4  ;;  %v211_v44 = vadd.f32 %v210_v19, %v209_v31  ;;  %v228_v46 = vadd.f32 %v227_v24, %v226_v32 }
  0x1b   :  { %v202_v48 = vmul.f32 %v4474_v35, %v4474_v35  ;;  %v231_v49 = vsel %vm62_vm1, %v199_v4, 0.0  ;;  %v3882_v50 = vpack.c.bf16 %v335_v36, %v334_v25  ;;  %v233_v54 = vsel %vm62_vm1, %v200_v12, 0.0 }
  0x1c   :  { %v180_v37 = vadd.f32 %v179_v43, %v178_v18  ;;  %v161_v42 = vadd.f32 %v160_v29, %v159_v11  ;;  %v213_v52 = vadd.f32 %v212_v38, %v211_v44  ;;  %v230_v53 = vadd.f32 %v229_v40, %v228_v46 }
  0x1d   :  { %3883 = vmatpush3.bf16.msra.mxu1 %v3882_v50  ;;  %v3885_v56 = vpack.c.bf16 %v337_v47, %v336_v41  ;;  %v235_v61 = vsel %vm62_vm1, %v201_v30, 0.0  ;;  %v237_v0 = vsel %vm62_vm1, %v202_v48, 0.0 }
  0x1e   :  { %v181_v43 = vrot.slane %v180_v37, 4  ;;  %v162_v51 = vrot.slane %v161_v42, 2  ;;  %v215_v57 = vadd.f32 %v214_v39, %v213_v52  ;;  %v232_v58 = vadd.f32 %v231_v49, %v230_v53  ;;  %3884 = vmatprep.subr.bf16.mxu1 %v6626_v3 }
  0x20   :  { %v182_v55 = vadd.f32 %v181_v43, %v180_v37  ;;  %v163_v59 = vadd.f32 %v162_v51, %v161_v42  ;;  %v217_v62 = vadd.f32 %v216_v45, %v215_v57  ;;  %v234_v63 = vadd.f32 %v233_v54, %v232_v58 }
  0x21   :  { %3886 = vmatpush3.bf16.msra.mxu1 %v3885_v56 }
  0x22   :  { %v183_v60 = vrot.slane %v182_v55, 2  ;;  %v218_v2 = vrot.slane %v217_v62, 4  ;;  %v236_v4 = vadd.f32 %v235_v61, %v234_v63  ;;  %v164_v5 = vrot.slane %v163_v59, 1 }
  0x24   :  { %v184_v1 = vadd.f32 %v183_v60, %v182_v55  ;;  %v219_v12 = vadd.f32 %v218_v2, %v217_v62  ;;  %v238_v13 = vadd.f32 %v237_v0, %v236_v4  ;;  %v165_v29 = vadd.f32 %v164_v5, %v163_v59 }
  0x26   :  { %v185_v11 = vrot.slane %v184_v1, 1  ;;  %v220_v17 = vrot.slane %v219_v12, 2  ;;  %v239_v18 = vrot.slane %v238_v13, 4 }
  0x28   :  { %v221_v19 = vadd.f32 %v220_v17, %v219_v12  ;;  %v240_v23 = vadd.f32 %v239_v18, %v238_v13  ;;  %v186_v30 = vadd.f32 %v185_v11, %v184_v1 }
  0x2a   :  { %v222_v24 = vrot.slane %v221_v19, 1  ;;  %v241_v25 = vrot.slane %v240_v23, 2  ;;  %v248_v38 = vsel %vm247_vm2, %v186_v30, %v165_v29 }
  0x2c   :  { %v242_v31 = vadd.f32 %v241_v25, %v240_v23  ;;  %v223_v32 = vadd.f32 %v222_v24, %v221_v19 }
  0x2e   :  { %v243_v36 = vrot.slane %v242_v31, 1 }
  0x30   :  { %v244_v37 = vadd.f32 %v243_v36, %v242_v31 }
  0x32   :  { %v253_v39 = vsel %vm252_vm3, %v244_v37, %v223_v32 }
  0x33   :  { %v256_v40 = vsel %vm255_vm4, %v248_v38, %v253_v39 }
  0x34   :  { %3768 = vmatmul.mubr.msk.f32.vlgmr.msra.gmra.mrb[0].mxu0 %vm62_vm1, %v256_v40 }
  0x35   :  { %22 = vsyncpa [#allocation5], 0  ;;  %v120_v41 = vld [vmem:[%s6622_s16] sm:$0xff]  ;;  %v4205_v44 = vmov 0   ;;  %v121_v45 = vld [vmem:[%s6622_s16 + $0x8] sm:$0xff]  ;;  %vm87_vm5 = vcmask 523264   ;;  %v442_v13 = vlaneseq }
  0x36   :  { %v112_v42 = vld [vmem:[%s6621_s15] sm:$0xff]  ;;  %3973 = vset.pattern.permute.xlu1 %v4205_v44  ;;  %3972 = vset.pattern.permute.xlu0 %v4205_v44  ;;  %v113_v46 = vld [vmem:[%s6621_s15 + $0x8] sm:$0xff]  ;;  %v122_v47 = vld [vmem:[%s6622_s16 + $0x10] sm:$0xff]  ;;  %88 = vst.msk [vmem:[#allocation3] sm:$0xff] %vm87_vm5, %v6628_v6  ;;  %v4206_v11 = vmov 1966171168  }
  0x37   :  { %749 = vperm.xlu0 %3972, %v120_v41   ;;  %677 = vperm.xlu1 %3973, %v112_v42   ;;  %v123_v43 = vld [vmem:[%s6622_s16 + $0x18] sm:$0xff]  ;;  %v114_v48 = vld [vmem:[%s6621_s15 + $0x10] sm:$0xff]  ;;  %v124_v50 = vld [vmem:[%s6622_s16 + $0x20] sm:$0xff]  ;;  %89 = vst.msk [vmem:[#allocation3 + $0x8] sm:$0xff] %vm87_vm5, %v6628_v6  ;;  %v440_v12 = vunpack.c.l.s4 %v4206_v11  ;;  %v443_v18 = vshrl.u32 %v442_v13, 7  ;;  %s4207_s30 = smov 32  }
  0x38   :  { %v115_v49 = vld [vmem:[%s6621_s15 + $0x18] sm:$0xff]  ;;  %v125_v51 = vld [vmem:[%s6622_s16 + $0x28] sm:$0xff]  ;;  %v116_v52 = vld [vmem:[%s6621_s15 + $0x20] sm:$0xff]  ;;  %90 = vst.msk [vmem:[#allocation3 + $0x10] sm:$0xff] %vm87_vm5, %v6628_v6  ;;  %s4208_s28 = smov 96   ;;  %vm975_vm6 = vcmask 785408  }
  0x39   :  { %v117_v53 = vld [vmem:[%s6621_s15 + $0x28] sm:$0xff]  ;;  %v126_v54 = vld [vmem:[%s6622_s16 + $0x30] sm:$0xff]  ;;  %v127_v55 = vld [vmem:[%s6622_s16 + $0x38] sm:$0xff]  ;;  %91 = vst.msk [vmem:[#allocation3 + $0x18] sm:$0xff] %vm87_vm5, %v6628_v6  ;;  %v441_v17 = vunpack.c.0.s8 %v440_v12  ;;  %v4668_v41 = vsub.s32 0, %v443_v18 }
  0x3a   :  { %v118_v56 = vld [vmem:[%s6621_s15 + $0x30] sm:$0xff]  ;;  %v119_v57 = vld [vmem:[%s6621_s15 + $0x38] sm:$0xff]  ;;  %v3974_v60 = vld [vmem:[%s6611_s5 + $0x80] sm:$0xff]   ;;  %92 = vst.msk [vmem:[#allocation3 + $0x20] sm:$0xff] %vm87_vm5, %v6628_v6 }
  0x3b   :  { %754 = vperm.xlu0 %3972, %v121_v45   ;;  %682 = vperm.xlu1 %3973, %v113_v46   ;;  %v3975_v61 = vld [vmem:[%s6611_s5 + $0x88] sm:$0xff]   ;;  %93 = vst.msk [vmem:[#allocation3 + $0x28] sm:$0xff] %vm87_vm5, %v6628_v6  ;;  %94 = vst.msk [vmem:[#allocation3 + $0x30] sm:$0xff] %vm87_vm5, %v6628_v6  ;;  %v3390_v19 = vld [vmem:[%s6609_s3] ss:$0 sm:$0xff]  ;;  %v4660_v23 = vsub.s32 %v441_v17, %v443_v18 }
  0x3c   :  { %3781 = vmatprep.subr.bf16.mxu1 %v3974_v60  ;;  %95 = vst.msk [vmem:[#allocation3 + $0x38] sm:$0xff] %vm87_vm5, %v6628_v6  ;;  %96 = vst.msk [vmem:[#allocation3 + $0x40] sm:$0xff] %vm87_vm5, %v6628_v6  ;;  %v3391_v31 = vld [vmem:[%s6610_s4] ss:$0 sm:$0xff] }
  0x3d   :  { %97 = vst.msk [vmem:[#allocation3 + $0x48] sm:$0xff] %vm87_vm5, %v6628_v6  ;;  %98 = vst.msk [vmem:[#allocation3 + $0x50] sm:$0xff] %vm87_vm5, %v6628_v6 }
  0x3e   :  { %99 = vst.msk [vmem:[#allocation3 + $0x58] sm:$0xff] %vm87_vm5, %v6628_v6  ;;  %100 = vst.msk [vmem:[#allocation3 + $0x60] sm:$0xff] %vm87_vm5, %v6628_v6 }
  0x3f   :  { %759 = vperm.xlu0 %3972, %v122_v47   ;;  %764 = vperm.xlu1 %3973, %v123_v43   ;;  %101 = vst.msk [vmem:[#allocation3 + $0x68] sm:$0xff] %vm87_vm5, %v6628_v6  ;;  %102 = vst.msk [vmem:[#allocation3 + $0x70] sm:$0xff] %vm87_vm5, %v6628_v6 }
  0x40   :  { %103 = vst.msk [vmem:[#allocation3 + $0x78] sm:$0xff] %vm87_vm5, %v6628_v6  ;;  %104 = vst.msk [vmem:[#allocation3 + $0x80] sm:$0xff] %vm87_vm5, %v6628_v6 }
  0x41   :  { %105 = vst.msk [vmem:[#allocation3 + $0x88] sm:$0xff] %vm87_vm5, %v6628_v6  ;;  %106 = vst.msk [vmem:[#allocation3 + $0x90] sm:$0xff] %vm87_vm5, %v6628_v6 }
  0x42   :  { %107 = vst.msk [vmem:[#allocation3 + $0x98] sm:$0xff] %vm87_vm5, %v6628_v6  ;;  %108 = vst.msk [vmem:[#allocation3 + $0xa0] sm:$0xff] %vm87_vm5, %v6628_v6 }
  0x43   :  { %687 = vperm.xlu0 %3972, %v114_v48   ;;  %692 = vperm.xlu1 %3973, %v115_v49   ;;  %109 = vst.msk [vmem:[#allocation3 + $0xa8] sm:$0xff] %vm87_vm5, %v6628_v6  ;;  %110 = vst.msk [vmem:[#allocation3 + $0xb0] sm:$0xff] %vm87_vm5, %v6628_v6 }
  0x44   :  { %111 = vst.msk [vmem:[#allocation3 + $0xb8] sm:$0xff] %vm87_vm5, %v6628_v6  ;;  %6703 = vst [vmem:[#allocation7_spill] sm:$0xff] %v4660_v23 }
  0x45   :  { %6704 = vst [vmem:[#allocation8_spill] sm:$0xff] %v4668_v41 }
  0x47   :  { %769 = vperm.xlu0 %3972, %v124_v50   ;;  %774 = vperm.xlu1 %3973, %v125_v51  }
  0x4b   :  { %697 = vperm.xlu0 %3972, %v116_v52   ;;  %702 = vperm.xlu1 %3973, %v117_v53  }
  0x4f   :  { %779 = vperm.xlu0 %3972, %v126_v54   ;;  %784 = vperm.xlu1 %3973, %v127_v55  }
  0x53   :  { %707 = vperm.xlu0 %3972, %v118_v56   ;;  %712 = vperm.xlu1 %3973, %v119_v57  }
 0x107   :  { %v330_v58 = vpop.f32.mrb[0].mxu0 }
 0x108   :  { %v3769_v59 = vpop.f32.mrb[1].mxu0  ;;  %3779 = vmatmul.mubr.msk.f32.vlgmr.msra.gmra.mrb[0].mxu1 %vm62_vm1, %v330_v58 }
 0x109   :  { %3782 = vmatpush3.bf16.msra.mxu1 %v3974_v60 }
 0x10a   :  { %3783 = vmatprep.subr.bf16.mxu1 %v3975_v61 }
 0x10d   :  { %3784 = vmatpush3.bf16.msra.mxu1 %v3975_v61 }
 0x10e   :  { %3887 = vmatprep.subr.bf16.mxu1 %v6626_v3 }
 0x1db   :  { %v407_v62 = vpop.f32.mrb[0].mxu1 }
 0x1dc   :  { %v411_v63 = vmul.f32 %v407_v62, %v407_v62  ;;  %v3780_v0 = vpop.f32.mrb[1].mxu1 }
 0x1de   :  { %v413_v1 = vrot.slane %v411_v63, 6 }
 0x1e0   :  { %v415_v2 = vsub.f32 %v407_v62, %v413_v1 }
 0x1e2   :  { %v416_v4 = vmax.f32 %v415_v2, 0.0 }
 0x1e4   :  { %v417_v5 = vadd.f32 1e-05, %v416_v4 }
 0x1e6   :  { %4030 = vrsqrt.f32 %v417_v5 }
 0x1f0   :  { %v4031_v24 = vpop.eup %4030 }
 0x1f1   :  { %v426_v25 = vmul.f32 %v4031_v24, %v3390_v19 }
 0x1f3   :  { %v429_v29 = vrot.slane %v426_v25, 2  ;;  %v445_v30 = vrot.slane %v426_v25, %v4660_v23 }
 0x1f5   :  { %v431_v32 = vmul.f32 %v429_v29, %v407_v62  ;;  %v446_v36 = vcombine.high %v445_v30, %v445_v30  ;;  %v453_v37 = vrot.slane %v445_v30, %v4660_v23 }
 0x1f7   :  { %v438_v38 = vsub.f32 %v3391_v31, %v431_v32  ;;  %v460_v39 = vrot.slane %v446_v36, %v4660_v23  ;;  %v461_v40 = vcombine.high %v453_v37, %v453_v37 }
 0x1f9   :  { %v496_v42 = vrot.slane %v438_v38, %v4660_v23  ;;  %v462_v44 = vcombine.high %v460_v39, %v460_v39  ;;  %v4672_v45 = vrot.slane %v461_v40, %v4668_v41 }
 0x1fb   :  { %v497_v46 = vcombine.high %v496_v42, %v496_v42  ;;  %v504_v47 = vrot.slane %v496_v42, %v4660_v23  ;;  %v4676_v43 = vrot.slane %v462_v44, %v4668_v41  ;;  %v473_v48 = vmul.f32 %v4672_v45, %v4325_v7 }
 0x1fc   :  { %v476_v50 = vmul.f32 %v4672_v45, %v4340_v10  ;;  %v477_v51 = vmul.f32 %v4672_v45, %v4402_v14  ;;  %v478_v52 = vmul.f32 %v4672_v45, %v4407_v15  ;;  %v479_v54 = vmul.f32 %v4672_v45, %v4412_v16 }
 0x1fd   :  { %v511_v49 = vrot.slane %v497_v46, %v4660_v23  ;;  %v4688_v53 = vrot.slane %v504_v47, %v4668_v41  ;;  %v480_v7 = vmul.f32 %v4672_v45, %v4443_v26  ;;  %v482_v16 = vmul.f32 %v4676_v43, %v4427_v21 }
 0x1fe   :  { %v483_v57 = vmul.f32 %v4676_v43, %v4432_v22  ;;  %v484_v58 = vmul.f32 %v4676_v43, %v4448_v27  ;;  %v485_v63 = vmul.f32 %v4676_v43, %v4453_v28  ;;  %v486_v0 = vmul.f32 %v4676_v43, %v4464_v33 }
 0x1ff   :  { %v4695_v55 = vrot.slane %v511_v49, %v4668_v41  ;;  %v4698_v10 = vadd.f32 %v4688_v53, %v473_v48  ;;  %v4701_v14 = vadd.f32 %v4688_v53, %v476_v50  ;;  %v4704_v15 = vadd.f32 %v4688_v53, %v477_v51  ;;  %v3990_v41 = vld [vmem:[%s6611_s5 + $0x78] sm:$0xff]  }
 0x200   :  { %v4707_v56 = vadd.f32 %v4688_v53, %v478_v52  ;;  %v4712_v26 = vadd.f32 %v4688_v53, %v479_v54  ;;  %v4719_v59 = vadd.f32 %v4688_v53, %v480_v7  ;;  %v487_v4 = vmul.f32 %v4676_v43, %v4469_v34 }
 0x201   :  { %v4722_v60 = vadd.f32 %v4695_v55, %v482_v16  ;;  %v3392_v61 = vmul.f32 -1.442695, %v4698_v10  ;;  %v3395_v62 = vmul.f32 -1.442695, %v4701_v14  ;;  %v3396_v21 = vmul.f32 -1.442695, %v4704_v15 }
 0x202   :  { %v4730_v22 = vadd.f32 %v4695_v55, %v483_v57  ;;  %v3397_v27 = vmul.f32 -1.442695, %v4707_v56  ;;  %v4736_v1 = vadd.f32 %v4695_v55, %v484_v58  ;;  %v3398_v2 = vmul.f32 -1.442695, %v4712_v26 }
 0x203   :  { %4032 = vpow2.f32 %v3392_v61  ;;  %v4742_v5 = vadd.f32 %v4695_v55, %v485_v63  ;;  %v3399_v28 = vmul.f32 -1.442695, %v4719_v59  ;;  %v488_v11 = vmul.f32 %v4676_v43, %v4474_v35 }
 0x204   :  { %4034 = vpow2.f32 %v3395_v62  ;;  %v4748_v33 = vadd.f32 %v4695_v55, %v486_v0  ;;  %v3401_v12 = vmul.f32 -1.442695, %v4722_v60  ;;  %v4752_v13 = vadd.f32 %v4695_v55, %v487_v4 }
 0x205   :  { %4036 = vpow2.f32 %v3396_v21  ;;  %v3402_v34 = vmul.f32 -1.442695, %v4730_v22  ;;  %v4756_v17 = vadd.f32 %v4695_v55, %v488_v11  ;;  %v3403_v18 = vmul.f32 -1.442695, %v4736_v1 }
 0x206   :  { %4038 = vpow2.f32 %v3397_v27  ;;  %v3404_v35 = vmul.f32 -1.442695, %v4742_v5  ;;  %v3405_v19 = vmul.f32 -1.442695, %v4748_v33  ;;  %v3406_v24 = vmul.f32 -1.442695, %v4752_v13 }
 0x207   :  { %4040 = vpow2.f32 %v3398_v2  ;;  %v3407_v25 = vmul.f32 -1.442695, %v4756_v17  ;;  %v474_v48 = vmul.f32 %v4672_v45, %v4330_v8  ;;  %v475_v51 = vmul.f32 %v4672_v45, %v4335_v9 }
 0x208   :  { %4042 = vpow2.f32 %v3399_v28 }
 0x209   :  { %4044 = vpow2.f32 %v3401_v12  ;;  %v4768_v7 = vadd.f32 %v4688_v53, %v474_v48  ;;  %v4771_v58 = vadd.f32 %v4688_v53, %v475_v51  ;;  %v4777_v12 = vpop.permute.xlu0 %749 }
 0x20a   :  { %4046 = vpow2.f32 %v3402_v34  ;;  %v4779_v34 = vpop.permute.xlu1 %677 }
 0x20b   :  { %4048 = vpow2.f32 %v3403_v18  ;;  %v3393_v45 = vmul.f32 -1.442695, %v4768_v7  ;;  %v3394_v2 = vmul.f32 -1.442695, %v4771_v58 }
 0x20c   :  { %4050 = vpow2.f32 %v3404_v35 }
 0x20d   :  { %v4033_v29 = vpop.eup %4032  ;;  %4052 = vpow2.f32 %v3405_v19  ;;  %v481_v19 = vmul.f32 %v4676_v43, %v4422_v20 }
 0x20e   :  { %v4035_v30 = vpop.eup %4034  ;;  %4054 = vpow2.f32 %v3406_v24  ;;  %v586_v31 = vadd.f32 1.0, %v4033_v29 }
 0x20f   :  { %v4037_v32 = vpop.eup %4036  ;;  %4056 = vpow2.f32 %v3407_v25  ;;  %v589_v36 = vadd.f32 1.0, %v4035_v30  ;;  %v3978_v25 = vld [vmem:[%s6611_s5 + $0x48] sm:$0xff]   ;;  %v4799_v43 = vadd.f32 %v4695_v55, %v481_v19  ;;  %v3982_v19 = vld [vmem:[%s6611_s5 + $0x58] sm:$0xff]  }
 0x210   :  { %v4039_v37 = vpop.eup %4038  ;;  %v590_v38 = vadd.f32 1.0, %v4037_v32  ;;  %4058 = vrcp.f32 %v586_v31 }
 0x211   :  { %v4041_v39 = vpop.eup %4040  ;;  %v591_v40 = vadd.f32 1.0, %v4039_v37  ;;  %4060 = vrcp.f32 %v589_v36  ;;  %v4810_v37 = vpop.permute.xlu0 %754 }
 0x212   :  { %v4043_v42 = vpop.eup %4042  ;;  %v592_v44 = vadd.f32 1.0, %v4041_v39  ;;  %4062 = vrcp.f32 %v590_v38  ;;  %v727_v38 = vld [vmem:[#allocation2 + $0x8] sm:$0xff] }
 0x213   :  { %v4045_v46 = vpop.eup %4044  ;;  %v593_v47 = vadd.f32 1.0, %v4043_v42  ;;  %4064 = vrcp.f32 %v591_v40  ;;  %v3400_v42 = vmul.f32 -1.442695, %v4799_v43 }
 0x214   :  { %v4047_v49 = vpop.eup %4046  ;;  %v595_v50 = vadd.f32 1.0, %v4045_v46  ;;  %4066 = vrcp.f32 %v592_v44 }
 0x215   :  { %v4049_v52 = vpop.eup %4048  ;;  %v596_v54 = vadd.f32 1.0, %v4047_v49  ;;  %4068 = vrcp.f32 %v593_v47 }
 0x216   :  { %v4051_v16 = vpop.eup %4050  ;;  %v597_v57 = vadd.f32 1.0, %v4049_v52  ;;  %4070 = vrcp.f32 %v595_v50 }
 0x217   :  { %v4053_v61 = vpop.eup %4052  ;;  %v598_v8 = vadd.f32 1.0, %v4051_v16  ;;  %4072 = vrcp.f32 %v596_v54 }
 0x218   :  { %v4055_v62 = vpop.eup %4054  ;;  %v599_v21 = vadd.f32 1.0, %v4053_v61  ;;  %4074 = vrcp.f32 %v597_v57 }
 0x219   :  { %v4057_v63 = vpop.eup %4056  ;;  %v600_v9 = vadd.f32 1.0, %v4055_v62  ;;  %4076 = vrcp.f32 %v598_v8 }
 0x21a   :  { %v4059_v27 = vpop.eup %4058  ;;  %v601_v0 = vadd.f32 1.0, %v4057_v63  ;;  %4078 = vrcp.f32 %v599_v21  ;;  %v3988_v21 = vld [vmem:[%s6611_s5 + $0x70] sm:$0xff]  }
 0x21b   :  { %v4061_v4 = vpop.eup %4060  ;;  %4080 = vrcp.f32 %v600_v9  ;;  %v634_v53 = vmul.f32 %v4059_v27, %v4698_v10 }
 0x21c   :  { %v4063_v28 = vpop.eup %4062  ;;  %4082 = vrcp.f32 %v601_v0  ;;  %v637_v11 = vmul.f32 %v4061_v4, %v4701_v14  ;;  %v3976_v14 = vld [vmem:[%s6611_s5 + $0x40] sm:$0xff]  }
 0x21d   :  { %v4065_v18 = vpop.eup %4064  ;;  %v638_v35 = vmul.f32 %v4063_v28, %v4704_v15  ;;  %4084 = vpow2.f32 %v3393_v45  ;;  %650 = vst.msk [vmem:[#allocation2 + $0x10] sm:$0xff] %vm62_vm1, %v634_v53  ;;  %v3977_v15 = vld [vmem:[%s6611_s5] sm:$0xff]   ;;  %3521 = vmatprep.subr.bf16.mxu0 %v3976_v14 }
 0x21e   :  { %v4067_v24 = vpop.eup %4066  ;;  %v639_v10 = vmul.f32 %v4065_v18, %v4707_v56  ;;  %653 = vst.msk [vmem:[#allocation2 + $0x28] sm:$0xff] %vm62_vm1, %v637_v11  ;;  %4086 = vpow2.f32 %v3394_v2  ;;  %3522 = vmatpush3.bf16.msra.mxu0 %v3977_v15 }
 0x21f   :  { %v4069_v29 = vpop.eup %4068  ;;  %v640_v20 = vmul.f32 %v4067_v24, %v4712_v26  ;;  %654 = vst.msk [vmem:[#allocation2 + $0x30] sm:$0xff] %vm62_vm1, %v638_v35  ;;  %v3979_v26 = vld [vmem:[%s6611_s5 + $0x8] sm:$0xff]   ;;  %3523 = vmatprep.subr.bf16.mxu0 %v3978_v25  ;;  %4088 = vpow2.f32 %v3400_v42  ;;  %v3981_v35 = vld [vmem:[%s6611_s5 + $0x10] sm:$0xff]  }
 0x220   :  { %v4071_v56 = vpop.eup %4070  ;;  %v641_v30 = vmul.f32 %v4069_v29, %v4719_v59  ;;  %655 = vst.msk [vmem:[#allocation2 + $0x38] sm:$0xff] %vm62_vm1, %v639_v10  ;;  %v4812_v59 = vpop.permute.xlu1 %682  ;;  %v3983_v29 = vld [vmem:[%s6611_s5 + $0x18] sm:$0xff]  }
 0x221   :  { %v4073_v31 = vpop.eup %4072  ;;  %v643_v32 = vmul.f32 %v4071_v56, %v4722_v60  ;;  %656 = vst.msk [vmem:[#allocation2 + $0x40] sm:$0xff] %vm62_vm1, %v640_v20  ;;  %v3980_v60 = vld [vmem:[%s6611_s5 + $0x50] sm:$0xff]  }
 0x222   :  { %v4075_v36 = vpop.eup %4074  ;;  %v644_v55 = vmul.f32 %v4073_v31, %v4730_v22  ;;  %657 = vst.msk [vmem:[#allocation2 + $0x48] sm:$0xff] %vm62_vm1, %v641_v30  ;;  %3524 = vmatpush3.bf16.msra.mxu0 %v3979_v26  ;;  %v3985_v26 = vld [vmem:[%s6611_s5 + $0x20] sm:$0xff]  }
 0x223   :  { %v4077_v39 = vpop.eup %4076  ;;  %v645_v40 = vmul.f32 %v4075_v36, %v4736_v1  ;;  %660 = vst.msk [vmem:[#allocation2 + $0x78] sm:$0xff] %vm62_vm1, %v643_v32  ;;  %3525 = vmatprep.subr.bf16.mxu0 %v3980_v60  ;;  %v3986_v36 = vld [vmem:[%s6611_s5 + $0x68] sm:$0xff]  }
 0x224   :  { %v4079_v22 = vpop.eup %4078  ;;  %v646_v44 = vmul.f32 %v4077_v39, %v4742_v5  ;;  %661 = vst.msk [vmem:[#allocation2 + $0x80] sm:$0xff] %vm62_vm1, %v644_v55  ;;  %v4822_v46 = vld [vmem:[#allocation2 + $0x10] sm:$0xff]  ;;  %v4839_v16 = vpop.permute.xlu1 %764 }
 0x225   :  { %6705 = vst [vmem:[#allocation9_spill] sm:$0xff] %v4822_v46  ;;  %v4081_v47 = vpop.eup %4080  ;;  %v647_v48 = vmul.f32 %v4079_v22, %v4748_v33  ;;  %662 = vst.msk [vmem:[#allocation2 + $0x88] sm:$0xff] %vm62_vm1, %v645_v40  ;;  %v735_v49 = vpack.c.bf16 %v4822_v46, %v727_v38  ;;  %v4908_v60 = vld [vmem:[#allocation2 + $0x28] sm:$0xff] }
 0x226   :  { %v4083_v1 = vpop.eup %4082  ;;  %v648_v50 = vmul.f32 %v4081_v47, %v4752_v13  ;;  %663 = vst.msk [vmem:[#allocation2 + $0x90] sm:$0xff] %vm62_vm1, %v646_v44  ;;  %v4829_v51 = vld [vmem:[#allocation2 + $0x30] sm:$0xff]  ;;  %v4837_v13 = vpop.permute.xlu0 %759  ;;  %3526 = vmatpush3.bf16.msra.mxu0 %v3981_v35  ;;  %6710 = vst [vmem:[#allocation14_spill] sm:$0xff] %v4908_v60 }
 0x227   :  { %6706 = vst [vmem:[#allocation10_spill] sm:$0xff] %v4829_v51  ;;  %v4085_v5 = vpop.eup %4084  ;;  %v649_v52 = vmul.f32 %v4083_v1, %v4756_v17  ;;  %664 = vst.msk [vmem:[#allocation2 + $0x98] sm:$0xff] %vm62_vm1, %v647_v48  ;;  %886 = vrot.lane.b32.xlu1 %v735_v49, %s4207_s30  ;;  %v4834_v33 = vld [vmem:[#allocation2 + $0x38] sm:$0xff]  ;;  %3527 = vmatprep.subr.bf16.mxu0 %v3982_v19  ;;  %v4890_v56 = vld [vmem:[#allocation2 + $0x29] sm:$0xff] }
 0x228   :  { %6707 = vst [vmem:[#allocation11_spill] sm:$0xff] %v4834_v33  ;;  %v4087_v54 = vpop.eup %4086  ;;  %665 = vst.msk [vmem:[#allocation2 + $0xa0] sm:$0xff] %vm62_vm1, %v648_v50  ;;  %v587_v57 = vadd.f32 1.0, %v4085_v5  ;;  %v4841_v61 = vld [vmem:[#allocation2 + $0x40] sm:$0xff]  ;;  %v4852_v9 = vpop.permute.xlu1 %692  ;;  %v4892_v30 = vld [vmem:[#allocation2 + $0x31] sm:$0xff]  ;;  %v872_v55 = vmul.f32 %v4890_v56, %v4837_v13 }
 0x229   :  { %6708 = vst [vmem:[#allocation12_spill] sm:$0xff] %v4841_v61  ;;  %666 = vst.msk [vmem:[#allocation2 + $0xa8] sm:$0xff] %vm62_vm1, %v649_v52  ;;  %v588_v8 = vadd.f32 1.0, %v4087_v54  ;;  %v4846_v62 = vld [vmem:[#allocation2 + $0x48] sm:$0xff]  ;;  %v4089_v45 = vpop.eup %4088  ;;  %v4894_v31 = vld [vmem:[#allocation2 + $0x39] sm:$0xff]  ;;  %v873_v38 = vmul.f32 %v4892_v30, %v4839_v16 }
 0x22a   :  { %6709 = vst [vmem:[#allocation13_spill] sm:$0xff] %v4846_v62  ;;  %4090 = vrcp.f32 %v587_v57  ;;  %v4850_v63 = vpop.permute.xlu0 %687  ;;  %v594_v18 = vadd.f32 1.0, %v4089_v45  ;;  %3528 = vmatpush3.bf16.msra.mxu0 %v3983_v29  ;;  %v4896_v32 = vld [vmem:[#allocation2 + $0x41] sm:$0xff]  ;;  %v4949_v29 = vld [vmem:[#allocation2 + $0xf] sm:$0xff]  ;;  %v4972_v25 = vld [vmem:[#allocation2 + $0x37] sm:$0xff] }
 0x22b   :  { %4092 = vrcp.f32 %v588_v8  ;;  %v4854_v27 = vld [vmem:[#allocation2 + $0x80] sm:$0xff]  ;;  %v3987_v45 = vld [vmem:[%s6611_s5 + $0x28] sm:$0xff]   ;;  %6713 = vst [vmem:[#allocation17_spill] sm:$0xff] %v4949_v29  ;;  %v3989_v8 = vld [vmem:[%s6611_s5 + $0x30] sm:$0xff]  }
 0x22c   :  { %v4856_v0 = vld [vmem:[#allocation2 + $0x88] sm:$0xff]  ;;  %v4864_v11 = vpop.permute.xlu1 %774  ;;  %4094 = vrcp.f32 %v594_v18  ;;  %v869_v18 = vld [vmem:[#allocation2 + $0x51] sm:$0xff] }
 0x22d   :  { %v4858_v2 = vld [vmem:[#allocation2 + $0x90] sm:$0xff]  ;;  %v875_v1 = vmul.f32 %v4896_v32, %v4864_v11 }
 0x22e   :  { %v4860_v4 = vld [vmem:[#allocation2 + $0x98] sm:$0xff]  ;;  %v4862_v28 = vpop.permute.xlu0 %769  ;;  %v4970_v3 = vld [vmem:[#allocation2 + $0x2f] sm:$0xff] }
 0x22f   :  { %v4912_v40 = vld [vmem:[#allocation2 + $0x99] sm:$0xff]  ;;  %v874_v49 = vmul.f32 %v4894_v31, %v4862_v28  ;;  %v5025_v46 = vld [vmem:[#allocation2 + $0x8f] sm:$0xff] }
 0x230   :  { %v4914_v42 = vld [vmem:[#allocation2 + $0xa1] sm:$0xff] }
 0x231   :  { %v4974_v14 = vld [vmem:[#allocation2 + $0xa8] sm:$0xff] }
 0x232   :  { %v4886_v20 = vpop.permute.xlu0 %697  ;;  %6718 = vst [vmem:[#allocation22_spill] sm:$0xff] %v4974_v14 }
 0x234   :  { %v4091_v53 = vpop.eup %4090 }
 0x235   :  { %v4093_v24 = vpop.eup %4092  ;;  %v635_v10 = vmul.f32 %v4091_v53, %v4768_v7  ;;  %v3984_v7 = vld [vmem:[%s6611_s5 + $0x60] sm:$0xff]   ;;  %v879_v53 = vpack.c.bf16 %v873_v38, %v872_v55 }
 0x236   :  { %v636_v15 = vmul.f32 %v4093_v24, %v4771_v58  ;;  %v4888_v58 = vpop.permute.xlu1 %702  ;;  %3529 = vmatprep.subr.bf16.mxu0 %v3984_v7  ;;  %v4928_v50 = vpop.permute.xlu0 %779  ;;  %v4945_v24 = vld [vmem:[#allocation2 + $0x49] sm:$0xff]  ;;  %v4961_v55 = vld [vmem:[#allocation2 + $0x81] sm:$0xff] }
 0x237   :  { %651 = vst.msk [vmem:[#allocation2 + $0x18] sm:$0xff] %vm62_vm1, %v635_v10  ;;  %3530 = vmatpush3.bf16.msra.mxu0 %v3985_v26  ;;  %v4095_v35 = vpop.eup %4094  ;;  %v4947_v10 = vld [vmem:[#allocation2 + $0x50] sm:$0xff]  ;;  %v4953_v7 = vmul.f32 %v4912_v40, %v4928_v50  ;;  %6717 = vst [vmem:[#allocation21_spill] sm:$0xff] %v4961_v55  ;;  %v4963_v38 = vld [vmem:[#allocation2 + $0xa0] sm:$0xff] }
 0x238   :  { %652 = vst.msk [vmem:[#allocation2 + $0x20] sm:$0xff] %vm62_vm1, %v636_v15  ;;  %3531 = vmatprep.subr.bf16.mxu0 %v3986_v36  ;;  %v739_v15 = vld [vmem:[#allocation2 + $0x9] sm:$0xff]  ;;  %v4959_v36 = vld [vmem:[#allocation2 + $0x79] sm:$0xff]  ;;  %v642_v17 = vmul.f32 %v4095_v35, %v4799_v43 }
 0x239   :  { %6714 = vst [vmem:[#allocation18_spill] sm:$0xff] %v4953_v7  ;;  %6716 = vst [vmem:[#allocation20_spill] sm:$0xff] %v4959_v36  ;;  %v5004_v43 = vld [vmem:[#allocation2 + $0x3f] sm:$0xff]  ;;  %v1119_v23 = vmul.f32 %v4959_v36, %v4777_v12 }
 0x23a   :  { %v4930_v5 = vpop.permute.xlu1 %784  ;;  %v4992_v44 = vpop.permute.xlu0 %707  ;;  %659 = vst.msk [vmem:[#allocation2 + $0x70] sm:$0xff] %vm62_vm1, %v642_v17 }
 0x23b   :  { %v4957_v26 = vmul.f32 %v4914_v42, %v4930_v5  ;;  %3532 = vmatpush3.bf16.msra.mxu0 %v3987_v45  ;;  %v877_v45 = vmul.f32 %v869_v18, %v4930_v5 }
 0x23c   :  { %3533 = vmatprep.subr.bf16.mxu0 %v3988_v21  ;;  %v3991_v21 = vld [vmem:[%s6611_s5 + $0x38] sm:$0xff]   ;;  %s4209_s5 = smov 64  }
 0x23d   :  { %6715 = vst [vmem:[#allocation19_spill] sm:$0xff] %v4957_v26 }
 0x23e   :  { %v4910_v39 = vld [vmem:[#allocation2 + $0x18] sm:$0xff]  ;;  %v4994_v6 = vpop.permute.xlu1 %712 }
 0x23f   :  { %6711 = vst [vmem:[#allocation15_spill] sm:$0xff] %v4910_v39  ;;  %v4916_v22 = vld [vmem:[#allocation2 + $0x20] sm:$0xff]  ;;  %v831_v18 = vld [vmem:[#allocation2 + $0x11] sm:$0xff]  ;;  %3534 = vmatpush3.bf16.msra.mxu0 %v3989_v8 }
 0x240   :  { %6712 = vst [vmem:[#allocation16_spill] sm:$0xff] %v4916_v22  ;;  %v4920_v47 = vld [vmem:[#allocation2 + $0x19] sm:$0xff]  ;;  %v4922_v48 = vld [vmem:[#allocation2 + $0x21] sm:$0xff]  ;;  %v865_v52 = vpack.c.bf16 %v4916_v22, %v4910_v39  ;;  %v788_v35 = vmul.f32 %v831_v18, %v4810_v37  ;;  %v5050_v39 = vmul.f32 %v4972_v25, %v4992_v44  ;;  %3535 = vmatprep.subr.bf16.mxu0 %v3990_v41 }
 0x241   :  { %v870_v54 = vmul.f32 %v4920_v47, %v4777_v12  ;;  %v871_v57 = vmul.f32 %v4922_v48, %v4810_v37  ;;  %v5019_v22 = vld [vmem:[#allocation2 + $0x87] sm:$0xff]  ;;  %v839_v7 = vmul.f32 %v831_v18, %v4777_v12  ;;  %v5086_v8 = vld [vmem:[#allocation2 + $0x78] sm:$0xff] }
 0x242   :  { %946 = vrot.lane.b32.xlu0 %v865_v52, %s4208_s28  ;;  %888 = vrot.lane.b32.xlu1 %v865_v52, %s4207_s30  ;;  %v880_v52 = vpack.c.bf16 %v875_v1, %v874_v49  ;;  %v4982_v49 = vmul.f32 %v4777_v12, %v739_v15  ;;  %v4984_v1 = vld [vmem:[#allocation2 + $0x1f] sm:$0xff]  ;;  %v5002_v15 = vmul.f32 %v4949_v29, %v4779_v34 }
 0x243   :  { %v878_v19 = vpack.c.bf16 %v871_v57, %v870_v54  ;;  %v866_v54 = vpack.c.bf16 %v4829_v51, %v4908_v60  ;;  %v4968_v57 = vld [vmem:[#allocation2 + $0x17] sm:$0xff]  ;;  %v868_v51 = vpack.c.bf16 %v4947_v10, %v4846_v62  ;;  %v1120_v60 = vmul.f32 %v4961_v55, %v4810_v37  ;;  %v5042_v62 = vld [vmem:[#allocation2 + $0x9f] sm:$0xff]  ;;  %6723 = vst [vmem:[#allocation27_spill] sm:$0xff] %v5050_v39  ;;  %v5067_v55 = vld [vmem:[#allocation2 + $0x89] sm:$0xff] }
 0x244   :  { %v5035_v10 = vmul.f32 %v4984_v1, %v4852_v9  ;;  %v5054_v29 = vmul.f32 %v5004_v43, %v4994_v6  ;;  %v5064_v26 = vmul.f32 %v5019_v22, %v4886_v20  ;;  %v5092_v36 = vmul.f32 %v5042_v62, %v4994_v6  ;;  %3536 = vmatpush3.bf16.msra.mxu0 %v3991_v21 }
 0x245   :  { %3785 = vmatprep.mubr.msk.bf16.mxu1 %vm62_vm1, %v878_v19  ;;  %v4986_v19 = vld [vmem:[#allocation2 + $0x27] sm:$0xff]  ;;  %v795_v39 = vpack.c.bf16 %v788_v35, %v4982_v49  ;;  %v1121_v18 = vmul.f32 %v5067_v55, %v4837_v13  ;;  %v1123_v35 = vmul.f32 %v4912_v40, %v4862_v28 }
 0x246   :  { %3786 = vmatmul.mubr.msk.bf16.vlgmr.msra.gmra.mrb[4].mxu1 %vm62_vm1, %v879_v53  ;;  %948 = vrot.lane.b32.xlu0 %v866_v54, %s4208_s28  ;;  %v876_v53 = vmul.f32 %v4945_v24, %v4928_v50  ;;  %6720 = vst [vmem:[#allocation24_spill] sm:$0xff] %v5035_v10  ;;  %v5039_v17 = vmul.f32 %v4986_v19, %v4886_v20  ;;  %6724 = vst [vmem:[#allocation28_spill] sm:$0xff] %v5054_v29  ;;  %v5104_v29 = vld [vmem:[#allocation2 + $0x70] sm:$0xff] }
 0x247   :  { %3789 = vmatprep.mubr.msk.bf16.mxu1 %vm62_vm1, %v880_v52  ;;  %v867_v52 = vpack.c.bf16 %v4841_v61, %v4834_v33  ;;  %890 = vrot.lane.b32.xlu1 %v866_v54, %s4207_s30  ;;  %v5027_v61 = vld [vmem:[#allocation2 + $0x97] sm:$0xff]  ;;  %v5031_v54 = vmul.f32 %v4968_v57, %v4850_v63  ;;  %v5046_v33 = vmul.f32 %v4970_v3, %v4888_v58 }
 0x248   :  { %6721 = vst [vmem:[#allocation25_spill] sm:$0xff] %v5039_v17  ;;  %v881_v14 = vpack.c.bf16 %v877_v45, %v876_v53  ;;  %6725 = vst [vmem:[#allocation29_spill] sm:$0xff] %v5064_v26  ;;  %v5075_v45 = vmul.f32 %v5025_v46, %v4888_v58  ;;  %v5079_v41 = vmul.f32 %v5027_v61, %v4992_v44  ;;  %v5088_v17 = vld [vmem:[#allocation2 + $0x7f] sm:$0xff]  ;;  %v1118_v10 = vld [vmem:[#allocation2 + $0xb1] sm:$0xff] }
 0x249   :  { %6719 = vst [vmem:[#allocation23_spill] sm:$0xff] %v5031_v54  ;;  %6722 = vst [vmem:[#allocation26_spill] sm:$0xff] %v5046_v33  ;;  %v1127_v53 = vpack.c.bf16 %v1120_v60, %v1119_v23  ;;  %v5084_v54 = vld [vmem:[#allocation2 + $0x91] sm:$0xff]  ;;  %v808_v23 = vmul.f32 %v4968_v57, %v4812_v59  ;;  %v5119_v21 = vmul.f32 %v5088_v17, %v4852_v9 }
 0x24a   :  { %950 = vrot.lane.b32.xlu0 %v867_v52, %s4208_s28  ;;  %6726 = vst [vmem:[#allocation30_spill] sm:$0xff] %v5075_v45  ;;  %6727 = vst [vmem:[#allocation31_spill] sm:$0xff] %v5079_v41  ;;  %v5106_v33 = vld [vmem:[#allocation2 + $0x77] sm:$0xff]  ;;  %v1122_v49 = vmul.f32 %v5084_v54, %v4839_v16  ;;  %v853_v60 = vmul.f32 %v4984_v1, %v4812_v59  ;;  %v5144_v45 = vld [vmem:[#allocation2 + $0xa9] sm:$0xff] }
 0x24b   :  { %892 = vrot.lane.b32.xlu1 %v867_v52, %s4207_s30  ;;  %v840_v52 = vmul.f32 %v4920_v47, %v4810_v37  ;;  %6728 = vst [vmem:[#allocation32_spill] sm:$0xff] %v5092_v36  ;;  %v815_v41 = vpack.c.bf16 %v808_v23, %v5002_v15  ;;  %v789_v36 = vmul.f32 %v4920_v47, %v4837_v13 }
 0x24c   :  { %v841_v47 = vmul.f32 %v4922_v48, %v4837_v13  ;;  %v842_v23 = vmul.f32 %v4890_v56, %v4839_v16 }
 0x24e   :  { %3790 = vmatmul.mubr.msk.bf16.gmra.mrb[8].mxu1 %vm62_vm1, %v881_v14  ;;  %952 = vrot.lane.b32.xlu0 %v868_v51, %s4208_s28  ;;  %v1124_v14 = vmul.f32 %v4914_v42, %v4864_v11  ;;  %v790_v51 = vmul.f32 %v4922_v48, %v4839_v16  ;;  %v1125_v48 = vmul.f32 %v5144_v45, %v4928_v50 }
 0x24f   :  { %3793 = vmatprep.mubr.msk.bf16.mxu1 %vm62_vm1, %v1127_v53  ;;  %898 = vrot.lane.b32.xlu1 %v795_v39, %s4209_s5  ;;  %v847_v53 = vpack.c.bf16 %v840_v52, %v839_v7  ;;  %v852_v39 = vmul.f32 %v4968_v57, %v4779_v34  ;;  %v5134_v7 = vmul.f32 %v5106_v33, %v4850_v63 }
 0x250   :  { %v1128_v52 = vpack.c.bf16 %v1122_v49, %v1121_v18  ;;  %v1129_v26 = vpack.c.bf16 %v1124_v14, %v1123_v35  ;;  %v810_v18 = vmul.f32 %v4986_v19, %v4852_v9  ;;  %v848_v14 = vpack.c.bf16 %v842_v23, %v841_v47 }
 0x251   :  { %v1037_v57 = vpack.c.bf16 %v5119_v21, %v5134_v7  ;;  %v860_v15 = vpack.c.bf16 %v853_v60, %v852_v39  ;;  %v1126_v60 = vmul.f32 %v1118_v10, %v4930_v5  ;;  %v792_v35 = vmul.f32 %v4892_v30, %v4864_v11  ;;  %v6760_v7 = vld [vmem:[#allocation30_spill] sm:$0xff] }
 0x252   :  { %922 = vrot.lane.b32.xlu0 %v847_v53, %s4207_s30  ;;  %v796_v53 = vpack.c.bf16 %v790_v51, %v789_v36  ;;  %v854_v36 = vmul.f32 %v4986_v19, %v4850_v63  ;;  %v843_v39 = vmul.f32 %v4892_v30, %v4862_v28  ;;  %v844_v19 = vmul.f32 %v4894_v31, %v4864_v11 }
 0x253   :  { %910 = vrot.lane.b32.xlu1 %v815_v41, %s4208_s28  ;;  %v809_v41 = vmul.f32 %v4984_v1, %v4850_v63  ;;  %v855_v1 = vmul.f32 %v4970_v3, %v4852_v9  ;;  %v1130_v51 = vpack.c.bf16 %v1126_v60, %v1125_v48  ;;  %v6729_v47 = vmov 0.0   ;;  %v806_v48 = vld [vmem:[#allocation2 + $0x47] sm:$0xff] }
 0x254   :  { %v849_v30 = vpack.c.bf16 %v844_v19, %v843_v39  ;;  %v856_v23 = vmul.f32 %v4972_v25, %v4886_v20  ;;  %v1049_v39 = vpack.c.bf16 %v4854_v27, %v5086_v8  ;;  %v1050_v19 = vpack.c.bf16 %v4858_v2, %v4856_v0 }
 0x255   :  { %v816_v49 = vpack.c.bf16 %v810_v18, %v809_v41  ;;  %v861_v10 = vpack.c.bf16 %v855_v1, %v854_v36  ;;  %v794_v18 = vmul.f32 %v4896_v32, %v4930_v5  ;;  %v851_v1 = vld [vmem:[#allocation2 + $0x4f] sm:$0xff] }
 0x256   :  { %3794 = vmatmul.mubr.msk.bf16.gmra.mrb[12].mxu1 %vm62_vm1, %v1128_v52  ;;  %934 = vrot.lane.b32.xlu0 %v860_v15, %s4209_s5  ;;  %v812_v15 = vmul.f32 %v4972_v25, %v4888_v58  ;;  %v846_v25 = vmul.f32 %v4945_v24, %v4930_v5  ;;  %v1040_v24 = vld [vmem:[#allocation2 + $0x68] sm:$0xff] }
 0x257   :  { %3797 = vmatprep.mubr.msk.bf16.mxu1 %vm62_vm1, %v1129_v26  ;;  %900 = vrot.lane.b32.xlu1 %v796_v53, %s4209_s5  ;;  %v791_v26 = vmul.f32 %v4890_v56, %v4862_v28  ;;  %v811_v56 = vmul.f32 %v4970_v3, %v4886_v20  ;;  %v857_v53 = vmul.f32 %v5004_v43, %v4888_v58 }
 0x258   :  { %v793_v3 = vmul.f32 %v4894_v31, %v4928_v50  ;;  %v813_v31 = vmul.f32 %v5004_v43, %v4992_v44  ;;  %v1048_v43 = vpack.c.bf16 %v5104_v29, %v1040_v24 }
 0x259   :  { %v797_v52 = vpack.c.bf16 %v792_v35, %v791_v26  ;;  %v817_v41 = vpack.c.bf16 %v812_v15, %v811_v56  ;;  %v862_v60 = vpack.c.bf16 %v857_v53, %v856_v23  ;;  %v858_v35 = vmul.f32 %v806_v48, %v4992_v44  ;;  %v1052_v56 = vld [vmem:[#allocation2 + $0x69] sm:$0xff] }
 0x25a   :  { %924 = vrot.lane.b32.xlu0 %v848_v14, %s4207_s30  ;;  %v845_v14 = vmul.f32 %v4896_v32, %v4928_v50  ;;  %v798_v36 = vpack.c.bf16 %v794_v18, %v793_v3  ;;  %v1051_v15 = vpack.c.bf16 %v4963_v38, %v4860_v4  ;;  %v6730_v23 = vld [vmem:[#allocation20_spill] sm:$0xff] }
 0x25b   :  { %912 = vrot.lane.b32.xlu1 %v816_v49, %s4208_s28  ;;  %v814_v49 = vmul.f32 %v806_v48, %v4994_v6  ;;  %v1092_v53 = vmul.f32 %v6730_v23, %v4810_v37  ;;  %v5222_v18 = vld [vmem:[#allocation2 + $0x6f] sm:$0xff] }
 0x25c   :  { %v850_v26 = vpack.c.bf16 %v846_v25, %v845_v14  ;;  %v1105_v14 = vmul.f32 %v5088_v17, %v4812_v59 }
 0x25d   :  { %v818_v32 = vpack.c.bf16 %v814_v49, %v813_v31  ;;  %v6731_v49 = vld [vmem:[#allocation21_spill] sm:$0xff] }
 0x25e   :  { %3798 = vmatmul.mubr.msk.bf16.gmra.mrb[16].mxu1 %vm62_vm1, %v1130_v51  ;;  %936 = vrot.lane.b32.xlu0 %v861_v10, %s4209_s5  ;;  %v859_v51 = vmul.f32 %v851_v1, %v4994_v6  ;;  %v1074_v1 = vmul.f32 %v5106_v33, %v4812_v59  ;;  %v1063_v24 = vmul.f32 %v6731_v49, %v4839_v16 }
 0x25f   :  { %3817 = vmatprep.mubr.msk.f32.mxu1 %vm4203_vm0, %v6729_v47  ;;  %902 = vrot.lane.b32.xlu1 %v797_v52, %s4209_s5  ;;  %v1053_v52 = vld [vmem:[#allocation2 + $0x71] sm:$0xff] }
 0x260   :  { %v863_v10 = vpack.c.bf16 %v859_v51, %v858_v35  ;;  %v1061_v3 = vmul.f32 %v1053_v52, %v4810_v37  ;;  %v1094_v35 = vmul.f32 %v5067_v55, %v4839_v16 }
 0x262   :  { %926 = vrot.lane.b32.xlu0 %v849_v30, %s4207_s30  ;;  %v1091_v30 = vmul.f32 %v1053_v52, %v4777_v12  ;;  %v1076_v52 = vmul.f32 %v5019_v22, %v4852_v9 }
 0x263   :  { %914 = vrot.lane.b32.xlu1 %v817_v41, %s4208_s28  ;;  %v1060_v41 = vmul.f32 %v1052_v56, %v4777_v12 }
 0x264   :  { %v1099_v48 = vpack.c.bf16 %v1092_v53, %v1091_v30  ;;  %v1096_v30 = vmul.f32 %v4912_v40, %v4864_v11  ;;  %v1064_v53 = vmul.f32 %v5067_v55, %v4862_v28  ;;  %v1077_v40 = vmul.f32 %v5025_v46, %v4886_v20 }
 0x265   :  { %v1068_v25 = vpack.c.bf16 %v1061_v3, %v1060_v41  ;;  %v1108_v41 = vmul.f32 %v5027_v61, %v4886_v20  ;;  %v1109_v3 = vmul.f32 %v5042_v62, %v4888_v58  ;;  %v1078_v55 = vmul.f32 %v5027_v61, %v4888_v58 }
 0x266   :  { %938 = vrot.lane.b32.xlu0 %v862_v60, %s4209_s5  ;;  %v1104_v60 = vmul.f32 %v5106_v33, %v4779_v34 }
 0x267   :  { %904 = vrot.lane.b32.xlu1 %v798_v36, %s4209_s5  ;;  %v1073_v36 = vmul.f32 %v5222_v18, %v4779_v34 }
 0x268   :  { %v1112_v31 = vpack.c.bf16 %v1105_v14, %v1104_v60  ;;  %v1097_v60 = vmul.f32 %v4914_v42, %v4928_v50  ;;  %v1098_v14 = vmul.f32 %v5144_v45, %v4930_v5  ;;  %v6732_v45 = vld [vmem:[#allocation19_spill] sm:$0xff] }
 0x269   :  { %v1081_v51 = vpack.c.bf16 %v1074_v1, %v1073_v36  ;;  %v1072_v36 = vld [vmem:[#allocation2 + $0xa7] sm:$0xff]  ;;  %v1103_v1 = vld [vmem:[#allocation2 + $0xaf] sm:$0xff] }
 0x26a   :  { %928 = vrot.lane.b32.xlu0 %v850_v26, %s4207_s30  ;;  %v1093_v26 = vmul.f32 %v6731_v49, %v4837_v13  ;;  %v1110_v61 = vmul.f32 %v1072_v36, %v4992_v44  ;;  %v1079_v49 = vmul.f32 %v5042_v62, %v4992_v44  ;;  %v1080_v42 = vmul.f32 %v1072_v36, %v4994_v6 }
 0x26b   :  { %916 = vrot.lane.b32.xlu1 %v818_v32, %s4208_s28  ;;  %v1062_v32 = vmul.f32 %v6730_v23, %v4837_v13 }
 0x26c   :  { %v1100_v33 = vpack.c.bf16 %v1094_v35, %v1093_v26  ;;  %v6733_v26 = vld [vmem:[#allocation18_spill] sm:$0xff] }
 0x26d   :  { %v6734_v35 = vpack.c.bf16 %v6732_v45, %v6733_v26  ;;  %v6740_v26 = vld [vmem:[#allocation14_spill] sm:$0xff] }
 0x26e   :  { %940 = vrot.lane.b32.xlu0 %v863_v10, %s4209_s5  ;;  %v1106_v10 = vmul.f32 %v5019_v22, %v4850_v63 }
 0x26f   :  { %1135 = vrot.lane.b32.xlu1 %v1048_v43, %s4207_s30  ;;  %v1107_v43 = vmul.f32 %v5025_v46, %v4852_v9  ;;  %v1102_v46 = vpack.c.bf16 %v1098_v14, %v1097_v60 }
 0x271   :  { %v1113_v56 = vpack.c.bf16 %v1107_v43, %v1106_v10 }
 0x272   :  { %1192 = vrot.lane.b32.xlu0 %v1049_v39, %s4208_s28 }
 0x273   :  { %1137 = vrot.lane.b32.xlu1 %v1049_v39, %s4207_s30  ;;  %v1069_v39 = vpack.c.bf16 %v1063_v24, %v1062_v32  ;;  %v1116_v32 = vld [vmem:[#allocation2 + $0xb0] sm:$0xff]  ;;  %v1084_v24 = vpack.c.bf16 %v1080_v42, %v1079_v49 }
 0x276   :  { %1194 = vrot.lane.b32.xlu0 %v1050_v19, %s4208_s28 }
 0x277   :  { %1139 = vrot.lane.b32.xlu1 %v1050_v19, %s4207_s30  ;;  %v1075_v19 = vmul.f32 %v5088_v17, %v4850_v63  ;;  %v1065_v17 = vmul.f32 %v5084_v54, %v4864_v11 }
 0x279   :  { %v1082_v23 = vpack.c.bf16 %v1076_v52, %v1075_v19 }
 0x27a   :  { %1196 = vrot.lane.b32.xlu0 %v1051_v15, %s4208_s28 }
 0x27b   :  { %1141 = vrot.lane.b32.xlu1 %v1051_v15, %s4207_s30  ;;  %v1095_v15 = vmul.f32 %v5084_v54, %v4862_v28  ;;  %v1114_v54 = vpack.c.bf16 %v1109_v3, %v1108_v41 }
 0x27d   :  { %v1101_v22 = vpack.c.bf16 %v1096_v30, %v1095_v15  ;;  %v667_v30 = vld [vmem:[#allocation2 + $0x7] sm:$0xff] }
 0x27e   :  { %1171 = vrot.lane.b32.xlu0 %v1099_v48, %s4207_s30  ;;  %v1070_v48 = vpack.c.bf16 %v1065_v17, %v1064_v53  ;;  %v715_v17 = vmul.f32 %v4779_v34, %v667_v30 }
 0x27f   :  { %1147 = vrot.lane.b32.xlu1 %v1068_v25, %s4209_s5  ;;  %v1083_v25 = vpack.c.bf16 %v1078_v55, %v1077_v40  ;;  %v6737_v55 = vld [vmem:[#allocation15_spill] sm:$0xff] }
 0x282   :  { %1183 = vrot.lane.b32.xlu0 %v1112_v31, %s4209_s5  ;;  %v1111_v31 = vmul.f32 %v1103_v1, %v4994_v6 }
 0x283   :  { %1159 = vrot.lane.b32.xlu1 %v1081_v51, %s4208_s28 }
 0x284   :  { %v1115_v51 = vpack.c.bf16 %v1111_v31, %v1110_v61 }
 0x286   :  { %1173 = vrot.lane.b32.xlu0 %v1100_v33, %s4207_s30  ;;  %v6735_v33 = vld [vmem:[#allocation22_spill] sm:$0xff] }
 0x287   :  { %1149 = vrot.lane.b32.xlu1 %v1069_v39, %s4209_s5  ;;  %v1117_v10 = vpack.c.bf16 %v1116_v32, %v6735_v33 }
 0x28a   :  { %1185 = vrot.lane.b32.xlu0 %v1113_v56, %s4209_s5 }
 0x28b   :  { %1161 = vrot.lane.b32.xlu1 %v1082_v23, %s4208_s28 }
 0x28e   :  { %1175 = vrot.lane.b32.xlu0 %v1101_v22, %s4207_s30  ;;  %v6736_v22 = vld [vmem:[#allocation17_spill] sm:$0xff] }
 0x28f   :  { %1151 = vrot.lane.b32.xlu1 %v1070_v48, %s4209_s5  ;;  %v716_v41 = vmul.f32 %v6736_v22, %v4812_v59 }
 0x291   :  { %v723_v40 = vpack.c.bf16 %v716_v41, %v715_v17 }
 0x292   :  { %1187 = vrot.lane.b32.xlu0 %v1114_v54, %s4209_s5  ;;  %v6738_v54 = vld [vmem:[#allocation9_spill] sm:$0xff] }
 0x293   :  { %1163 = vrot.lane.b32.xlu1 %v1083_v25, %s4208_s28  ;;  %v6739_v60 = vpack.c.bf16 %v6737_v55, %v6738_v54  ;;  %v6746_v55 = vld [vmem:[#allocation11_spill] sm:$0xff]  ;;  %v6747_v54 = vld [vmem:[#allocation10_spill] sm:$0xff] }
 0x296   :  { %1177 = vrot.lane.b32.xlu0 %v1102_v46, %s4207_s30 }
 0x297   :  { %1153 = vrot.lane.b32.xlu1 %v6734_v35, %s4209_s5  ;;  %v6741_v35 = vld [vmem:[#allocation16_spill] sm:$0xff] }
 0x299   :  { %v887_v62 = vpop.permute.xlu1 %886 }
 0x29a   :  { %1189 = vrot.lane.b32.xlu0 %v1115_v51, %s4209_s5  ;;  %v956_v36 = vsel %vm62_vm1, %v723_v40, %v887_v62  ;;  %v6742_v51 = vpack.c.bf16 %v6740_v26, %v6741_v35  ;;  %v6744_v62 = vld [vmem:[#allocation23_spill] sm:$0xff]  ;;  %v6752_v35 = vld [vmem:[#allocation13_spill] sm:$0xff] }
 0x29b   :  { %1165 = vrot.lane.b32.xlu1 %v1084_v24, %s4208_s28 }
 0x29e   :  { %1198 = vrot.lane.b32.xlu0 %v1117_v10, %s4208_s28  ;;  %v6743_v10 = vld [vmem:[#allocation24_spill] sm:$0xff] }
 0x29f   :  { %v6745_v30 = vpack.c.bf16 %v6743_v10, %v6744_v62  ;;  %v6756_v62 = vld [vmem:[#allocation27_spill] sm:$0xff] }
 0x2b4   :  { %v947_v43 = vpop.permute.xlu0 %946  ;;  %v889_v39 = vpop.permute.xlu1 %888 }
 0x2b5   :  { %v959_v17 = vsel %vm62_vm1, %v6745_v30, %v889_v39  ;;  %v6749_v39 = vld [vmem:[#allocation26_spill] sm:$0xff] }
 0x2b8   :  { %v949_v19 = vpop.permute.xlu0 %948 }
 0x2b9   :  { %v891_v52 = vpop.permute.xlu1 %890 }
 0x2bc   :  { %v951_v56 = vpop.permute.xlu0 %950 }
 0x2bd   :  { %v893_v15 = vpop.permute.xlu1 %892 }
 0x2c0   :  { %v953_v23 = vpop.permute.xlu0 %952 }
 0x2c1   :  { %v899_v53 = vpop.permute.xlu1 %898 }
 0x2c2   :  { %v968_v61 = vsel %vm87_vm5, %v956_v36, %v899_v53  ;;  %v6750_v36 = vld [vmem:[#allocation25_spill] sm:$0xff] }
 0x2c4   :  { %v923_v3 = vpop.permute.xlu0 %922 }
 0x2c5   :  { %v911_v48 = vpop.permute.xlu1 %910  ;;  %v990_v14 = vsel %vm62_vm1, %v6739_v60, %v923_v3  ;;  %v6748_v60 = vpack.c.bf16 %v6746_v55, %v6747_v54  ;;  %v1020_v54 = vld [vmem:[#allocation2 + $0x67] sm:$0xff] }
 0x2c6   :  { %v977_v49 = vsel %vm975_vm6, %v968_v61, %v911_v48 }
 0x2c8   :  { %v935_v25 = vpop.permute.xlu0 %934 }
 0x2c9   :  { %v1001_v1 = vsel %vm87_vm5, %v990_v14, %v935_v25  ;;  %v901_v46 = vpop.permute.xlu1 %900 }
 0x2ca   :  { %v1009_v31 = vsel %vm975_vm6, %v1001_v1, %v947_v43  ;;  %v970_v22 = vsel %vm87_vm5, %v959_v17, %v901_v46  ;;  %v6751_v1 = vpack.c.bf16 %v6749_v39, %v6750_v36 }
 0x2cb   :  { %1471 = vmatprep.mubr.bf16.mxu0 %v1009_v31 }
 0x2cc   :  { %v925_v42 = vpop.permute.xlu0 %924  ;;  %1472 = vmatmul.mubr.bf16.vlgmr.msra.gmra.mrb[4].mxu0 %v977_v49  ;;  %v962_v61 = vsel %vm62_vm1, %v6751_v1, %v891_v52  ;;  %v6755_v52 = vld [vmem:[#allocation28_spill] sm:$0xff] }
 0x2cd   :  { %v913_v45 = vpop.permute.xlu1 %912  ;;  %v993_v32 = vsel %vm62_vm1, %v6742_v51, %v925_v42  ;;  %v6753_v51 = vld [vmem:[#allocation12_spill] sm:$0xff]  ;;  %v6757_v30 = vpack.c.bf16 %v6755_v52, %v6756_v62 }
 0x2ce   :  { %v980_v3 = vsel %vm975_vm6, %v970_v22, %v913_v45 }
 0x2cf   :  { %v965_v17 = vsel %vm62_vm1, %v6757_v30, %v893_v15  ;;  %v1029_v15 = vmul.f32 %v5222_v18, %v4812_v59 }
 0x2d0   :  { %v937_v24 = vpop.permute.xlu0 %936 }
 0x2d1   :  { %v1003_v53 = vsel %vm87_vm5, %v993_v32, %v937_v24  ;;  %v903_v43 = vpop.permute.xlu1 %902  ;;  %v6754_v32 = vpack.c.bf16 %v6752_v35, %v6753_v51 }
 0x2d2   :  { %v1012_v41 = vsel %vm975_vm6, %v1003_v53, %v949_v19  ;;  %v972_v31 = vsel %vm87_vm5, %v962_v61, %v903_v43  ;;  %v6758_v61 = vpack.c.bf16 %v5086_v8, %v5104_v29  ;;  %v6759_v8 = vpack.c.bf16 %v4856_v0, %v4854_v27 }
 0x2d3   :  { %1479 = vmatprep.mubr.bf16.mxu0 %v1012_v41  ;;  %v6763_v0 = vpack.c.bf16 %v4860_v4, %v4858_v2  ;;  %v6765_v2 = vld [vmem:[#allocation31_spill] sm:$0xff] }
 0x2d4   :  { %v927_v48 = vpop.permute.xlu0 %926  ;;  %1480 = vmatmul.mubr.bf16.gmra.mrb[8].mxu0 %v980_v3 }
 0x2d5   :  { %v915_v40 = vpop.permute.xlu1 %914  ;;  %v996_v14 = vsel %vm62_vm1, %v6748_v60, %v927_v48 }
 0x2d6   :  { %v983_v42 = vsel %vm975_vm6, %v972_v31, %v915_v40 }
 0x2d8   :  { %v939_v25 = vpop.permute.xlu0 %938 }
 0x2d9   :  { %v1005_v46 = vsel %vm87_vm5, %v996_v14, %v939_v25  ;;  %v905_v19 = vpop.permute.xlu1 %904  ;;  %v1028_v25 = vmul.f32 %v1020_v54, %v4779_v34 }
 0x2da   :  { %v1015_v49 = vsel %vm975_vm6, %v1005_v46, %v951_v56  ;;  %v974_v43 = vsel %vm87_vm5, %v965_v17, %v905_v19 }
 0x2db   :  { %1487 = vmatprep.mubr.bf16.mxu0 %v1015_v49  ;;  %v1036_v1 = vpack.c.bf16 %v1029_v15, %v1028_v25 }
 0x2dc   :  { %v929_v45 = vpop.permute.xlu0 %928  ;;  %1488 = vmatmul.mubr.bf16.gmra.mrb[12].mxu0 %v983_v42 }
 0x2dd   :  { %v917_v26 = vpop.permute.xlu1 %916  ;;  %v999_v24 = vsel %vm62_vm1, %v6754_v32, %v929_v45 }
 0x2de   :  { %v986_v41 = vsel %vm975_vm6, %v974_v43, %v917_v26 }
 0x2e0   :  { %v941_v10 = vpop.permute.xlu0 %940 }
 0x2e1   :  { %v1007_v53 = vsel %vm87_vm5, %v999_v24, %v941_v10  ;;  %v1136_v56 = vpop.permute.xlu1 %1135 }
 0x2e2   :  { %v1018_v22 = vsel %vm975_vm6, %v1007_v53, %v953_v23  ;;  %v1202_v23 = vsel %vm62_vm1, %v1036_v1, %v1136_v56  ;;  %v6767_v1 = vpack.c.bf16 %v6735_v33, %v4963_v38 }
 0x2e3   :  { %1495 = vmatprep.mubr.bf16.mxu0 %v1018_v22 }
 0x2e4   :  { %v1193_v3 = vpop.permute.xlu0 %1192  ;;  %1496 = vmatmul.mubr.bf16.gmra.mrb[16].mxu0 %v986_v41 }
 0x2e5   :  { %v1138_v48 = vpop.permute.xlu1 %1137 }
 0x2e6   :  { %v1205_v29 = vsel %vm62_vm1, %v1037_v57, %v1138_v48  ;;  %v6761_v57 = vld [vmem:[#allocation29_spill] sm:$0xff] }
 0x2e7   :  { %v6762_v53 = vpack.c.bf16 %v6760_v7, %v6761_v57  ;;  %v1744_v7 = vld [vmem:[%s6613_s7 + $0x10] sm:$0xff]  ;;  %v1745_v57 = vld [vmem:[%s6613_s7 + $0x18] sm:$0xff] }
 0x2e8   :  { %v1195_v40 = vpop.permute.xlu0 %1194 }
 0x2e9   :  { %v1140_v55 = vpop.permute.xlu1 %1139 }
 0x2ea   :  { %v1208_v27 = vsel %vm62_vm1, %v6762_v53, %v1140_v55  ;;  %v1746_v53 = vld [vmem:[%s6613_s7 + $0x20] sm:$0xff] }
 0x2ec   :  { %v1197_v60 = vpop.permute.xlu0 %1196 }
 0x2ed   :  { %v1142_v14 = vpop.permute.xlu1 %1141 }
 0x2f0   :  { %v1172_v39 = vpop.permute.xlu0 %1171 }
 0x2f1   :  { %v1148_v36 = vpop.permute.xlu1 %1147  ;;  %v1234_v46 = vsel %vm62_vm1, %v6758_v61, %v1172_v39  ;;  %v6764_v39 = vld [vmem:[#allocation32_spill] sm:$0xff] }
 0x2f2   :  { %v1213_v49 = vsel %vm87_vm5, %v1202_v23, %v1148_v36  ;;  %v6766_v4 = vpack.c.bf16 %v6764_v39, %v6765_v2 }
 0x2f4   :  { %v1184_v19 = vpop.permute.xlu0 %1183  ;;  %v1211_v36 = vsel %vm62_vm1, %v6766_v4, %v1142_v14 }
 0x2f5   :  { %v1245_v31 = vsel %vm87_vm5, %v1234_v46, %v1184_v19  ;;  %v1160_v42 = vpop.permute.xlu1 %1159 }
 0x2f6   :  { %v1253_v18 = vsel %vm975_vm6, %v1245_v31, %v1193_v3  ;;  %v1221_v45 = vsel %vm975_vm6, %v1213_v49, %v1160_v42 }
 0x2f7   :  { %1503 = vmatprep.mubr.bf16.mxu0 %v1253_v18 }
 0x2f8   :  { %v1174_v26 = vpop.permute.xlu0 %1173  ;;  %1504 = vmatmul.mubr.bf16.gmra.mrb[20].mxu0 %v1221_v45 }
 0x2f9   :  { %v1150_v35 = vpop.permute.xlu1 %1149  ;;  %v1237_v51 = vsel %vm62_vm1, %v6759_v8, %v1174_v26 }
 0x2fa   :  { %v1215_v10 = vsel %vm87_vm5, %v1205_v29, %v1150_v35 }
 0x2fc   :  { %v1186_v32 = vpop.permute.xlu0 %1185 }
 0x2fd   :  { %v1247_v24 = vsel %vm87_vm5, %v1237_v51, %v1186_v32  ;;  %v1162_v52 = vpop.permute.xlu1 %1161 }
 0x2fe   :  { %v1256_v62 = vsel %vm975_vm6, %v1247_v24, %v1195_v40  ;;  %v1224_v30 = vsel %vm975_vm6, %v1215_v10, %v1162_v52 }
 0x2ff   :  { %1511 = vmatprep.mubr.bf16.mxu0 %v1256_v62  ;;  %v1742_v62 = vld [vmem:[%s6613_s7] sm:$0xff] }
 0x300   :  { %v1176_v17 = vpop.permute.xlu0 %1175  ;;  %1512 = vmatmul.mubr.bf16.gmra.mrb[24].mxu0 %v1224_v30  ;;  %v1743_v30 = vld [vmem:[%s6613_s7 + $0x8] sm:$0xff] }
 0x301   :  { %v1152_v21 = vpop.permute.xlu1 %1151  ;;  %v1240_v56 = vsel %vm62_vm1, %v6763_v0, %v1176_v17  ;;  %v3888_v17 = vpack.c.bf16 %v1743_v30, %v1742_v62  ;;  %v1747_v0 = vld [vmem:[%s6613_s7 + $0x28] sm:$0xff] }
 0x302   :  { %v1217_v41 = vsel %vm87_vm5, %v1208_v27, %v1152_v21  ;;  %v6768_v21 = vmov 0.0|0.0   ;;  %v3891_v27 = vpack.c.bf16 %v1745_v57, %v1744_v7 }
 0x303   :  { %3889 = vmatpush3.bf16.msra.mxu1 %v3888_v17 }
 0x304   :  { %v1188_v43 = vpop.permute.xlu0 %1187  ;;  %3890 = vmatprep.subr.bf16.mxu1 %v6768_v21 }
 0x305   :  { %v1249_v22 = vsel %vm87_vm5, %v1240_v56, %v1188_v43  ;;  %v1164_v3 = vpop.permute.xlu1 %1163  ;;  %v3894_v56 = vpack.c.bf16 %v1747_v0, %v1746_v53  ;;  %v1748_v43 = vld [vmem:[%s6613_s7 + $0x30] sm:$0xff] }
 0x306   :  { %v1259_v48 = vsel %vm975_vm6, %v1249_v22, %v1197_v60  ;;  %v1227_v40 = vsel %vm975_vm6, %v1217_v41, %v1164_v3  ;;  %v1749_v22 = vld [vmem:[%s6613_s7 + $0x38] sm:$0xff] }
 0x307   :  { %1519 = vmatprep.mubr.bf16.mxu0 %v1259_v48  ;;  %3892 = vmatpush3.bf16.msra.mxu1 %v3891_v27  ;;  %v3897_v41 = vpack.c.bf16 %v1749_v22, %v1748_v43  ;;  %v5442_v48 = vld [vmem:[%s6612_s6] ss:$0 sm:$0xff] }
 0x308   :  { %v1178_v54 = vpop.permute.xlu0 %1177  ;;  %1520 = vmatmul.mubr.bf16.gmra.mrb[28].mxu0 %v1227_v40  ;;  %3893 = vmatprep.subr.bf16.mxu1 %v6768_v21 }
 0x309   :  { %v1154_v15 = vpop.permute.xlu1 %1153  ;;  %v1243_v23 = vsel %vm62_vm1, %v6767_v1, %v1178_v54 }
 0x30a   :  { %v1219_v60 = vsel %vm87_vm5, %v1211_v36, %v1154_v15 }
 0x30b   :  { %3895 = vmatpush3.bf16.msra.mxu1 %v3894_v56 }
 0x30c   :  { %v1190_v55 = vpop.permute.xlu0 %1189  ;;  %3896 = vmatprep.subr.bf16.mxu1 %v6768_v21 }
 0x30d   :  { %v1166_v25 = vpop.permute.xlu1 %1165  ;;  %v1251_v61 = vsel %vm87_vm5, %v1243_v23, %v1190_v55 }
 0x30e   :  { %v1230_v19 = vsel %vm975_vm6, %v1219_v60, %v1166_v25 }
 0x30f   :  { %3898 = vmatpush3.bf16.msra.mxu1 %v3897_v41 }
 0x310   :  { %v1199_v46 = vpop.permute.xlu0 %1198  ;;  %3899 = vmatprep.subr.bf16.mxu1 %v6768_v21 }
 0x311   :  { %v1262_v31 = vsel %vm975_vm6, %v1251_v61, %v1199_v46 }
 0x312   :  { %1527 = vmatprep.mubr.bf16.mxu0 %v1262_v31 }
 0x313   :  { %1528 = vmatmul.mubr.bf16.gmra.mrb[32].mxu0 %v1230_v19 }
 0x319   :  { %v3787_v49 = vpop.f32.mrb[4].mxu1 }
 0x31a   :  { %v1570_v42 = vpop.f32.mrb[5].mxu1 }
 0x31b   :  { %v3788_v18 = vpop.f32.mrb[6].mxu1 }
 0x31c   :  { %v1573_v14 = vpop.f32.mrb[7].mxu1 }
 0x321   :  { %v5391_v45 = vpop.f32.mrb[8].mxu1 }
 0x322   :  { %v1586_v38 = vpop.f32.mrb[9].mxu1 }
 0x323   :  { %v5393_v33 = vpop.f32.mrb[10].mxu1 }
 0x324   :  { %v1589_v26 = vpop.f32.mrb[11].mxu1 }
 0x329   :  { %v5395_v35 = vpop.f32.mrb[12].mxu1 }
 0x32a   :  { %v5397_v29 = vpop.f32.mrb[13].mxu1 }
 0x32b   :  { %v5399_v8 = vpop.f32.mrb[14].mxu1 }
 0x32c   :  { %v5401_v51 = vpop.f32.mrb[15].mxu1 }
 0x331   :  { %v5403_v32 = vpop.f32.mrb[16].mxu1 }
 0x332   :  { %v5405_v24 = vpop.f32.mrb[17].mxu1 }
 0x333   :  { %v5407_v10 = vpop.f32.mrb[18].mxu1 }
 0x334   :  { %v5409_v52 = vpop.f32.mrb[19].mxu1 }
 0x39f   :  { %v3537_v3 = vpop.f32.mrb[4].mxu0 }
 0x3a0   :  { %v3538_v40 = vpop.f32.mrb[5].mxu0 }
 0x3a1   :  { %v3539_v54 = vadd.f32 %v3538_v40, %v3537_v3  ;;  %v3540_v15 = vpop.f32.mrb[6].mxu0 }
 0x3a2   :  { %v3541_v55 = vpop.f32.mrb[7].mxu0 }
 0x3a3   :  { %v1474_v25 = vadd.f32 %v3539_v54, %v5442_v48  ;;  %v3542_v39 = vadd.f32 %v3541_v55, %v3540_v15 }
 0x3a5   :  { %v5445_v2 = vadd.f32 %v1570_v42, %v1474_v25  ;;  %v1477_v4 = vadd.f32 %v3542_v39, %v5442_v48 }
 0x3a7   :  { %v5448_v36 = vadd.f32 %v1573_v14, %v1477_v4  ;;  %v3543_v1 = vpop.f32.mrb[8].mxu0 }
 0x3a8   :  { %v3544_v23 = vpop.f32.mrb[9].mxu0 }
 0x3a9   :  { %v3545_v60 = vadd.f32 %v3544_v23, %v3543_v1  ;;  %v3546_v61 = vpop.f32.mrb[10].mxu0  ;;  %v1634_v23 = vsel %vm87_vm5, %v5448_v36, 0.0 }
 0x3aa   :  { %v3547_v46 = vpop.f32.mrb[11].mxu0 }
 0x3ab   :  { %v1482_v19 = vadd.f32 %v3545_v60, %v5442_v48  ;;  %v3548_v31 = vadd.f32 %v3547_v46, %v3546_v61  ;;  %v1676_v60 = vmul.f32 %v5448_v36, %v5448_v36 }
 0x3ad   :  { %v5451_v62 = vadd.f32 %v3787_v49, %v1482_v19  ;;  %v1485_v30 = vadd.f32 %v3548_v31, %v5442_v48  ;;  %v1633_v19 = vsel %vm87_vm5, %v5445_v2, 0.0 }
 0x3af   :  { %v5454_v17 = vadd.f32 %v3788_v18, %v1485_v30  ;;  %v3549_v42 = vpop.f32.mrb[12].mxu0  ;;  %v1636_v31 = vsel %vm87_vm5, %v5451_v62, 0.0  ;;  %v1677_v30 = vmul.f32 %v5451_v62, %v5451_v62 }
 0x3b0   :  { %v3550_v7 = vpop.f32.mrb[13].mxu0 }
 0x3b1   :  { %v3551_v57 = vadd.f32 %v3550_v7, %v3549_v42  ;;  %v3552_v53 = vpop.f32.mrb[14].mxu0  ;;  %v1635_v42 = vadd.f32 %v1634_v23, %v1633_v19 }
 0x3b2   :  { %v3553_v14 = vpop.f32.mrb[15].mxu0 }
 0x3b3   :  { %v1490_v27 = vadd.f32 %v3551_v57, %v5442_v48  ;;  %v3554_v0 = vadd.f32 %v3553_v14, %v3552_v53  ;;  %v1692_v53 = vsel %vm87_vm5, %v1676_v60, 0.0  ;;  %v1637_v14 = vadd.f32 %v1636_v31, %v1635_v42 }
 0x3b5   :  { %v5457_v56 = vadd.f32 %v1586_v38, %v1490_v27  ;;  %v1493_v43 = vadd.f32 %v3554_v0, %v5442_v48 }
 0x3b7   :  { %v5460_v22 = vadd.f32 %v1589_v26, %v1493_v43  ;;  %v3555_v49 = vpop.f32.mrb[16].mxu0 }
 0x3b8   :  { %v3556_v41 = vpop.f32.mrb[17].mxu0 }
 0x3b9   :  { %v3557_v3 = vadd.f32 %v3556_v41, %v3555_v49  ;;  %v3558_v40 = vpop.f32.mrb[18].mxu0  ;;  %v1694_v49 = vsel %vm87_vm5, %v1677_v30, 0.0  ;;  %v1638_v41 = vsel %vm87_vm5, %v5454_v17, 0.0  ;;  %v1642_v19 = vsel %vm87_vm5, %v5460_v22, 0.0 }
 0x3ba   :  { %v3559_v18 = vpop.f32.mrb[19].mxu0 }
 0x3bb   :  { %v1498_v54 = vadd.f32 %v3557_v3, %v5442_v48  ;;  %v3560_v15 = vadd.f32 %v3559_v18, %v3558_v40 }
 0x3bd   :  { %v5464_v55 = vadd.f32 %v5391_v45, %v1498_v54  ;;  %v1501_v25 = vadd.f32 %v3560_v15, %v5442_v48  ;;  %v1640_v15 = vsel %vm87_vm5, %v5457_v56, 0.0 }
 0x3bf   :  { %v5468_v38 = vadd.f32 %v5393_v33, %v1501_v25  ;;  %v1675_v33 = vmul.f32 %v5445_v2, %v5445_v2  ;;  %v1681_v30 = vmul.f32 %v5464_v55, %v5464_v55 }
 0x3c1   :  { %v1691_v43 = vsel %vm87_vm5, %v1675_v33, 0.0  ;;  %v1680_v33 = vmul.f32 %v5460_v22, %v5460_v22 }
 0x3c2   :  { %v1693_v40 = vadd.f32 %v1692_v53, %v1691_v43 }
 0x3cb   :  { %v3561_v39 = vpop.f32.mrb[20].mxu0 }
 0x3cc   :  { %v3562_v4 = vpop.f32.mrb[21].mxu0 }
 0x3cd   :  { %v3563_v26 = vadd.f32 %v3562_v4, %v3561_v39  ;;  %v3564_v1 = vpop.f32.mrb[22].mxu0  ;;  %v1695_v39 = vadd.f32 %v1694_v49, %v1693_v40  ;;  %v1639_v4 = vadd.f32 %v1638_v41, %v1637_v14  ;;  %v1700_v41 = vsel %vm87_vm5, %v1680_v33, 0.0 }
 0x3ce   :  { %v3565_v61 = vpop.f32.mrb[23].mxu0 }
 0x3cf   :  { %v1506_v46 = vadd.f32 %v3563_v26, %v5442_v48  ;;  %v3566_v45 = vadd.f32 %v3565_v61, %v3564_v1  ;;  %v1641_v60 = vadd.f32 %v1640_v15, %v1639_v4 }
 0x3d1   :  { %v5484_v7 = vadd.f32 %v5397_v29, %v1506_v46  ;;  %v1509_v57 = vadd.f32 %v3566_v45, %v5442_v48  ;;  %v1678_v29 = vmul.f32 %v5454_v17, %v5454_v17 }
 0x3d3   :  { %v5489_v27 = vadd.f32 %v5401_v51, %v1509_v57  ;;  %v3567_v0 = vpop.f32.mrb[24].mxu0  ;;  %v1679_v51 = vmul.f32 %v5457_v56, %v5457_v56  ;;  %v1696_v23 = vsel %vm87_vm5, %v1678_v29, 0.0  ;;  %v1683_v29 = vmul.f32 %v5484_v7, %v5484_v7 }
 0x3d4   :  { %v3568_v3 = vpop.f32.mrb[25].mxu0  ;;  %v1697_v31 = vadd.f32 %v1696_v23, %v1695_v39  ;;  %v1654_v39 = vsel %vm87_vm5, %v5484_v7, 0.0 }
 0x3d5   :  { %v3569_v18 = vadd.f32 %v3568_v3, %v3567_v0  ;;  %v3570_v54 = vpop.f32.mrb[26].mxu0  ;;  %v1698_v45 = vsel %vm87_vm5, %v1679_v51, 0.0  ;;  %v1643_v0 = vadd.f32 %v1642_v19, %v1641_v60  ;;  %v1655_v3 = vsel %vm87_vm5, %v5489_v27, 0.0 }
 0x3d6   :  { %v3571_v25 = vpop.f32.mrb[27].mxu0  ;;  %v1699_v14 = vadd.f32 %v1698_v45, %v1697_v31  ;;  %v1656_v23 = vadd.f32 %v1655_v3, %v1654_v39  ;;  %v1712_v19 = vsel %vm87_vm5, %v1683_v29, 0.0 }
 0x3d7   :  { %v1514_v26 = vadd.f32 %v3569_v18, %v5442_v48  ;;  %v3572_v1 = vadd.f32 %v3571_v25, %v3570_v54  ;;  %v1644_v18 = vsel %vm87_vm5, %v5464_v55, 0.0  ;;  %v1702_v54 = vsel %vm87_vm5, %v1681_v30, 0.0 }
 0x3d8   :  { %v1682_v25 = vmul.f32 %v5468_v38, %v5468_v38  ;;  %v1645_v45 = vadd.f32 %v1644_v18, %v1643_v0 }
 0x3d9   :  { %v5504_v61 = vadd.f32 %v5395_v35, %v1514_v26  ;;  %v1517_v46 = vadd.f32 %v3572_v1, %v5442_v48  ;;  %v1684_v35 = vmul.f32 %v5489_v27, %v5489_v27  ;;  %v1701_v1 = vadd.f32 %v1700_v41, %v1699_v14 }
 0x3da   :  { %v1704_v14 = vsel %vm87_vm5, %v1682_v25, 0.0 }
 0x3db   :  { %v5515_v42 = vadd.f32 %v5399_v8, %v1517_v46  ;;  %v3573_v57 = vpop.f32.mrb[28].mxu0  ;;  %v1685_v8 = vmul.f32 %v5504_v61, %v5504_v61  ;;  %v1713_v4 = vsel %vm87_vm5, %v1684_v35, 0.0  ;;  %v1657_v26 = vsel %vm87_vm5, %v5504_v61, 0.0 }
 0x3dc   :  { %v3574_v53 = vpop.f32.mrb[29].mxu0  ;;  %v1703_v30 = vadd.f32 %v1702_v54, %v1701_v1  ;;  %v1658_v35 = vadd.f32 %v1657_v26, %v1656_v23 }
 0x3dd   :  { %v3575_v43 = vadd.f32 %v3574_v53, %v3573_v57  ;;  %v3576_v49 = vpop.f32.mrb[30].mxu0  ;;  %v1715_v33 = vsel %vm87_vm5, %v1685_v8, 0.0  ;;  %v1686_v31 = vmul.f32 %v5515_v42, %v5515_v42  ;;  %v1714_v57 = vadd.f32 %v1713_v4, %v1712_v19 }
 0x3de   :  { %v3577_v40 = vpop.f32.mrb[31].mxu0  ;;  %v1659_v0 = vsel %vm87_vm5, %v5515_v42, 0.0  ;;  %v1705_v8 = vadd.f32 %v1704_v14, %v1703_v30 }
 0x3df   :  { %v1522_v15 = vadd.f32 %v3575_v43, %v5442_v48  ;;  %v3578_v51 = vadd.f32 %v3577_v40, %v3576_v49  ;;  %v1716_v49 = vadd.f32 %v1715_v33, %v1714_v57  ;;  %v1717_v41 = vsel %vm87_vm5, %v1686_v31, 0.0 }
 0x3e0   :  { %v1660_v40 = vadd.f32 %v1659_v0, %v1658_v35  ;;  %v1706_v19 = vrot.slane %v1705_v8, 4 }
 0x3e1   :  { %v5538_v60 = vadd.f32 %v5405_v24, %v1522_v15  ;;  %v1525_v46 = vadd.f32 %v3578_v51, %v5442_v48  ;;  %v1646_v24 = vsel %vm87_vm5, %v5468_v38, 0.0  ;;  %v1718_v39 = vadd.f32 %v1717_v41, %v1716_v49 }
 0x3e2   :  { %v1707_v49 = vadd.f32 %v1706_v19, %v1705_v8 }
 0x3e3   :  { %v5546_v53 = vadd.f32 %v5409_v52, %v1525_v46  ;;  %v1687_v43 = vmul.f32 %v5538_v60, %v5538_v60  ;;  %v1661_v29 = vsel %vm87_vm5, %v5538_v60, 0.0  ;;  %v1647_v52 = vadd.f32 %v1646_v24, %v1645_v45 }
 0x3e4   :  { %v1662_v4 = vadd.f32 %v1661_v29, %v1660_v40 }
 0x3e5   :  { %v1719_v54 = vsel %vm87_vm5, %v1687_v43, 0.0  ;;  %v1688_v15 = vmul.f32 %v5546_v53, %v5546_v53  ;;  %v1663_v1 = vsel %vm87_vm5, %v5546_v53, 0.0  ;;  %v1648_v45 = vrot.slane %v1647_v52, 4 }
 0x3e6   :  { %v3579_v3 = vpop.f32.mrb[32].mxu0  ;;  %v1720_v33 = vadd.f32 %v1719_v54, %v1718_v39  ;;  %v1664_v35 = vadd.f32 %v1663_v1, %v1662_v4 }
 0x3e7   :  { %v3580_v18 = vpop.f32.mrb[33].mxu0  ;;  %v1721_v31 = vsel %vm87_vm5, %v1688_v15, 0.0  ;;  %v1649_v43 = vadd.f32 %v1648_v45, %v1647_v52 }
 0x3e8   :  { %v3581_v51 = vadd.f32 %v3580_v18, %v3579_v3  ;;  %v3582_v25 = vpop.f32.mrb[34].mxu0  ;;  %v1722_v41 = vadd.f32 %v1721_v31, %v1720_v33 }
 0x3e9   :  { %v3583_v26 = vpop.f32.mrb[35].mxu0  ;;  %v1650_v15 = vrot.slane %v1649_v43, 2 }
 0x3ea   :  { %v1530_v23 = vadd.f32 %v3581_v51, %v5442_v48  ;;  %v3584_v46 = vadd.f32 %v3583_v26, %v3582_v25  ;;  %v1708_v51 = vrot.slane %v1707_v49, 2 }
 0x3eb   :  { %v1651_v39 = vadd.f32 %v1650_v15, %v1649_v43 }
 0x3ec   :  { %v5566_v30 = vadd.f32 %v5403_v32, %v1530_v23  ;;  %v1533_v57 = vadd.f32 %v3584_v46, %v5442_v48  ;;  %v1709_v4 = vadd.f32 %v1708_v51, %v1707_v49 }
 0x3ed   :  { %v1652_v45 = vrot.slane %v1651_v39, 1 }
 0x3ee   :  { %v1665_v24 = vsel %vm87_vm5, %v5566_v30, 0.0  ;;  %v1689_v14 = vmul.f32 %v5566_v30, %v5566_v30  ;;  %v5574_v0 = vadd.f32 %v5407_v10, %v1533_v57  ;;  %v1710_v31 = vrot.slane %v1709_v4, 1 }
 0x3ef   :  { %v1666_v29 = vadd.f32 %v1665_v24, %v1664_v35  ;;  %v1823_v24 = vld [vmem:[%s6614_s8] sm:$0xff]  ;;  %v1653_v43 = vadd.f32 %v1652_v45, %v1651_v39  ;;  %v4000_v45 = vld [vmem:[%s6617_s11 + $0x48] sm:$0xff]  }
 0x3f0   :  { %v1723_v3 = vsel %vm87_vm5, %v1689_v14, 0.0  ;;  %v1667_v32 = vsel %vm87_vm5, %v5574_v0, 0.0  ;;  %v1690_v48 = vmul.f32 %v5574_v0, %v5574_v0  ;;  %v1824_v14 = vld [vmem:[%s6614_s8 + $0x8] sm:$0xff]  ;;  %v1711_v49 = vadd.f32 %v1710_v31, %v1709_v4 }
 0x3f1   :  { %v1724_v40 = vadd.f32 %v1723_v3, %v1722_v41  ;;  %v1668_v18 = vadd.f32 %v1667_v32, %v1666_v29  ;;  %v3900_v29 = vpack.c.bf16 %v1824_v14, %v1823_v24  ;;  %v4002_v31 = vld [vmem:[%s6617_s11 + $0x8] sm:$0xff]   ;;  %v4001_v24 = vld [vmem:[%s6617_s11 + $0xd8] sm:$0xff]   ;;  %v4005_v14 = vld [vmem:[%s6617_s11 + $0x10] sm:$0xff]  }
 0x3f2   :  { %v1725_v54 = vsel %vm87_vm5, %v1690_v48, 0.0  ;;  %v1825_v48 = vld [vmem:[%s6614_s8 + $0x10] sm:$0xff] }
 0x3f3   :  { %v1669_v10 = vrot.slane %v1668_v18, 4  ;;  %v1726_v25 = vadd.f32 %v1725_v54, %v1724_v40  ;;  %v1826_v40 = vld [vmem:[%s6614_s8 + $0x18] sm:$0xff] }
 0x3f4   :  { %v3903_v54 = vpack.c.bf16 %v1826_v40, %v1825_v48  ;;  %v4008_v48 = vld [vmem:[%s6617_s11 + $0x18] sm:$0xff]   ;;  %v4010_v40 = vld [vmem:[%s6617_s11 + $0x60] sm:$0xff]  }
 0x3f5   :  { %v1670_v52 = vadd.f32 %v1669_v10, %v1668_v18  ;;  %v1727_v8 = vrot.slane %v1726_v25, 4 }
 0x3f7   :  { %v1671_v26 = vrot.slane %v1670_v52, 2  ;;  %v1728_v1 = vadd.f32 %v1727_v8, %v1726_v25 }
 0x3f9   :  { %v1672_v23 = vadd.f32 %v1671_v26, %v1670_v52  ;;  %v1729_v46 = vrot.slane %v1728_v1, 2 }
 0x3fb   :  { %v1673_v19 = vrot.slane %v1672_v23, 1  ;;  %v1730_v33 = vadd.f32 %v1729_v46, %v1728_v1  ;;  %v3992_v1 = vld [vmem:[%s6617_s11 + $0xc0] sm:$0xff]  }
 0x3fc   :  { %3673 = vmatprep.subr.bf16.mxu0 %v3992_v1  ;;  %v3999_v46 = vld [vmem:[%s6617_s11] sm:$0xff]   ;;  %v4012_v1 = vld [vmem:[%s6617_s11 + $0x68] sm:$0xff]  }
 0x3fd   :  { %v1674_v57 = vadd.f32 %v1673_v19, %v1672_v23  ;;  %v1731_v35 = vrot.slane %v1730_v33, 1  ;;  %v3998_v23 = vld [vmem:[%s6617_s11 + $0x40] sm:$0xff]   ;;  %v3995_v19 = vld [vmem:[%s6617_s11 + $0x88] sm:$0xff]  }
 0x3ff   :  { %v1732_v41 = vadd.f32 %v1731_v35, %v1730_v33  ;;  %v1735_v3 = vsel %vm247_vm2, %v1674_v57, %v1653_v43  ;;  %v3996_v33 = vld [vmem:[%s6617_s11 + $0xd0] sm:$0xff]   ;;  %v3437_v43 = vld [vmem:[%s6615_s9] ss:$0 sm:$0xff] }
 0x400   :  { %v4004_v57 = vld [vmem:[%s6617_s11 + $0x50] sm:$0xff]  }
 0x401   :  { %v1739_v32 = vsel %vm252_vm3, %v1732_v41, %v1711_v49  ;;  %v3997_v35 = vld [vmem:[%s6617_s11 + $0x90] sm:$0xff]   ;;  %v4006_v49 = vld [vmem:[%s6617_s11 + $0x58] sm:$0xff]  }
 0x402   :  { %v1741_v18 = vsel %vm255_vm4, %v1735_v3, %v1739_v32  ;;  %v4003_v41 = vld [vmem:[%s6617_s11 + $0x98] sm:$0xff]   ;;  %v4007_v3 = vld [vmem:[%s6617_s11 + $0xe0] sm:$0xff]  }
 0x403   :  { %3818 = vmatmul.mubr.msk.f32.vlgmr.msra.gmra.mrb[2].mxu1 %vm87_vm5, %v1741_v18 }
 0x404   :  { %3901 = vmatpush3.bf16.msra.mxu1 %v3900_v29  ;;  %3828 = vmatprep.mubr.msk.f32.mxu1 %vm4203_vm0, %v6729_v47  ;;  %v3993_v47 = vld [vmem:[%s6617_s11 + $0x80] sm:$0xff]  }
 0x405   :  { %3902 = vmatprep.subr.bf16.mxu1 %v6768_v21  ;;  %v3994_v21 = vld [vmem:[%s6617_s11 + $0xc8] sm:$0xff]   ;;  %3674 = vmatpush3.bf16.msra.mxu0 %v3993_v47 }
 0x406   :  { %3675 = vmatprep.subr.bf16.mxu0 %v3994_v21 }
 0x408   :  { %3904 = vmatpush3.bf16.msra.mxu1 %v3903_v54  ;;  %v6769_v54 = vld [vmem:[#allocation7_spill] sm:$0xff] }
 0x409   :  { %3609 = vmatprep.subr.bf16.mxu1 %v3998_v23  ;;  %3676 = vmatpush3.bf16.msra.mxu0 %v3995_v19  ;;  %v6770_v19 = vld [vmem:[#allocation8_spill] sm:$0xff] }
 0x40a   :  { %3677 = vmatprep.subr.bf16.mxu0 %v3996_v33 }
 0x40d   :  { %3678 = vmatpush3.bf16.msra.mxu0 %v3997_v35  ;;  %v4016_v35 = vld [vmem:[%s6617_s11 + $0x70] sm:$0xff]  }
 0x40e   :  { %3679 = vmatprep.subr.bf16.mxu0 %v4001_v24 }
 0x411   :  { %3680 = vmatpush3.bf16.msra.mxu0 %v4003_v41  ;;  %v4017_v41 = vld [vmem:[%s6617_s11 + $0x30] sm:$0xff]  }
 0x412   :  { %3681 = vmatprep.subr.bf16.mxu0 %v4007_v3 }
 0x4d6   :  { %v1819_v15 = vpop.f32.mrb[2].mxu1 }
 0x4d7   :  { %v3819_v51 = vpop.f32.mrb[3].mxu1  ;;  %3829 = vmatmul.mubr.msk.f32.vlgmr.msra.gmra.mrb[20].mxu1 %vm62_vm1, %v1819_v15 }
 0x4d8   :  { %3610 = vmatpush3.bf16.msra.mxu1 %v3999_v46  ;;  %v4009_v51 = vld [vmem:[%s6617_s11 + $0xa0] sm:$0xff]   ;;  %v4019_v46 = vld [vmem:[%s6617_s11 + $0xf0] sm:$0xff]  }
 0x4d9   :  { %3611 = vmatprep.subr.bf16.mxu1 %v4000_v45  ;;  %3682 = vmatpush3.bf16.msra.mxu0 %v4009_v51 }
 0x4dc   :  { %3612 = vmatpush3.bf16.msra.mxu1 %v4002_v31 }
 0x4dd   :  { %3613 = vmatprep.subr.bf16.mxu1 %v4004_v57  ;;  %v4014_v57 = vld [vmem:[%s6617_s11 + $0x28] sm:$0xff]  }
 0x4e0   :  { %3614 = vmatpush3.bf16.msra.mxu1 %v4005_v14 }
 0x4e1   :  { %3615 = vmatprep.subr.bf16.mxu1 %v4006_v49 }
 0x4e4   :  { %3616 = vmatpush3.bf16.msra.mxu1 %v4008_v48 }
 0x4e5   :  { %3617 = vmatprep.subr.bf16.mxu1 %v4010_v40  ;;  %v4018_v40 = vld [vmem:[%s6617_s11 + $0x78] sm:$0xff]  }
 0x5aa   :  { %v1896_v10 = vpop.f32.mrb[20].mxu1 }
 0x5ab   :  { %v1900_v25 = vmul.f32 %v1896_v10, %v1896_v10  ;;  %v3830_v52 = vpop.f32.mrb[21].mxu1 }
 0x5ac   :  { %v4013_v52 = vld [vmem:[%s6617_s11 + $0xe8] sm:$0xff]  }
 0x5ad   :  { %v1902_v8 = vrot.slane %v1900_v25, 6  ;;  %v3438_v25 = vld [vmem:[%s6616_s10] ss:$0 sm:$0xff]  ;;  %3683 = vmatprep.subr.bf16.mxu0 %v4013_v52 }
 0x5af   :  { %v1904_v39 = vsub.f32 %v1896_v10, %v1902_v8 }
 0x5b1   :  { %v1905_v4 = vmax.f32 %v1904_v39, 0.0 }
 0x5b3   :  { %v1906_v26 = vadd.f32 1e-05, %v1905_v4 }
 0x5b5   :  { %4096 = vrsqrt.f32 %v1906_v26  ;;  %v4011_v26 = vld [vmem:[%s6617_s11 + $0x20] sm:$0xff]  }
 0x5b6   :  { %3618 = vmatpush3.bf16.msra.mxu1 %v4011_v26 }
 0x5b7   :  { %3619 = vmatprep.subr.bf16.mxu1 %v4012_v1 }
 0x5ba   :  { %3620 = vmatpush3.bf16.msra.mxu1 %v4014_v57 }
 0x5bb   :  { %3621 = vmatprep.subr.bf16.mxu1 %v4016_v35 }
 0x5be   :  { %3622 = vmatpush3.bf16.msra.mxu1 %v4017_v41 }
 0x5bf   :  { %v4097_v29 = vpop.eup %4096  ;;  %3623 = vmatprep.subr.bf16.mxu1 %v4018_v40 }
 0x5c0   :  { %v1915_v32 = vmul.f32 %v4097_v29, %v3437_v43 }
 0x5c2   :  { %v1918_v18 = vrot.slane %v1915_v32, 2  ;;  %v1934_v15 = vrot.slane %v1915_v32, %v6769_v54 }
 0x5c4   :  { %v1920_v8 = vmul.f32 %v1918_v18, %v1896_v10  ;;  %v1935_v39 = vcombine.high %v1934_v15, %v1934_v15  ;;  %v1942_v4 = vrot.slane %v1934_v15, %v6769_v54  ;;  %v4015_v10 = vld [vmem:[%s6617_s11 + $0xa8] sm:$0xff]  }
 0x5c5   :  { %3684 = vmatpush3.bf16.msra.mxu0 %v4015_v10 }
 0x5c6   :  { %v1927_v47 = vsub.f32 %v3438_v25, %v1920_v8  ;;  %v1949_v21 = vrot.slane %v1935_v39, %v6769_v54  ;;  %v1950_v23 = vcombine.high %v1942_v4, %v1942_v4  ;;  %3685 = vmatprep.subr.bf16.mxu0 %v4019_v46 }
 0x5c8   :  { %v1951_v45 = vcombine.high %v1949_v21, %v1949_v21  ;;  %v1955_v33 = vrot.slane %v1950_v23, %v6770_v19  ;;  %v1985_v31 = vrot.slane %v1927_v47, %v6769_v54 }
 0x5ca   :  { %v5692_v24 = vrot.slane %v1951_v45, %v6770_v19  ;;  %v1986_v14 = vcombine.high %v1985_v31, %v1985_v31  ;;  %v1993_v43 = vrot.slane %v1985_v31, %v6769_v54  ;;  %v1963_v49 = vmul.f32 %v1955_v33, %v5448_v36 }
 0x5cb   :  { %v1965_v29 = vmul.f32 %v1955_v33, %v5454_v17  ;;  %v1966_v3 = vmul.f32 %v1955_v33, %v5457_v56  ;;  %v1967_v36 = vmul.f32 %v1955_v33, %v5460_v22  ;;  %v1969_v18 = vmul.f32 %v1955_v33, %v5468_v38 }
 0x5cc   :  { %v2000_v32 = vrot.slane %v1986_v14, %v6769_v54  ;;  %v2004_v48 = vrot.slane %v1993_v43, %v6770_v19  ;;  %v1971_v15 = vmul.f32 %v5692_v24, %v5489_v27  ;;  %v1972_v25 = vmul.f32 %v5692_v24, %v5504_v61 }
 0x5cd   :  { %v1973_v38 = vmul.f32 %v5692_v24, %v5515_v42  ;;  %v1975_v27 = vmul.f32 %v5692_v24, %v5546_v53  ;;  %v1962_v53 = vmul.f32 %v1955_v33, %v5445_v2  ;;  %v1964_v23 = vmul.f32 %v1955_v33, %v5451_v62 }
 0x5ce   :  { %v5711_v17 = vrot.slane %v2000_v32, %v6770_v19  ;;  %v5713_v56 = vadd.f32 %v2004_v48, %v1963_v49  ;;  %v5715_v54 = vadd.f32 %v2004_v48, %v1965_v29  ;;  %v5717_v51 = vadd.f32 %v2004_v48, %v1966_v3 }
 0x5cf   :  { %v5721_v52 = vadd.f32 %v2004_v48, %v1967_v36  ;;  %v5723_v22 = vadd.f32 %v2004_v48, %v1969_v18  ;;  %v5749_v46 = vadd.f32 %v2004_v48, %v1962_v53  ;;  %v1968_v45 = vmul.f32 %v1955_v33, %v5464_v55 }
 0x5d0   :  { %v5730_v8 = vadd.f32 %v5711_v17, %v1971_v15  ;;  %v5733_v39 = vadd.f32 %v5711_v17, %v1972_v25  ;;  %v3440_v61 = vmul.f32 -1.442695, %v5713_v56  ;;  %v3442_v4 = vmul.f32 -1.442695, %v5715_v54 }
 0x5d1   :  { %v3443_v26 = vmul.f32 -1.442695, %v5717_v51  ;;  %v5739_v1 = vadd.f32 %v5711_v17, %v1973_v38  ;;  %v3444_v42 = vmul.f32 -1.442695, %v5721_v52  ;;  %v5744_v47 = vadd.f32 %v5711_v17, %v1975_v27 }
 0x5d2   :  { %4098 = vpow2.f32 %v3440_v61  ;;  %v3446_v21 = vmul.f32 -1.442695, %v5723_v22  ;;  %v3448_v10 = vmul.f32 -1.442695, %v5730_v8  ;;  %v3449_v19 = vmul.f32 -1.442695, %v5733_v39 }
 0x5d3   :  { %4100 = vpow2.f32 %v3442_v4  ;;  %v5753_v31 = vadd.f32 %v2004_v48, %v1964_v23  ;;  %v1970_v2 = vmul.f32 %v5692_v24, %v5484_v7  ;;  %v3450_v57 = vmul.f32 -1.442695, %v5739_v1 }
 0x5d4   :  { %4102 = vpow2.f32 %v3443_v26  ;;  %v5758_v35 = vadd.f32 %v2004_v48, %v1968_v45  ;;  %v3452_v62 = vmul.f32 -1.442695, %v5744_v47  ;;  %v3439_v55 = vmul.f32 -1.442695, %v5749_v46 }
 0x5d5   :  { %4104 = vpow2.f32 %v3444_v42  ;;  %v5762_v14 = vadd.f32 %v5711_v17, %v1970_v2  ;;  %v3441_v33 = vmul.f32 -1.442695, %v5753_v31  ;;  %v1974_v61 = vmul.f32 %v5692_v24, %v5538_v60 }
 0x5d6   :  { %4106 = vpow2.f32 %v3446_v21  ;;  %v3445_v7 = vmul.f32 -1.442695, %v5758_v35  ;;  %v1976_v42 = vmul.f32 %v5692_v24, %v5566_v30 }
 0x5d7   :  { %4108 = vpow2.f32 %v3448_v10  ;;  %v3447_v43 = vmul.f32 -1.442695, %v5762_v14  ;;  %v5773_v23 = vadd.f32 %v5711_v17, %v1974_v61 }
 0x5d8   :  { %4110 = vpow2.f32 %v3449_v19  ;;  %v5776_v19 = vadd.f32 %v5711_v17, %v1976_v42 }
 0x5d9   :  { %4112 = vpow2.f32 %v3450_v57 }
 0x5da   :  { %4114 = vpow2.f32 %v3452_v62 }
 0x5db   :  { %4116 = vpow2.f32 %v3439_v55 }
 0x5dc   :  { %v4099_v49 = vpop.eup %4098  ;;  %4118 = vpow2.f32 %v3441_v33  ;;  %v3451_v33 = vmul.f32 -1.442695, %v5773_v23 }
 0x5dd   :  { %v4101_v41 = vpop.eup %4100  ;;  %v2076_v29 = vadd.f32 1.0, %v4099_v49  ;;  %4120 = vpow2.f32 %v3445_v7  ;;  %v3453_v49 = vmul.f32 -1.442695, %v5776_v19 }
 0x5de   :  { %v4103_v3 = vpop.eup %4102  ;;  %v2078_v32 = vadd.f32 1.0, %v4101_v41  ;;  %4122 = vpow2.f32 %v3447_v43 }
 0x5df   :  { %v4105_v48 = vpop.eup %4104  ;;  %v2079_v40 = vadd.f32 1.0, %v4103_v3  ;;  %4124 = vrcp.f32 %v2076_v29  ;;  %v1977_v3 = vmul.f32 %v5692_v24, %v5574_v0 }
 0x5e0   :  { %v4107_v36 = vpop.eup %4106  ;;  %v2080_v18 = vadd.f32 1.0, %v4105_v48  ;;  %4126 = vrcp.f32 %v2078_v32 }
 0x5e1   :  { %v4109_v15 = vpop.eup %4108  ;;  %v2082_v25 = vadd.f32 1.0, %v4107_v36  ;;  %4128 = vrcp.f32 %v2079_v40 }
 0x5e2   :  { %v4111_v38 = vpop.eup %4110  ;;  %v2084_v27 = vadd.f32 1.0, %v4109_v15  ;;  %4130 = vrcp.f32 %v2080_v18  ;;  %v5787_v18 = vadd.f32 %v5711_v17, %v1977_v3 }
 0x5e3   :  { %v4113_v4 = vpop.eup %4112  ;;  %v2085_v26 = vadd.f32 1.0, %v4111_v38  ;;  %4132 = vrcp.f32 %v2082_v25 }
 0x5e4   :  { %v4115_v53 = vpop.eup %4114  ;;  %v2086_v21 = vadd.f32 1.0, %v4113_v4  ;;  %4134 = vrcp.f32 %v2084_v27  ;;  %v3454_v38 = vmul.f32 -1.442695, %v5787_v18 }
 0x5e5   :  { %v4117_v10 = vpop.eup %4116  ;;  %v2088_v45 = vadd.f32 1.0, %v4115_v53  ;;  %4136 = vrcp.f32 %v2085_v26 }
 0x5e6   :  { %v4119_v2 = vpop.eup %4118  ;;  %4138 = vrcp.f32 %v2086_v21  ;;  %v2075_v60 = vadd.f32 1.0, %v4117_v10 }
 0x5e7   :  { %v4121_v57 = vpop.eup %4120  ;;  %4140 = vrcp.f32 %v2088_v45  ;;  %v2077_v62 = vadd.f32 1.0, %v4119_v2 }
 0x5e8   :  { %v4123_v55 = vpop.eup %4122  ;;  %4142 = vrcp.f32 %v2075_v60  ;;  %v2081_v30 = vadd.f32 1.0, %v4121_v57 }
 0x5e9   :  { %v4125_v7 = vpop.eup %4124  ;;  %4144 = vrcp.f32 %v2077_v62  ;;  %v2083_v43 = vadd.f32 1.0, %v4123_v55  ;;  %v4023_v55 = vld [vmem:[%s6617_s11 + $0xf8] sm:$0xff]  }
 0x5ea   :  { %v4127_v41 = vpop.eup %4126  ;;  %v2124_v29 = vmul.f32 %v4125_v7, %v5713_v56  ;;  %4146 = vrcp.f32 %v2081_v30 }
 0x5eb   :  { %v4129_v32 = vpop.eup %4128  ;;  %v2126_v48 = vmul.f32 %v4127_v41, %v5715_v54  ;;  %4148 = vrcp.f32 %v2083_v43 }
 0x5ec   :  { %v4131_v40 = vpop.eup %4130  ;;  %2140 = vst.msk [vmem:[#allocation3 + $0x18] sm:$0xff] %vm87_vm5, %v2124_v29  ;;  %v2127_v36 = vmul.f32 %v4129_v32, %v5717_v51  ;;  %4150 = vpow2.f32 %v3451_v33 }
 0x5ed   :  { %v4133_v15 = vpop.eup %4132  ;;  %2142 = vst.msk [vmem:[#allocation3 + $0x28] sm:$0xff] %vm87_vm5, %v2126_v48  ;;  %v2128_v56 = vmul.f32 %v4131_v40, %v5721_v52  ;;  %4152 = vpow2.f32 %v3453_v49  ;;  %v2176_v49 = vld [vmem:[#allocation3 + $0x8] sm:$0xff] }
 0x5ee   :  { %v4135_v0 = vpop.eup %4134  ;;  %2143 = vst.msk [vmem:[#allocation3 + $0x30] sm:$0xff] %vm87_vm5, %v2127_v36  ;;  %v2130_v24 = vmul.f32 %v4133_v15, %v5723_v22  ;;  %4154 = vpow2.f32 %v3454_v38  ;;  %v4024_v36 = vld [vmem:[%s6617_s11 + $0xb8] sm:$0xff]  }
 0x5ef   :  { %v4137_v54 = vpop.eup %4136  ;;  %2144 = vst.msk [vmem:[#allocation3 + $0x38] sm:$0xff] %vm87_vm5, %v2128_v56  ;;  %v2132_v51 = vmul.f32 %v4135_v0, %v5730_v8  ;;  %v4020_v8 = vld [vmem:[%s6617_s11 + $0x38] sm:$0xff]  }
 0x5f0   :  { %v4139_v25 = vpop.eup %4138  ;;  %2146 = vst.msk [vmem:[#allocation3 + $0x48] sm:$0xff] %vm87_vm5, %v2130_v24  ;;  %v2133_v17 = vmul.f32 %v4137_v54, %v5733_v39  ;;  %v4021_v39 = vld [vmem:[%s6617_s11 + $0xb0] sm:$0xff]   ;;  %3624 = vmatpush3.bf16.msra.mxu1 %v4020_v8 }
 0x5f1   :  { %v4141_v27 = vpop.eup %4140  ;;  %2149 = vst.msk [vmem:[#allocation3 + $0x78] sm:$0xff] %vm87_vm5, %v2132_v51  ;;  %v2134_v52 = vmul.f32 %v4139_v25, %v5739_v1  ;;  %v5813_v1 = vld [vmem:[%s6617_s11 + $0x100] sm:$0xff]   ;;  %3686 = vmatpush3.bf16.msra.mxu0 %v4021_v39 }
 0x5f2   :  { %v4143_v61 = vpop.eup %4142  ;;  %2150 = vst.msk [vmem:[#allocation3 + $0x80] sm:$0xff] %vm87_vm5, %v2133_v17  ;;  %v2136_v22 = vmul.f32 %v4141_v27, %v5744_v47  ;;  %3905 = vmatprep.subr.bf16.mxu1 %v5813_v1  ;;  %3687 = vmatprep.subr.bf16.mxu0 %v4023_v55 }
 0x5f3   :  { %v4145_v4 = vpop.eup %4144  ;;  %v2123_v26 = vmul.f32 %v4143_v61, %v5749_v46  ;;  %2151 = vst.msk [vmem:[#allocation3 + $0x88] sm:$0xff] %vm87_vm5, %v2134_v52  ;;  %v5847_v41 = vld [vmem:[#allocation3 + $0x18] sm:$0xff] }
 0x5f4   :  { %v4147_v42 = vpop.eup %4146  ;;  %v2125_v47 = vmul.f32 %v4145_v4, %v5753_v31  ;;  %2153 = vst.msk [vmem:[#allocation3 + $0x98] sm:$0xff] %vm87_vm5, %v2136_v22  ;;  %v5857_v48 = vld [vmem:[#allocation3 + $0x28] sm:$0xff] }
 0x5f5   :  { %v4149_v53 = vpop.eup %4148  ;;  %2139 = vst.msk [vmem:[#allocation3 + $0x10] sm:$0xff] %vm87_vm5, %v2123_v26  ;;  %v5818_v21 = vld [vmem:[#allocation3 + $0x29] sm:$0xff]  ;;  %v2129_v10 = vmul.f32 %v4147_v42, %v5758_v35  ;;  %6775 = vst [vmem:[#allocation22_spill] sm:$0xff] %v5857_v48  ;;  %3688 = vmatpush3.bf16.msra.mxu0 %v4024_v36 }
 0x5f6   :  { %v5820_v46 = vld [vmem:[#allocation3 + $0x30] sm:$0xff]  ;;  %v4151_v45 = vpop.eup %4150  ;;  %2141 = vst.msk [vmem:[#allocation3 + $0x20] sm:$0xff] %vm87_vm5, %v2125_v47  ;;  %v5827_v31 = vmul.f32 %v5818_v21, %v4837_v13  ;;  %v5829_v2 = vld [vmem:[#allocation3 + $0x38] sm:$0xff]  ;;  %v2131_v35 = vmul.f32 %v4149_v53, %v5762_v14  ;;  %3831 = vmatprep.subr.bf16.mxu0 %v5813_v1 }
 0x5f7   :  { %6771 = vst [vmem:[#allocation20_spill] sm:$0xff] %v5820_v46  ;;  %6773 = vst [vmem:[#allocation19_spill] sm:$0xff] %v5829_v2  ;;  %v5831_v60 = vld [vmem:[#allocation3 + $0x31] sm:$0xff]  ;;  %v4153_v57 = vpop.eup %4152  ;;  %v2087_v7 = vadd.f32 1.0, %v4151_v45  ;;  %v2186_v14 = vpack.c.bf16 %v5820_v46, %v5857_v48 }
 0x5f8   :  { %6772 = vst [vmem:[#allocation21_spill] sm:$0xff] %v5827_v31  ;;  %2145 = vst.msk [vmem:[#allocation3 + $0x40] sm:$0xff] %vm87_vm5, %v2129_v10  ;;  %v5842_v30 = vmul.f32 %v5831_v60, %v4839_v16  ;;  %v2089_v43 = vadd.f32 1.0, %v4153_v57  ;;  %v5853_v3 = vld [vmem:[#allocation3 + $0x2f] sm:$0xff]  ;;  %v5855_v32 = vld [vmem:[#allocation3 + $0x37] sm:$0xff]  ;;  %v4155_v27 = vpop.eup %4154 }
 0x5f9   :  { %2148 = vst.msk [vmem:[#allocation3 + $0x70] sm:$0xff] %vm87_vm5, %v2131_v35  ;;  %v5845_v33 = vld [vmem:[#allocation3 + $0x80] sm:$0xff]  ;;  %4156 = vrcp.f32 %v2087_v7  ;;  %v2213_v26 = vmul.f32 %v5853_v3, %v4886_v20  ;;  %v2214_v42 = vmul.f32 %v5855_v32, %v4888_v58  ;;  %v5895_v10 = vld [vmem:[#allocation3 + $0x48] sm:$0xff]  ;;  %v2090_v35 = vadd.f32 1.0, %v4155_v27 }
 0x5fa   :  { %6774 = vst [vmem:[#allocation18_spill] sm:$0xff] %v5842_v30  ;;  %v5851_v29 = vld [vmem:[#allocation3 + $0x88] sm:$0xff]  ;;  %4158 = vrcp.f32 %v2089_v43  ;;  %v6011_v46 = vld [vmem:[#allocation3 + $0x79] sm:$0xff]  ;;  %v6023_v31 = vmul.f32 %v5855_v32, %v4992_v44 }
 0x5fb   :  { %v2219_v27 = vpack.c.bf16 %v2214_v42, %v2213_v26  ;;  %4160 = vrcp.f32 %v2090_v35  ;;  %v5930_v26 = vmul.f32 %v5818_v21, %v4862_v28  ;;  %v5934_v42 = vmul.f32 %v5831_v60, %v4864_v11 }
 0x5fc   :  { %v5864_v15 = vld [vmem:[#allocation3 + $0x10] sm:$0xff]  ;;  %6794 = vst [vmem:[#allocation31_spill] sm:$0xff] %v6023_v31 }
 0x5fd   :  { %6776 = vst [vmem:[#allocation17_spill] sm:$0xff] %v5864_v15  ;;  %v5866_v56 = vld [vmem:[#allocation3 + $0xf] sm:$0xff]  ;;  %v2158_v0 = vld [vmem:[#allocation3 + $0x17] sm:$0xff]  ;;  %v2184_v24 = vpack.c.bf16 %v5864_v15, %v2176_v49  ;;  %v5872_v25 = vld [vmem:[#allocation3 + $0x20] sm:$0xff] }
 0x5fe   :  { %v2209_v54 = vmul.f32 %v5866_v56, %v4779_v34  ;;  %v2210_v51 = vmul.f32 %v2158_v0, %v4812_v59  ;;  %6777 = vst [vmem:[#allocation15_spill] sm:$0xff] %v5872_v25  ;;  %v2159_v17 = vld [vmem:[#allocation3 + $0x1f] sm:$0xff]  ;;  %v5874_v38 = vld [vmem:[#allocation3 + $0x27] sm:$0xff]  ;;  %v5883_v39 = vld [vmem:[#allocation3 + $0x11] sm:$0xff]  ;;  %v2185_v45 = vpack.c.bf16 %v5872_v25, %v5847_v41 }
 0x5ff   :  { %2271 = vrot.lane.b32.xlu1 %v2184_v24, %s4209_s5  ;;  %v2211_v22 = vmul.f32 %v2159_v17, %v4850_v63  ;;  %v2212_v8 = vmul.f32 %v5874_v38, %v4852_v9  ;;  %v5885_v4 = vld [vmem:[#allocation3 + $0x19] sm:$0xff]  ;;  %v5900_v57 = vld [vmem:[#allocation3 + $0x21] sm:$0xff]  ;;  %v2227_v55 = vmul.f32 %v5883_v39, %v4777_v12  ;;  %v2230_v24 = vmul.f32 %v5818_v21, %v4839_v16 }
 0x600   :  { %v2217_v61 = vpack.c.bf16 %v2210_v51, %v2209_v54  ;;  %v5893_v53 = vld [vmem:[#allocation3 + $0x40] sm:$0xff]  ;;  %v2228_v7 = vmul.f32 %v5885_v4, %v4810_v37  ;;  %v5906_v43 = vld [vmem:[#allocation3 + $0x70] sm:$0xff]  ;;  %v5908_v49 = vld [vmem:[#allocation3 + $0x78] sm:$0xff]  ;;  %6781 = vst [vmem:[#allocation24_spill] sm:$0xff] %v5930_v26 }
 0x601   :  { %6778 = vst [vmem:[#allocation9_spill] sm:$0xff] %v5893_v53  ;;  %6779 = vst [vmem:[#allocation14_spill] sm:$0xff] %v5906_v43  ;;  %v2218_v36 = vpack.c.bf16 %v2212_v8, %v2211_v22  ;;  %v2163_v54 = vld [vmem:[#allocation3 + $0x3f] sm:$0xff]  ;;  %v5919_v40 = vld [vmem:[#allocation3 + $0x47] sm:$0xff]  ;;  %v2187_v48 = vpack.c.bf16 %v5893_v53, %v5829_v2 }
 0x602   :  { %2283 = vrot.lane.b32.xlu0 %v2217_v61, %s4209_s5  ;;  %v2229_v61 = vmul.f32 %v5900_v57, %v4837_v13  ;;  %6780 = vst [vmem:[#allocation16_spill] sm:$0xff] %v5919_v40  ;;  %6782 = vst [vmem:[#allocation23_spill] sm:$0xff] %v5934_v42  ;;  %v2235_v62 = vpack.c.bf16 %v2228_v7, %v2227_v55  ;;  %v5937_v47 = vmul.f32 %v2163_v54, %v4992_v44  ;;  %v5954_v8 = vld [vmem:[#allocation3 + $0x39] sm:$0xff]  ;;  %v6052_v26 = vld [vmem:[#allocation3 + $0x49] sm:$0xff] }
 0x603   :  { %2273 = vrot.lane.b32.xlu1 %v2185_v45, %s4209_s5  ;;  %v5923_v45 = vmul.f32 %v5831_v60, %v4862_v28  ;;  %v4157_v22 = vpop.eup %4156  ;;  %v2216_v21 = vmul.f32 %v5919_v40, %v4994_v6  ;;  %v5949_v60 = vmul.f32 %v2158_v0, %v4779_v34  ;;  %v5952_v55 = vmul.f32 %v2159_v17, %v4812_v59  ;;  %v6013_v40 = vld [vmem:[#allocation3 + $0x81] sm:$0xff] }
 0x604   :  { %v4159_v51 = vpop.eup %4158  ;;  %v2135_v52 = vmul.f32 %v4157_v22, %v5773_v23  ;;  %v2236_v7 = vpack.c.bf16 %v2230_v24, %v2229_v61  ;;  %v5959_v23 = vmul.f32 %v5885_v4, %v4837_v13  ;;  %v5975_v24 = vmul.f32 %v2159_v17, %v4852_v9  ;;  %6796 = vst [vmem:[#allocation8_spill] sm:$0xff] %v6052_v26 }
 0x605   :  { %v2137_v35 = vmul.f32 %v4159_v51, %v5776_v19  ;;  %v5966_v19 = vmul.f32 %v2158_v0, %v4850_v63  ;;  %v5969_v51 = vld [vmem:[#allocation3 + $0x41] sm:$0xff]  ;;  %v5981_v22 = vmul.f32 %v5874_v38, %v4850_v63  ;;  %v5983_v0 = vld [vmem:[#allocation3 + $0x6f] sm:$0xff]  ;;  %v5993_v17 = vmul.f32 %v5853_v3, %v4888_v58  ;;  %v4161_v2 = vpop.eup %4160 }
 0x606   :  { %2285 = vrot.lane.b32.xlu0 %v2218_v36, %s4209_s5  ;;  %v5942_v36 = vmul.f32 %v5853_v3, %v4852_v9  ;;  %2152 = vst.msk [vmem:[#allocation3 + $0x90] sm:$0xff] %vm87_vm5, %v2135_v52  ;;  %6785 = vst [vmem:[#allocation26_spill] sm:$0xff] %v5975_v24  ;;  %v5997_v61 = vmul.f32 %v5855_v32, %v4886_v20  ;;  %v2370_v52 = vld [vmem:[#allocation3 + $0x7f] sm:$0xff]  ;;  %v6009_v3 = vmul.f32 %v5954_v8, %v4928_v50 }
 0x607   :  { %2287 = vrot.lane.b32.xlu1 %v2219_v27, %s4209_s5  ;;  %v5963_v27 = vmul.f32 %v5900_v57, %v4839_v16  ;;  %6784 = vst [vmem:[#allocation10_spill] sm:$0xff] %v5966_v19  ;;  %2154 = vst.msk [vmem:[#allocation3 + $0xa0] sm:$0xff] %vm87_vm5, %v2137_v35  ;;  %v5989_v35 = vmul.f32 %v5874_v38, %v4886_v20  ;;  %v6005_v38 = vmul.f32 %v2163_v54, %v4888_v58  ;;  %v6036_v32 = vld [vmem:[#allocation3 + $0x98] sm:$0xff] }
 0x608   :  { %6783 = vst [vmem:[#allocation11_spill] sm:$0xff] %v5942_v36  ;;  %6786 = vst [vmem:[#allocation25_spill] sm:$0xff] %v5981_v22  ;;  %v6019_v30 = vmul.f32 %v5969_v51, %v4930_v5  ;;  %v6026_v25 = vmul.f32 %v2163_v54, %v4994_v6  ;;  %v2420_v22 = vmul.f32 %v5983_v0, %v4779_v34  ;;  %v2252_v36 = vld [vmem:[#allocation3 + $0x50] sm:$0xff] }
 0x609   :  { %6787 = vst [vmem:[#allocation13_spill] sm:$0xff] %v5983_v0  ;;  %6788 = vst [vmem:[#allocation12_spill] sm:$0xff] %v5989_v35  ;;  %v2371_v35 = vld [vmem:[#allocation3 + $0x87] sm:$0xff]  ;;  %v6046_v0 = vmul.f32 %v2370_v52, %v4812_v59  ;;  %v6062_v31 = vmul.f32 %v6013_v40, %v4839_v16  ;;  %v2234_v15 = vmul.f32 %v6052_v26, %v4930_v5 }
 0x60a   :  { %2295 = vrot.lane.b32.xlu0 %v2235_v62, %s4209_s5  ;;  %v2369_v62 = vld [vmem:[#allocation3 + $0x77] sm:$0xff]  ;;  %6789 = vst [vmem:[#allocation28_spill] sm:$0xff] %v5993_v17  ;;  %6790 = vst [vmem:[#allocation27_spill] sm:$0xff] %v5997_v61  ;;  %v2220_v17 = vpack.c.bf16 %v2216_v21, %v5937_v47  ;;  %v2232_v61 = vmul.f32 %v5954_v8, %v4864_v11  ;;  %v2423_v47 = vmul.f32 %v2371_v35, %v4852_v9 }
 0x60b   :  { %2297 = vrot.lane.b32.xlu1 %v2236_v7, %s4209_s5  ;;  %6791 = vst [vmem:[#allocation30_spill] sm:$0xff] %v6005_v38  ;;  %6792 = vst [vmem:[#allocation29_spill] sm:$0xff] %v6009_v3  ;;  %v2421_v7 = vmul.f32 %v2369_v62, %v4812_v59  ;;  %v6043_v53 = vmul.f32 %v2369_v62, %v4779_v34  ;;  %v2387_v38 = vld [vmem:[#allocation3 + $0x68] sm:$0xff]  ;;  %v2138_v21 = vmul.f32 %v4161_v2, %v5787_v18 }
 0x60c   :  { %6793 = vst [vmem:[#allocation32_spill] sm:$0xff] %v6019_v30  ;;  %6795 = vst [vmem:[#allocation7_spill] sm:$0xff] %v6026_v25  ;;  %v2253_v3 = vpack.c.bf16 %v2252_v36, %v5895_v10  ;;  %v2395_v24 = vpack.c.bf16 %v5906_v43, %v2387_v38  ;;  %v2439_v18 = vmul.f32 %v6011_v46, %v4810_v37 }
 0x60d   :  { %v6054_v54 = vld [vmem:[#allocation3 + $0x90] sm:$0xff]  ;;  %v2428_v25 = vpack.c.bf16 %v2421_v7, %v2420_v22  ;;  %2155 = vst.msk [vmem:[#allocation3 + $0xa8] sm:$0xff] %vm87_vm5, %v2138_v21  ;;  %v2237_v22 = vpack.c.bf16 %v2232_v61, %v5923_v45  ;;  %v6090_v19 = vmul.f32 %v2369_v62, %v4850_v63  ;;  %v6093_v26 = vmul.f32 %v2370_v52, %v4852_v9 }
 0x60e   :  { %2275 = vrot.lane.b32.xlu0 %v2186_v14, %s4209_s5  ;;  %v6058_v14 = vmul.f32 %v6011_v46, %v4837_v13  ;;  %v6069_v30 = vld [vmem:[#allocation3 + $0x8f] sm:$0xff]  ;;  %v2374_v7 = vld [vmem:[#allocation3 + $0x9f] sm:$0xff]  ;;  %v6096_v43 = vmul.f32 %v2371_v35, %v4850_v63  ;;  %v6154_v36 = vmul.f32 %v5885_v4, %v4777_v12 }
 0x60f   :  { %2277 = vrot.lane.b32.xlu1 %v2187_v48, %s4209_s5  ;;  %v2422_v48 = vmul.f32 %v2370_v52, %v4850_v63  ;;  %v6071_v42 = vld [vmem:[#allocation3 + $0x89] sm:$0xff]  ;;  %v6081_v2 = vld [vmem:[#allocation3 + $0x91] sm:$0xff]  ;;  %6797 = vst [vmem:[#allocation33_spill] sm:$0xff] %v6090_v19  ;;  %6798 = vst [vmem:[#allocation34_spill] sm:$0xff] %v6093_v26  ;;  %v6130_v52 = vmul.f32 %v2374_v7, %v4888_v58  ;;  %v6141_v26 = vmul.f32 %v2374_v7, %v4994_v6 }
 0x610   :  { %6799 = vst [vmem:[#allocation35_spill] sm:$0xff] %v6096_v43  ;;  %v6104_v45 = vmul.f32 %v6071_v42, %v4862_v28  ;;  %v6107_v61 = vld [vmem:[#allocation3 + $0x71] sm:$0xff]  ;;  %v2405_v62 = vld [vmem:[#allocation3 + $0x99] sm:$0xff]  ;;  %v6113_v63 = vmul.f32 %v6081_v2, %v4864_v11 }
 0x611   :  { %v2429_v21 = vpack.c.bf16 %v2423_v47, %v2422_v48  ;;  %v6116_v48 = vmul.f32 %v2371_v35, %v4886_v20  ;;  %v2233_v47 = vmul.f32 %v5969_v51, %v4928_v50  ;;  %6804 = vst [vmem:[#allocation40_spill] sm:$0xff] %v6130_v52  ;;  %6806 = vst [vmem:[#allocation42_spill] sm:$0xff] %v6141_v26  ;;  %v6145_v43 = vld [vmem:[#allocation3 + $0xa0] sm:$0xff] }
 0x612   :  { %2289 = vrot.lane.b32.xlu0 %v2220_v17, %s4209_s5  ;;  %v2373_v17 = vld [vmem:[#allocation3 + $0x97] sm:$0xff]  ;;  %v6212_v52 = vmul.f32 %v6071_v42, %v4837_v13  ;;  %v2440_v26 = vmul.f32 %v6013_v40, %v4837_v13 }
 0x613   :  { %2494 = vrot.lane.b32.xlu1 %v2428_v25, %s4209_s5  ;;  %v6100_v25 = vmul.f32 %v6069_v30, %v4852_v9  ;;  %6801 = vst [vmem:[#allocation37_spill] sm:$0xff] %v6116_v48  ;;  %v6120_v9 = vmul.f32 %v6069_v30, %v4888_v58  ;;  %v6127_v38 = vmul.f32 %v2373_v17, %v4886_v20 }
 0x614   :  { %v6138_v19 = vmul.f32 %v2373_v17, %v4992_v44  ;;  %v2406_v35 = vld [vmem:[#allocation3 + $0xa1] sm:$0xff]  ;;  %v2238_v48 = vpack.c.bf16 %v2234_v15, %v2233_v47  ;;  %v2425_v15 = vmul.f32 %v2373_v17, %v4888_v58 }
 0x615   :  { %6800 = vst [vmem:[#allocation36_spill] sm:$0xff] %v6100_v25  ;;  %6802 = vst [vmem:[#allocation38_spill] sm:$0xff] %v6120_v9  ;;  %v6150_v25 = vmul.f32 %v2405_v62, %v4928_v50  ;;  %v6161_v9 = vmul.f32 %v5900_v57, %v4810_v37  ;;  %v6171_v4 = vld [vmem:[#allocation3 + $0xa8] sm:$0xff]  ;;  %v6216_v57 = vmul.f32 %v6081_v2, %v4839_v16 }
 0x616   :  { %2299 = vrot.lane.b32.xlu0 %v2237_v22, %s4209_s5  ;;  %6803 = vst [vmem:[#allocation39_spill] sm:$0xff] %v6127_v38  ;;  %6805 = vst [vmem:[#allocation41_spill] sm:$0xff] %v6138_v19  ;;  %v2438_v22 = vmul.f32 %v6107_v61, %v4777_v12  ;;  %v6169_v38 = vmul.f32 %v5969_v51, %v4864_v11  ;;  %v6180_v19 = vmul.f32 %v2406_v35, %v4930_v5  ;;  %v6194_v47 = vld [vmem:[#allocation3 + $0xa7] sm:$0xff] }
 0x617   :  { %2304 = vrot.lane.b32.xlu1 %v2253_v3, %s4209_s5  ;;  %v6165_v3 = vmul.f32 %v5954_v8, %v4862_v28  ;;  %v6183_v8 = vmul.f32 %v2406_v35, %v4864_v11  ;;  %v2427_v58 = vmul.f32 %v6194_v47, %v4994_v6  ;;  %v2444_v13 = vmul.f32 %v2406_v35, %v4928_v50 }
 0x618   :  { %v2446_v51 = vpack.c.bf16 %v2439_v18, %v2438_v22  ;;  %v6200_v18 = vmul.f32 %v6011_v46, %v4777_v12  ;;  %v2424_v22 = vmul.f32 %v6069_v30, %v4886_v20  ;;  %v2426_v20 = vmul.f32 %v2374_v7, %v4992_v44 }
 0x619   :  { %v2475_v30 = vpack.c.bf16 %v6216_v57, %v6212_v52  ;;  %v2442_v7 = vmul.f32 %v6081_v2, %v4862_v28  ;;  %v2197_v2 = vmul.f32 %v5883_v39, %v4810_v37 }
 0x61a   :  { %2482 = vrot.lane.b32.xlu0 %v2395_v24, %s4209_s5  ;;  %v6174_v24 = vmul.f32 %v2405_v62, %v4862_v28  ;;  %6807 = vst [vmem:[#allocation43_spill] sm:$0xff] %v6200_v18  ;;  %v2430_v17 = vpack.c.bf16 %v2425_v15, %v2424_v22  ;;  %v2431_v46 = vpack.c.bf16 %v2427_v58, %v2426_v20 }
 0x61b   :  { %2496 = vrot.lane.b32.xlu1 %v2429_v21, %s4209_s5  ;;  %v2396_v21 = vpack.c.bf16 %v5845_v33, %v5908_v49  ;;  %v2443_v18 = vmul.f32 %v2405_v62, %v4864_v11  ;;  %v2398_v28 = vpack.c.bf16 %v6145_v43, %v6036_v32  ;;  %v2156_v62 = vld [vmem:[#allocation3 + $0x7] sm:$0xff] }
 0x61c   :  { %v2164_v22 = vmul.f32 %v2156_v62, %v4779_v34 }
 0x61d   :  { %v2448_v15 = vpack.c.bf16 %v2443_v18, %v2442_v7  ;;  %v2165_v18 = vmul.f32 %v5866_v56, %v4812_v59  ;;  %v4025_v7 = vld [vmem:[%s6617_s11 + $0x108] sm:$0xff]   ;;  %v6809_v56 = vpack.c.bf16 %v5952_v55, %v5949_v60  ;;  %v6811_v60 = vld [vmem:[#allocation17_spill] sm:$0xff] }
 0x61e   :  { %2301 = vrot.lane.b32.xlu0 %v2238_v48, %s4209_s5  ;;  %v6204_v48 = vmul.f32 %v6013_v40, %v4810_v37  ;;  %v2463_v40 = vld [vmem:[#allocation3 + $0xb0] sm:$0xff]  ;;  %v6812_v55 = vpack.c.bf16 %v5847_v41, %v6811_v60 }
 0x61f   :  { %2506 = vrot.lane.b32.xlu1 %v2446_v51, %s4209_s5  ;;  %v2397_v51 = vpack.c.bf16 %v6054_v54, %v5851_v29  ;;  %v2172_v58 = vpack.c.bf16 %v2165_v18, %v2164_v22  ;;  %v4027_v18 = vld [vmem:[%s6617_s11 + $0x118] sm:$0xff]   ;;  %v6816_v22 = vld [vmem:[#allocation23_spill] sm:$0xff] }
 0x620   :  { %6808 = vst [vmem:[#allocation44_spill] sm:$0xff] %v6204_v48  ;;  %v6237_v48 = vld [vmem:[#allocation3 + $0xa9] sm:$0xff] }
 0x622   :  { %2484 = vrot.lane.b32.xlu0 %v2396_v21, %s4209_s5  ;;  %v2441_v21 = vmul.f32 %v6071_v42, %v4839_v16  ;;  %v2445_v16 = vmul.f32 %v6237_v48, %v4930_v5  ;;  %v2188_v42 = vld [vmem:[#allocation3 + $0x9] sm:$0xff] }
 0x623   :  { %2486 = vrot.lane.b32.xlu1 %v2397_v51, %s4209_s5  ;;  %v2196_v35 = vmul.f32 %v2188_v42, %v4777_v12 }
 0x624   :  { %v2447_v51 = vpack.c.bf16 %v2441_v21, %v2440_v26  ;;  %v2449_v11 = vpack.c.bf16 %v2445_v16, %v2444_v13  ;;  %v2464_v26 = vpack.c.bf16 %v2463_v40, %v6171_v4  ;;  %v6810_v16 = vpack.c.bf16 %v5963_v27, %v5959_v23  ;;  %v4026_v40 = vld [vmem:[%s6617_s11 + $0x110] sm:$0xff]   ;;  %v6813_v23 = vld [vmem:[#allocation26_spill] sm:$0xff] }
 0x625   :  { %v2204_v20 = vpack.c.bf16 %v2197_v2, %v2196_v35  ;;  %v6814_v27 = vld [vmem:[#allocation10_spill] sm:$0xff] }
 0x626   :  { %2498 = vrot.lane.b32.xlu0 %v2430_v17, %s4209_s5  ;;  %v6815_v62 = vpack.c.bf16 %v6813_v23, %v6814_v27 }
 0x627   :  { %2500 = vrot.lane.b32.xlu1 %v2431_v46, %s4209_s5 }
 0x62a   :  { %2508 = vrot.lane.b32.xlu0 %v2447_v51, %s4209_s5 }
 0x62b   :  { %2510 = vrot.lane.b32.xlu1 %v2448_v15, %s4209_s5 }
 0x62e   :  { %2488 = vrot.lane.b32.xlu0 %v2398_v28, %s4209_s5 }
 0x62f   :  { %2512 = vrot.lane.b32.xlu1 %v2449_v11, %s4209_s5 }
 0x632   :  { %2515 = vrot.lane.b32.xlu0 %v2464_v26, %s4209_s5 }
 0x671   :  { %v2272_v46 = vpop.permute.xlu1 %2271 }
 0x672   :  { %v2308_v39 = vsel %vm87_vm5, %v2172_v58, %v2272_v46  ;;  %v6817_v46 = vld [vmem:[#allocation24_spill] sm:$0xff] }
 0x674   :  { %v2284_v17 = vpop.permute.xlu0 %2283 }
 0x675   :  { %v2324_v21 = vsel %vm87_vm5, %v2204_v20, %v2284_v17  ;;  %v2274_v51 = vpop.permute.xlu1 %2273  ;;  %v6818_v20 = vpack.c.bf16 %v6816_v22, %v6817_v46  ;;  %v6819_v17 = vld [vmem:[#allocation11_spill] sm:$0xff]  ;;  %v2399_v46 = vld [vmem:[#allocation3 + $0x69] sm:$0xff] }
 0x676   :  { %2929 = vmatprep.mubr.bf16.mxu1 %v2324_v21  ;;  %v2355_v15 = vsel %vm87_vm5, %v6809_v56, %v2274_v51  ;;  %v2312_v35 = vsel %vm87_vm5, %v6815_v62, %v2274_v51  ;;  %v6820_v21 = vld [vmem:[#allocation25_spill] sm:$0xff]  ;;  %v6828_v62 = vld [vmem:[#allocation30_spill] sm:$0xff] }
 0x677   :  { %2930 = vmatmul.mubr.bf16.vlgmr.msra.gmra.mrb[24].mxu1 %v2308_v39  ;;  %3026 = vmatprep.mubr.bf16.mxu0 %v2355_v15  ;;  %v6821_v39 = vpack.c.bf16 %v6819_v17, %v6820_v21  ;;  %v6297_v15 = vld [vmem:[%s6619_s13] sm:$0xff]   ;;  %v6834_v21 = vld [vmem:[#allocation16_spill] sm:$0xff] }
 0x678   :  { %3909 = vmatpush3.bf16.msra.mxu1 %v5813_v1  ;;  %v2286_v13 = vpop.permute.xlu0 %2285 }
 0x679   :  { %v2328_v28 = vsel %vm87_vm5, %v6810_v16, %v2286_v13  ;;  %3906 = vmatprep.subr.bf16.mxu1 %v4025_v7  ;;  %v2288_v11 = vpop.permute.xlu1 %2287  ;;  %v6823_v16 = vld [vmem:[#allocation15_spill] sm:$0xff] }
 0x67a   :  { %2937 = vmatprep.mubr.bf16.mxu1 %v2328_v28  ;;  %v2332_v41 = vsel %vm87_vm5, %v6818_v20, %v2288_v11  ;;  %v6832_v20 = vld [vmem:[#allocation29_spill] sm:$0xff] }
 0x67c   :  { %v2296_v26 = vpop.permute.xlu0 %2295  ;;  %3910 = vmatpush3.bf16.msra.mxu1 %v4025_v7 }
 0x67d   :  { %v2340_v42 = vsel %vm87_vm5, %v6812_v55, %v2296_v26  ;;  %3907 = vmatprep.subr.bf16.mxu1 %v4026_v40  ;;  %v2298_v2 = vpop.permute.xlu1 %2297  ;;  %v2239_v26 = vld [vmem:[#allocation3 + $0x4f] sm:$0xff] }
 0x67e   :  { %3027 = vmatmul.mubr.bf16.vlgmr.msra.gmra.mrb[36].mxu0 %v2340_v42  ;;  %v6825_v55 = vld [vmem:[#allocation28_spill] sm:$0xff] }
 0x67f   :  { %2938 = vmatmul.mubr.bf16.gmra.mrb[28].mxu1 %v2312_v35  ;;  %3832 = vmatpush3.bf16.msra.mxu0 %v5813_v1  ;;  %v6822_v1 = vld [vmem:[#allocation22_spill] sm:$0xff]  ;;  %v6826_v42 = vld [vmem:[#allocation12_spill] sm:$0xff]  ;;  %v6829_v35 = vld [vmem:[#allocation27_spill] sm:$0xff] }
 0x680   :  { %v2276_v58 = vpop.permute.xlu0 %2275  ;;  %2945 = vmatprep.mubr.bf16.mxu1 %v2332_v41  ;;  %3833 = vmatprep.subr.bf16.mxu0 %v4025_v7  ;;  %v6824_v28 = vpack.c.bf16 %v6822_v1, %v6823_v16  ;;  %v6827_v23 = vpack.c.bf16 %v6825_v55, %v6826_v42  ;;  %v6830_v22 = vpack.c.bf16 %v6828_v62, %v6829_v35  ;;  %v6835_v42 = vld [vmem:[#allocation19_spill] sm:$0xff] }
 0x681   :  { %v2358_v51 = vsel %vm87_vm5, %v6821_v39, %v2276_v58  ;;  %3911 = vmatpush3.bf16.msra.mxu1 %v4026_v40  ;;  %v2278_v56 = vpop.permute.xlu1 %2277  ;;  %v2246_v39 = vmul.f32 %v6834_v21, %v4992_v44  ;;  %v2408_v1 = vmul.f32 %v6107_v61, %v4810_v37  ;;  %v2407_v16 = vmul.f32 %v2399_v46, %v4777_v12  ;;  %v6838_v35 = vld [vmem:[#allocation7_spill] sm:$0xff] }
 0x682   :  { %3034 = vmatprep.mubr.bf16.mxu0 %v2358_v51  ;;  %3908 = vmatprep.subr.bf16.mxu1 %v4027_v18  ;;  %v2344_v11 = vsel %vm87_vm5, %v6824_v28, %v2298_v2  ;;  %v2316_v27 = vsel %vm87_vm5, %v6827_v23, %v2276_v58  ;;  %v6831_v2 = vld [vmem:[#allocation32_spill] sm:$0xff]  ;;  %v2247_v58 = vmul.f32 %v2239_v26, %v4994_v6  ;;  %v6839_v26 = vld [vmem:[#allocation31_spill] sm:$0xff] }
 0x683   :  { %3834 = vmatpush3.bf16.msra.mxu0 %v4025_v7  ;;  %v2361_v7 = vsel %vm87_vm5, %v6830_v22, %v2278_v56  ;;  %v6833_v41 = vpack.c.bf16 %v6831_v2, %v6832_v20  ;;  %v2415_v62 = vpack.c.bf16 %v2408_v1, %v2407_v16 }
 0x684   :  { %v2290_v13 = vpop.permute.xlu0 %2289  ;;  %3835 = vmatprep.subr.bf16.mxu0 %v4026_v40  ;;  %v2251_v55 = vpack.c.bf16 %v2247_v58, %v2246_v39  ;;  %v6844_v58 = vpack.c.bf16 %v6046_v0, %v6043_v53  ;;  %v6848_v0 = vld [vmem:[#allocation34_spill] sm:$0xff] }
 0x685   :  { %3912 = vmatpush3.bf16.msra.mxu1 %v4027_v18  ;;  %v2495_v60 = vpop.permute.xlu1 %2494  ;;  %v2336_v17 = vsel %vm87_vm5, %v6833_v41, %v2290_v13  ;;  %v6836_v13 = vld [vmem:[#allocation20_spill] sm:$0xff] }
 0x686   :  { %3035 = vmatmul.mubr.bf16.gmra.mrb[40].mxu0 %v2344_v11  ;;  %3855 = vmatprep.subr.bf16.mxu1 %v6297_v15  ;;  %v6837_v23 = vpack.c.bf16 %v6835_v42, %v6836_v13  ;;  %v2535_v61 = vsel %vm87_vm5, %v2415_v62, %v2495_v60  ;;  %v6849_v13 = vld [vmem:[#allocation33_spill] sm:$0xff]  ;;  %v6852_v62 = vld [vmem:[#allocation35_spill] sm:$0xff] }
 0x687   :  { %2946 = vmatmul.mubr.bf16.gmra.mrb[32].mxu1 %v2316_v27  ;;  %3042 = vmatprep.mubr.bf16.mxu0 %v2361_v7  ;;  %v6841_v7 = vld [vmem:[#allocation13_spill] sm:$0xff] }
 0x688   :  { %v2300_v51 = vpop.permute.xlu0 %2299  ;;  %2953 = vmatprep.mubr.bf16.mxu1 %v2336_v17  ;;  %3836 = vmatpush3.bf16.msra.mxu0 %v4026_v40  ;;  %v6840_v40 = vpack.c.bf16 %v6838_v35, %v6839_v26  ;;  %v2376_v46 = vmul.f32 %v6841_v7, %v4812_v59  ;;  %v6854_v35 = vpack.c.bf16 %v6113_v63, %v6104_v45 }
 0x689   :  { %3837 = vmatprep.subr.bf16.mxu0 %v4027_v18  ;;  %v2305_v28 = vpop.permute.xlu1 %2304  ;;  %v2348_v27 = vsel %vm87_vm5, %v6837_v23, %v2300_v51 }
 0x68a   :  { %v2320_v22 = vsel %vm87_vm5, %v6840_v40, %v2278_v56  ;;  %v2365_v37 = vsel %vm87_vm5, %v2251_v55, %v2305_v28  ;;  %v6842_v56 = vld [vmem:[#allocation9_spill] sm:$0xff]  ;;  %v6846_v55 = vld [vmem:[#allocation14_spill] sm:$0xff] }
 0x68b   :  { %v6843_v39 = vpack.c.bf16 %v5895_v10, %v6842_v56  ;;  %v6847_v42 = vpack.c.bf16 %v5908_v49, %v6846_v55  ;;  %v6869_v55 = vpack.c.bf16 %v6161_v9, %v6154_v36  ;;  %v4166_v36 = vld [vmem:[%s6702_s20 + $0x20] sm:$0xff]  ;;  %v4167_v9 = vld [vmem:[%s6702_s20 + $0x28] sm:$0xff] }
 0x68c   :  { %v2483_v11 = vpop.permute.xlu0 %2482  ;;  %3838 = vmatpush3.bf16.msra.mxu0 %v4027_v18  ;;  %v2367_v18 = vld [vmem:[#allocation3 + $0x67] sm:$0xff] }
 0x68d   :  { %v2497_v12 = vpop.permute.xlu1 %2496  ;;  %v2375_v20 = vmul.f32 %v2367_v18, %v4779_v34  ;;  %v6845_v34 = vpack.c.bf16 %v6062_v31, %v6058_v14  ;;  %v6857_v18 = vld [vmem:[#allocation37_spill] sm:$0xff] }
 0x68e   :  { %3043 = vmatmul.mubr.bf16.gmra.mrb[44].mxu0 %v2348_v27  ;;  %v6851_v27 = vld [vmem:[#allocation36_spill] sm:$0xff] }
 0x68f   :  { %2954 = vmatmul.mubr.bf16.gmra.mrb[36].mxu1 %v2320_v22  ;;  %3050 = vmatprep.mubr.bf16.mxu0 %v2365_v37  ;;  %v2383_v17 = vpack.c.bf16 %v2376_v46, %v2375_v20  ;;  %v2539_v1 = vsel %vm87_vm5, %v6845_v34, %v2497_v12  ;;  %v6853_v31 = vpack.c.bf16 %v6851_v27, %v6852_v62  ;;  %v2450_v12 = vld [vmem:[#allocation3 + $0xaf] sm:$0xff]  ;;  %v6860_v20 = vld [vmem:[#allocation39_spill] sm:$0xff] }
 0x690   :  { %v2302_v2 = vpop.permute.xlu0 %2301  ;;  %2961 = vmatprep.mubr.bf16.mxu1 %v2535_v61  ;;  %v6855_v22 = vpack.c.bf16 %v5851_v29, %v5845_v33  ;;  %v6856_v61 = vld [vmem:[#allocation38_spill] sm:$0xff]  ;;  %v2457_v29 = vmul.f32 %v6194_v47, %v4992_v44  ;;  %v6874_v27 = vld [vmem:[#allocation8_spill] sm:$0xff] }
 0x691   :  { %v2507_v21 = vpop.permute.xlu1 %2506  ;;  %v2352_v51 = vsel %vm87_vm5, %v6843_v39, %v2302_v2  ;;  %v2519_v59 = vsel %vm87_vm5, %v2383_v17, %v2483_v11  ;;  %v6850_v11 = vpack.c.bf16 %v6848_v0, %v6849_v13  ;;  %v6858_v7 = vpack.c.bf16 %v6856_v61, %v6857_v18  ;;  %v6859_v2 = vld [vmem:[#allocation40_spill] sm:$0xff]  ;;  %v2465_v44 = vld [vmem:[#allocation3 + $0xb1] sm:$0xff]  ;;  %v4174_v18 = vld [vmem:[%s6702_s20 + $0x60] sm:$0xff] }
 0x692   :  { %v2551_v53 = vsel %vm87_vm5, %v6847_v42, %v2507_v21  ;;  %v6861_v45 = vpack.c.bf16 %v6859_v2, %v6860_v20  ;;  %v2458_v17 = vmul.f32 %v2450_v12, %v4994_v6  ;;  %v6867_v6 = vpack.c.bf16 %v6183_v8, %v6174_v24  ;;  %v6871_v0 = vld [vmem:[#allocation21_spill] sm:$0xff]  ;;  %v4173_v12 = vld [vmem:[%s6702_s20 + $0x58] sm:$0xff] }
 0x693   :  { %v2473_v47 = vmul.f32 %v2465_v44, %v4930_v5  ;;  %v6868_v24 = vpack.c.bf16 %v6171_v4, %v6145_v43  ;;  %v4164_v43 = vld [vmem:[%s6702_s20 + $0x10] sm:$0xff]  ;;  %v4165_v4 = vld [vmem:[%s6702_s20 + $0x18] sm:$0xff]  ;;  %v2261_v62 = vmul.f32 %v6874_v27, %v4928_v50 }
 0x694   :  { %v2485_v41 = vpop.permute.xlu0 %2484  ;;  %v2462_v39 = vpack.c.bf16 %v2458_v17, %v2457_v29  ;;  %v3189_v42 = vpack.c.bf16 %v4165_v4, %v4164_v43  ;;  %v4176_v2 = vld [vmem:[%s6702_s20 + $0x70] sm:$0xff]  ;;  %v4177_v20 = vld [vmem:[%s6702_s20 + $0x78] sm:$0xff]  ;;  %v6491_v29 = vld [vmem:[%s6618_s12] ss:$0 sm:$0xff] }
 0x695   :  { %v2566_v60 = vsel %vm87_vm5, %v6844_v58, %v2485_v41  ;;  %v2487_v10 = vpop.permute.xlu1 %2486  ;;  %v2523_v23 = vsel %vm87_vm5, %v6850_v11, %v2485_v41  ;;  %v6862_v41 = vpack.c.bf16 %v6180_v19, %v6150_v25  ;;  %v6873_v11 = vpack.c.bf16 %v6169_v38, %v6165_v3  ;;  %v4169_v38 = vld [vmem:[%s6702_s20 + $0x38] sm:$0xff] }
 0x696   :  { %3051 = vmatmul.mubr.bf16.gmra.mrb[48].mxu0 %v2352_v51  ;;  %v2569_v14 = vsel %vm87_vm5, %v6853_v31, %v2487_v10  ;;  %v2527_v46 = vsel %vm87_vm5, %v6858_v7, %v2487_v10  ;;  %v6863_v51 = vpack.c.bf16 %v6036_v32, %v6054_v54  ;;  %v2472_v32 = vmul.f32 %v6237_v48, %v4928_v50  ;;  %v4029_v48 = vld [vmem:[%s6619_s13 + $0x8] sm:$0xff]  }
 0x697   :  { %2962 = vmatmul.mubr.bf16.gmra.mrb[40].mxu1 %v2519_v59  ;;  %3058 = vmatprep.mubr.bf16.mxu0 %v2566_v60  ;;  %v6864_v60 = vld [vmem:[#allocation42_spill] sm:$0xff]  ;;  %v6865_v59 = vld [vmem:[#allocation41_spill] sm:$0xff]  ;;  %v4171_v50 = vld [vmem:[%s6702_s20 + $0x48] sm:$0xff] }
 0x698   :  { %v2499_v16 = vpop.permute.xlu0 %2498  ;;  %2969 = vmatprep.mubr.bf16.mxu1 %v2539_v1  ;;  %v6866_v19 = vpack.c.bf16 %v6864_v60, %v6865_v59  ;;  %v4162_v1 = vld [vmem:[%s6702_s20] sm:$0xff]  ;;  %v4175_v7 = vld [vmem:[%s6702_s20 + $0x68] sm:$0xff] }
 0x699   :  { %v2543_v49 = vsel %vm87_vm5, %v6854_v35, %v2499_v16  ;;  %v2501_v40 = vpop.permute.xlu1 %2500  ;;  %v4163_v16 = vld [vmem:[%s6702_s20 + $0x8] sm:$0xff] }
 0x69a   :  { %v2547_v33 = vsel %vm87_vm5, %v6862_v41, %v2501_v40  ;;  %v3188_v10 = vpack.c.bf16 %v4163_v16, %v4162_v1  ;;  %v6876_v40 = vld [vmem:[#allocation43_spill] sm:$0xff] }
 0x69c   :  { %v2509_v28 = vpop.permute.xlu0 %2508 }
 0x69d   :  { %v2555_v37 = vsel %vm87_vm5, %v6855_v22, %v2509_v28  ;;  %v2511_v21 = vpop.permute.xlu1 %2510  ;;  %v2477_v28 = vpack.c.bf16 %v2473_v47, %v2472_v32 }
 0x69e   :  { %3059 = vmatmul.mubr.bf16.gmra.mrb[52].mxu0 %v2551_v53  ;;  %v2559_v58 = vsel %vm87_vm5, %v6863_v51, %v2511_v21  ;;  %v6870_v53 = vld [vmem:[#allocation18_spill] sm:$0xff] }
 0x69f   :  { %2970 = vmatmul.mubr.bf16.gmra.mrb[44].mxu1 %v2523_v23  ;;  %3066 = vmatprep.mubr.bf16.mxu0 %v2569_v14  ;;  %v6872_v13 = vpack.c.bf16 %v6870_v53, %v6871_v0  ;;  %v2254_v23 = vld [vmem:[#allocation3 + $0x51] sm:$0xff] }
 0x6a0   :  { %2977 = vmatprep.mubr.bf16.mxu1 %v2543_v49  ;;  %v2489_v26 = vpop.permute.xlu0 %2488  ;;  %v2262_v31 = vmul.f32 %v2254_v23, %v4930_v5  ;;  %v4168_v14 = vld [vmem:[%s6702_s20 + $0x30] sm:$0xff]  ;;  %v4170_v49 = vld [vmem:[%s6702_s20 + $0x40] sm:$0xff]  ;;  %v6875_v5 = vld [vmem:[#allocation44_spill] sm:$0xff] }
 0x6a1   :  { %v2572_v63 = vsel %vm87_vm5, %v6861_v45, %v2489_v26  ;;  %v2531_v25 = vsel %vm87_vm5, %v6866_v19, %v2489_v26  ;;  %v2513_v54 = vpop.permute.xlu1 %2512  ;;  %v3191_v3 = vpack.c.bf16 %v4169_v38, %v4168_v14  ;;  %v3192_v26 = vpack.c.bf16 %v4171_v50, %v4170_v49 }
 0x6a2   :  { %v2563_v8 = vsel %vm87_vm5, %v6868_v24, %v2513_v54  ;;  %v2266_v35 = vpack.c.bf16 %v2262_v31, %v2261_v62  ;;  %v6877_v22 = vpack.c.bf16 %v6875_v5, %v6876_v40  ;;  %v3195_v45 = vpack.c.bf16 %v4177_v20, %v4176_v2 }
 0x6a4   :  { %v2516_v56 = vpop.permute.xlu0 %2515 }
 0x6a5   :  { %v2576_v34 = vsel %vm87_vm5, %v2462_v39, %v2516_v56 }
 0x6a6   :  { %3067 = vmatmul.mubr.bf16.gmra.mrb[56].mxu0 %v2555_v37  ;;  %v4172_v37 = vld [vmem:[%s6702_s20 + $0x50] sm:$0xff] }
 0x6a7   :  { %2978 = vmatmul.mubr.bf16.gmra.mrb[48].mxu1 %v2527_v46  ;;  %3074 = vmatprep.mubr.bf16.mxu0 %v2572_v63  ;;  %v3193_v61 = vpack.c.bf16 %v4173_v12, %v4172_v37  ;;  %v3194_v46 = vpack.c.bf16 %v4175_v7, %v4174_v18 }
 0x6a8   :  { %2985 = vmatprep.mubr.bf16.mxu1 %v2547_v33 }
 0x6ae   :  { %3075 = vmatmul.mubr.bf16.gmra.mrb[60].mxu0 %v2559_v58 }
 0x6af   :  { %2986 = vmatmul.mubr.bf16.gmra.mrb[52].mxu1 %v2531_v25  ;;  %3082 = vmatprep.mubr.bf16.mxu0 %v2576_v34 }
 0x6b0   :  { %3851 = vmatprep.mubr.msk.bf16.mxu1 %vm87_vm5, %v6867_v6 }
 0x6b6   :  { %3083 = vmatmul.mubr.bf16.gmra.mrb[64].mxu0 %v2563_v8 }
 0x6b7   :  { %3839 = vmatprep.mubr.msk.bf16.mxu0 %vm87_vm5, %v6869_v55  ;;  %3852 = vmatmul.mubr.msk.bf16.vlgmr.msra.gmra.mrb[56].mxu1 %vm87_vm5, %v2477_v28 }
 0x6b8   :  { %3856 = vmatpush3.bf16.msra.mxu1 %v6297_v15  ;;  %3859 = vmatprep.mubr.msk.bf16.mxu1 %vm62_vm1, %v3188_v10  ;;  %v3190_v15 = vpack.c.bf16 %v4167_v9, %v4166_v36 }
 0x6b9   :  { %3857 = vmatprep.subr.bf16.mxu1 %v4029_v48 }
 0x6bc   :  { %3858 = vmatpush3.bf16.msra.mxu1 %v4029_v48 }
 0x6be   :  { %3840 = vmatmul.mubr.msk.bf16.vlgmr.msra.gmra.mrb[68].mxu0 %vm87_vm5, %v6872_v13 }
 0x6bf   :  { %3843 = vmatprep.mubr.msk.bf16.mxu0 %vm87_vm5, %v6873_v11  ;;  %3860 = vmatmul.mubr.msk.bf16.vlgmr.msra.gmra.mrb[60].mxu1 %vm62_vm1, %v3189_v42 }
 0x6c0   :  { %3863 = vmatprep.mubr.msk.bf16.mxu1 %vm62_vm1, %v3190_v15 }
 0x6c6   :  { %3844 = vmatmul.mubr.msk.bf16.gmra.mrb[72].mxu0 %vm87_vm5, %v2266_v35 }
 0x6c7   :  { %3847 = vmatprep.mubr.msk.bf16.mxu0 %vm87_vm5, %v6877_v22  ;;  %3864 = vmatmul.mubr.msk.bf16.gmra.mrb[64].mxu1 %vm62_vm1, %v3191_v3 }
 0x6c8   :  { %3867 = vmatprep.mubr.msk.bf16.mxu1 %vm62_vm1, %v3192_v26 }
 0x6ce   :  { %3848 = vmatmul.mubr.msk.bf16.gmra.mrb[76].mxu0 %vm87_vm5, %v2475_v30 }
 0x6cf   :  { %3868 = vmatmul.mubr.msk.bf16.gmra.mrb[68].mxu1 %vm62_vm1, %v3193_v61 }
 0x6d0   :  { %3871 = vmatprep.mubr.msk.bf16.mxu1 %vm62_vm1, %v3194_v46 }
 0x6d7   :  { %3872 = vmatmul.mubr.msk.bf16.gmra.mrb[56].mxu1 %vm62_vm1, %v3195_v45 }
 0x74a   :  { %v3625_v63 = vpop.f32.mrb[24].mxu1 }
 0x74b   :  { %v3626_v41 = vpop.f32.mrb[25].mxu1 }
 0x74c   :  { %v3627_v52 = vadd.f32 %v3626_v41, %v3625_v63  ;;  %v3628_v57 = vpop.f32.mrb[26].mxu1 }
 0x74d   :  { %v3629_v30 = vpop.f32.mrb[27].mxu1 }
 0x74e   :  { %v3630_v33 = vadd.f32 %v3629_v30, %v3628_v57  ;;  %v2932_v39 = vadd.f32 %v3627_v52, %v6491_v29 }
 0x750   :  { %v2935_v34 = vadd.f32 %v3630_v33, %v6491_v29 }
 0x751   :  { %v3689_v17 = vpop.f32.mrb[36].mxu0 }
 0x752   :  { %v3631_v21 = vpop.f32.mrb[28].mxu1  ;;  %v3690_v56 = vpop.f32.mrb[37].mxu0 }
 0x753   :  { %v3691_v51 = vadd.f32 %v3690_v56, %v3689_v17  ;;  %v3632_v58 = vpop.f32.mrb[29].mxu1  ;;  %v3692_v60 = vpop.f32.mrb[38].mxu0 }
 0x754   :  { %v3633_v59 = vadd.f32 %v3632_v58, %v3631_v21  ;;  %v3634_v19 = vpop.f32.mrb[30].mxu1  ;;  %v3693_v25 = vpop.f32.mrb[39].mxu0 }
 0x755   :  { %v3694_v44 = vadd.f32 %v3693_v25, %v3692_v60  ;;  %v3635_v6 = vpop.f32.mrb[31].mxu1  ;;  %v6495_v32 = vadd.f32 %v3691_v51, %v2932_v39 }
 0x756   :  { %v3636_v54 = vadd.f32 %v3635_v6, %v3634_v19  ;;  %v2940_v28 = vadd.f32 %v3633_v59, %v6491_v29 }
 0x757   :  { %v6497_v47 = vadd.f32 %v3694_v44, %v2935_v34 }
 0x758   :  { %v2943_v42 = vadd.f32 %v3636_v54, %v6491_v29 }
 0x759   :  { %v3695_v1 = vpop.f32.mrb[40].mxu0 }
 0x75a   :  { %v3637_v16 = vpop.f32.mrb[32].mxu1  ;;  %v3696_v10 = vpop.f32.mrb[41].mxu0 }
 0x75b   :  { %v3697_v24 = vadd.f32 %v3696_v10, %v3695_v1  ;;  %v3638_v8 = vpop.f32.mrb[33].mxu1  ;;  %v3698_v48 = vpop.f32.mrb[42].mxu0 }
 0x75c   :  { %v3639_v55 = vadd.f32 %v3638_v8, %v3637_v16  ;;  %v3640_v43 = vpop.f32.mrb[34].mxu1  ;;  %v3699_v4 = vpop.f32.mrb[43].mxu0 }
 0x75d   :  { %v3700_v36 = vadd.f32 %v3699_v4, %v3698_v48  ;;  %v3641_v9 = vpop.f32.mrb[35].mxu1  ;;  %v6501_v15 = vadd.f32 %v3697_v24, %v2940_v28 }
 0x75e   :  { %v3642_v53 = vadd.f32 %v3641_v9, %v3640_v43  ;;  %v2948_v27 = vadd.f32 %v3639_v55, %v6491_v29 }
 0x75f   :  { %v6503_v0 = vadd.f32 %v3700_v36, %v2943_v42 }
 0x760   :  { %v2951_v49 = vadd.f32 %v3642_v53, %v6491_v29 }
 0x761   :  { %v3701_v13 = vpop.f32.mrb[44].mxu0 }
 0x762   :  { %v3643_v11 = vpop.f32.mrb[36].mxu1  ;;  %v3702_v23 = vpop.f32.mrb[45].mxu0 }
 0x763   :  { %v3703_v62 = vadd.f32 %v3702_v23, %v3701_v13  ;;  %v3644_v31 = vpop.f32.mrb[37].mxu1  ;;  %v3704_v14 = vpop.f32.mrb[46].mxu0 }
 0x764   :  { %v3645_v38 = vadd.f32 %v3644_v31, %v3643_v11  ;;  %v3646_v3 = vpop.f32.mrb[38].mxu1  ;;  %v3705_v35 = vpop.f32.mrb[47].mxu0 }
 0x765   :  { %v3706_v50 = vadd.f32 %v3705_v35, %v3704_v14  ;;  %v3647_v26 = vpop.f32.mrb[39].mxu1  ;;  %v6507_v5 = vadd.f32 %v3703_v62, %v2948_v27 }
 0x766   :  { %v3648_v40 = vadd.f32 %v3647_v26, %v3646_v3  ;;  %v2956_v18 = vadd.f32 %v3645_v38, %v6491_v29 }
 0x767   :  { %v6509_v22 = vadd.f32 %v3706_v50, %v2951_v49 }
 0x768   :  { %v2959_v41 = vadd.f32 %v3648_v40, %v6491_v29 }
 0x769   :  { %v3707_v37 = vpop.f32.mrb[48].mxu0 }
 0x76a   :  { %v3649_v12 = vpop.f32.mrb[40].mxu1  ;;  %v3708_v61 = vpop.f32.mrb[49].mxu0 }
 0x76b   :  { %v3709_v7 = vadd.f32 %v3708_v61, %v3707_v37  ;;  %v3650_v46 = vpop.f32.mrb[41].mxu1  ;;  %v3710_v2 = vpop.f32.mrb[50].mxu0 }
 0x76c   :  { %v3651_v20 = vadd.f32 %v3650_v46, %v3649_v12  ;;  %v3652_v45 = vpop.f32.mrb[42].mxu1  ;;  %v3711_v63 = vpop.f32.mrb[51].mxu0 }
 0x76d   :  { %v3712_v52 = vadd.f32 %v3711_v63, %v3710_v2  ;;  %v3653_v57 = vpop.f32.mrb[43].mxu1  ;;  %v6513_v30 = vadd.f32 %v3709_v7, %v2956_v18 }
 0x76e   :  { %v3654_v33 = vadd.f32 %v3653_v57, %v3652_v45  ;;  %v2964_v51 = vadd.f32 %v3651_v20, %v6491_v29 }
 0x76f   :  { %v6515_v17 = vadd.f32 %v3712_v52, %v2959_v41 }
 0x770   :  { %v2967_v44 = vadd.f32 %v3654_v33, %v6491_v29 }
 0x771   :  { %v3713_v21 = vpop.f32.mrb[52].mxu0 }
 0x772   :  { %v3655_v56 = vpop.f32.mrb[44].mxu1  ;;  %v3714_v39 = vpop.f32.mrb[53].mxu0 }
 0x773   :  { %v3715_v58 = vadd.f32 %v3714_v39, %v3713_v21  ;;  %v3656_v60 = vpop.f32.mrb[45].mxu1  ;;  %v3716_v59 = vpop.f32.mrb[54].mxu0 }
 0x774   :  { %v3657_v19 = vadd.f32 %v3656_v60, %v3655_v56  ;;  %v3658_v25 = vpop.f32.mrb[46].mxu1  ;;  %v3717_v34 = vpop.f32.mrb[55].mxu0 }
 0x775   :  { %v3718_v6 = vadd.f32 %v3717_v34, %v3716_v59  ;;  %v3659_v54 = vpop.f32.mrb[47].mxu1  ;;  %v6519_v1 = vadd.f32 %v3715_v58, %v2964_v51 }
 0x776   :  { %v3660_v16 = vadd.f32 %v3659_v54, %v3658_v25  ;;  %v2972_v48 = vadd.f32 %v3657_v19, %v6491_v29 }
 0x777   :  { %v6521_v10 = vadd.f32 %v3718_v6, %v2967_v44 }
 0x778   :  { %v2975_v53 = vadd.f32 %v3660_v16, %v6491_v29 }
 0x779   :  { %v3719_v28 = vpop.f32.mrb[56].mxu0 }
 0x77a   :  { %v3661_v24 = vpop.f32.mrb[48].mxu1  ;;  %v3720_v8 = vpop.f32.mrb[57].mxu0 }
 0x77b   :  { %v3721_v55 = vadd.f32 %v3720_v8, %v3719_v28  ;;  %v3662_v43 = vpop.f32.mrb[49].mxu1  ;;  %v3722_v4 = vpop.f32.mrb[58].mxu0 }
 0x77c   :  { %v3663_v42 = vadd.f32 %v3662_v43, %v3661_v24  ;;  %v3664_v36 = vpop.f32.mrb[50].mxu1  ;;  %v3723_v9 = vpop.f32.mrb[59].mxu0 }
 0x77d   :  { %v3724_v13 = vadd.f32 %v3723_v9, %v3722_v4  ;;  %v3665_v11 = vpop.f32.mrb[51].mxu1  ;;  %v6525_v23 = vadd.f32 %v3721_v55, %v2972_v48 }
 0x77e   :  { %v3666_v27 = vadd.f32 %v3665_v11, %v3664_v36  ;;  %v2980_v3 = vadd.f32 %v3663_v42, %v6491_v29 }
 0x77f   :  { %v6527_v62 = vadd.f32 %v3724_v13, %v2975_v53 }
 0x780   :  { %v2983_v12 = vadd.f32 %v3666_v27, %v6491_v29 }
 0x781   :  { %v3725_v31 = vpop.f32.mrb[60].mxu0 }
 0x782   :  { %v3667_v14 = vpop.f32.mrb[52].mxu1  ;;  %v3726_v38 = vpop.f32.mrb[61].mxu0 }
 0x783   :  { %v3727_v35 = vadd.f32 %v3726_v38, %v3725_v31  ;;  %v3668_v49 = vpop.f32.mrb[53].mxu1  ;;  %v3728_v50 = vpop.f32.mrb[62].mxu0 }
 0x784   :  { %v3669_v26 = vadd.f32 %v3668_v49, %v3667_v14  ;;  %v3670_v40 = vpop.f32.mrb[54].mxu1  ;;  %v3729_v37 = vpop.f32.mrb[63].mxu0 }
 0x785   :  { %v6531_v61 = vadd.f32 %v3727_v35, %v2980_v3  ;;  %v3730_v18 = vadd.f32 %v3729_v37, %v3728_v50  ;;  %v3671_v7 = vpop.f32.mrb[55].mxu1 }
 0x786   :  { %v3672_v46 = vadd.f32 %v3671_v7, %v3670_v40  ;;  %v2988_v63 = vadd.f32 %v3669_v26, %v6491_v29 }
 0x787   :  { %v6533_v2 = vadd.f32 %v3730_v18, %v2983_v12 }
 0x788   :  { %v2991_v33 = vadd.f32 %v3672_v46, %v6491_v29  ;;  %v6547_v29 = vld [vmem:[%s6620_s14] ss:$0 sm:$0xff]  ;;  %s4210_s14 = smov [#allocation4]  }
 0x789   :  { %v3731_v20 = vpop.f32.mrb[64].mxu0  ;;  %s3377_s6 = sshll.u32 %s4210_s14, 4  ;;  %s3378_s6 = int_to_ptr.vmem [resolvable:$true] %s3377_s6 }
 0x78a   :  { %v3732_v45 = vpop.f32.mrb[65].mxu0  ;;  %s4178_s13 = scalar_lea.vmem %s3378_s6, 2048  ;;  %p4183_p1 = scmp.lt.s32.totalorder %s3378_s6, %s3378_s6 }
 0x78b   :  { %v3733_v41 = vadd.f32 %v3732_v45, %v3731_v20  ;;  %v3734_v52 = vpop.f32.mrb[66].mxu0  ;;  %p4179_p0 = scmp.ne.s32.totalorder %s3378_s6, %s4178_s13  ;;  %p4184_p2 = scmp.lt.s32.totalorder %s4178_s13, %s4178_s13 }
 0x78c   :  { %v3735_v57 = vpop.f32.mrb[67].mxu0 }
 0x78d   :  { %v6537_v21 = vadd.f32 %v3733_v41, %v2988_v63  ;;  %v3736_v56 = vadd.f32 %v3735_v57, %v3734_v52  ;;  %p4185_p3 = por %p4184_p2, %p4183_p1 }
 0x78f   :  { %v6539_v39 = vadd.f32 %v3736_v56, %v2991_v33  ;;  %p4186_p4 = pnand %p4185_p3, %p4179_p0 }
 0x791   :  { %v3841_v51 = vpop.f32.mrb[68].mxu0 }
 0x792   :  { %v3134_v58 = vadd.f32 %v3841_v51, %v6501_v15  ;;  %v3125_v60 = vpop.f32.mrb[69].mxu0  ;;  %v3861_v59 = vpop.f32.mrb[60].mxu1 }
 0x793   :  { %v3126_v19 = vadd.f32 %v3125_v60, %v6495_v32  ;;  %v3842_v25 = vpop.f32.mrb[70].mxu0  ;;  %v3277_v34 = vpop.f32.mrb[61].mxu1 }
 0x794   :  { %v3914_v44 = vadd.f32 %v3861_v59, %v3134_v58  ;;  %v3137_v6 = vadd.f32 %v3842_v25, %v6503_v0  ;;  %v3128_v54 = vpop.f32.mrb[71].mxu0  ;;  %v3862_v16 = vpop.f32.mrb[62].mxu1 }
 0x795   :  { %v3917_v28 = vadd.f32 %v3277_v34, %v3126_v19  ;;  %v3129_v24 = vadd.f32 %v3128_v54, %v6497_v47  ;;  %v3280_v15 = vpop.f32.mrb[63].mxu1  ;;  %v3953_v34 = vadd.f32 %v6547_v29, %v6539_v39 }
 0x796   :  { %v3915_v8 = vadd.f32 %v3914_v44, %v6547_v29  ;;  %v3920_v32 = vadd.f32 %v6547_v29, %v3137_v6 }
 0x797   :  { %v3918_v48 = vadd.f32 %v3917_v28, %v6547_v29  ;;  %v3923_v55 = vadd.f32 %v6547_v29, %v3129_v24 }
 0x798   :  { %3358 = vst.msk [vmem:[#allocation4 + $0x10] sm:$0xff] %vm87_vm5, %v3915_v8  ;;  %v3921_v0 = vadd.f32 %v3920_v32, %v3862_v16 }
 0x799   :  { %3356 = vst.msk [vmem:[#allocation4] sm:$0xff] %vm87_vm5, %v3918_v48  ;;  %v3924_v43 = vadd.f32 %v3923_v55, %v3280_v15  ;;  %v3845_v4 = vpop.f32.mrb[72].mxu0 }
 0x79a   :  { %3359 = vst.msk [vmem:[#allocation4 + $0x18] sm:$0xff] %vm87_vm5, %v3921_v0  ;;  %v3150_v47 = vadd.f32 %v3845_v4, %v6513_v30  ;;  %v3141_v42 = vpop.f32.mrb[73].mxu0  ;;  %v3865_v36 = vpop.f32.mrb[64].mxu1 }
 0x79b   :  { %3357 = vst.msk [vmem:[#allocation4 + $0x8] sm:$0xff] %vm87_vm5, %v3924_v43  ;;  %v3142_v9 = vadd.f32 %v3141_v42, %v6507_v5  ;;  %v3846_v53 = vpop.f32.mrb[74].mxu0  ;;  %v3293_v13 = vpop.f32.mrb[65].mxu1 }
 0x79c   :  { %v3926_v11 = vadd.f32 %v6547_v29, %v3150_v47  ;;  %v3153_v27 = vadd.f32 %v3846_v53, %v6515_v17  ;;  %v3144_v31 = vpop.f32.mrb[75].mxu0  ;;  %v3866_v14 = vpop.f32.mrb[66].mxu1 }
 0x79d   :  { %v3929_v38 = vadd.f32 %v6547_v29, %v3142_v9  ;;  %v3145_v3 = vadd.f32 %v3144_v31, %v6509_v22  ;;  %v3296_v35 = vpop.f32.mrb[67].mxu1 }
 0x79e   :  { %v3927_v30 = vadd.f32 %v3926_v11, %v3865_v36  ;;  %v3932_v49 = vadd.f32 %v6547_v29, %v3153_v27 }
 0x79f   :  { %v3930_v50 = vadd.f32 %v3929_v38, %v3293_v13  ;;  %v3935_v26 = vadd.f32 %v6547_v29, %v3145_v3 }
 0x7a0   :  { %3362 = vst.msk [vmem:[#allocation4 + $0x30] sm:$0xff] %vm87_vm5, %v3927_v30  ;;  %v3933_v5 = vadd.f32 %v3932_v49, %v3866_v14 }
 0x7a1   :  { %3360 = vst.msk [vmem:[#allocation4 + $0x20] sm:$0xff] %vm87_vm5, %v3930_v50  ;;  %v3936_v40 = vadd.f32 %v3935_v26, %v3296_v35  ;;  %v3849_v17 = vpop.f32.mrb[76].mxu0 }
 0x7a2   :  { %3363 = vst.msk [vmem:[#allocation4 + $0x38] sm:$0xff] %vm87_vm5, %v3933_v5  ;;  %v3166_v37 = vadd.f32 %v3849_v17, %v6525_v23  ;;  %v3157_v12 = vpop.f32.mrb[77].mxu0  ;;  %v3869_v22 = vpop.f32.mrb[68].mxu1 }
 0x7a3   :  { %3361 = vst.msk [vmem:[#allocation4 + $0x28] sm:$0xff] %vm87_vm5, %v3936_v40  ;;  %v3158_v18 = vadd.f32 %v3157_v12, %v6519_v1  ;;  %v3850_v7 = vpop.f32.mrb[78].mxu0  ;;  %v3309_v46 = vpop.f32.mrb[69].mxu1 }
 0x7a4   :  { %v3938_v20 = vadd.f32 %v6547_v29, %v3166_v37  ;;  %v3169_v45 = vadd.f32 %v3850_v7, %v6527_v62  ;;  %v3160_v63 = vpop.f32.mrb[79].mxu0  ;;  %v3870_v41 = vpop.f32.mrb[70].mxu1  ;;  %v3949_v62 = vadd.f32 %v6547_v29, %v6537_v21  ;;  %v3955_v21 = vadd.f32 %v6547_v29, %v6533_v2 }
 0x7a5   :  { %v3941_v52 = vadd.f32 %v6547_v29, %v3158_v18  ;;  %v3161_v57 = vadd.f32 %v3160_v63, %v6521_v10  ;;  %v3312_v33 = vpop.f32.mrb[71].mxu1  ;;  %v3951_v10 = vadd.f32 %v6547_v29, %v6531_v61 }
 0x7a6   :  { %v3939_v23 = vadd.f32 %v3938_v20, %v3869_v22  ;;  %v3944_v56 = vadd.f32 %v6547_v29, %v3169_v45 }
 0x7a7   :  { %v3942_v51 = vadd.f32 %v3941_v52, %v3309_v46  ;;  %v3947_v58 = vadd.f32 %v6547_v29, %v3161_v57 }
 0x7a8   :  { %3366 = vst.msk [vmem:[#allocation4 + $0x50] sm:$0xff] %vm87_vm5, %v3939_v23  ;;  %v3945_v1 = vadd.f32 %v3944_v56, %v3870_v41 }
 0x7a9   :  { %3364 = vst.msk [vmem:[#allocation4 + $0x40] sm:$0xff] %vm87_vm5, %v3942_v51  ;;  %v3948_v60 = vadd.f32 %v3947_v58, %v3312_v33 }
 0x7aa   :  { %3367 = vst.msk [vmem:[#allocation4 + $0x58] sm:$0xff] %vm87_vm5, %v3945_v1  ;;  %v3873_v59 = vpop.f32.mrb[56].mxu1 }
 0x7ab   :  { %3365 = vst.msk [vmem:[#allocation4 + $0x48] sm:$0xff] %vm87_vm5, %v3948_v60  ;;  %v3950_v19 = vadd.f32 %v3949_v62, %v3873_v59  ;;  %v3325_v25 = vpop.f32.mrb[57].mxu1 }
 0x7ac   :  { %v3952_v44 = vadd.f32 %v3951_v10, %v3325_v25  ;;  %v3874_v6 = vpop.f32.mrb[58].mxu1 }
 0x7ad   :  { %3370 = vst.msk [vmem:[#allocation4 + $0x70] sm:$0xff] %vm87_vm5, %v3950_v19  ;;  %v3954_v54 = vadd.f32 %v3953_v34, %v3874_v6  ;;  %v3328_v16 = vpop.f32.mrb[59].mxu1 }
 0x7ae   :  { %3368 = vst.msk [vmem:[#allocation4 + $0x60] sm:$0xff] %vm87_vm5, %v3952_v44  ;;  %v3956_v61 = vadd.f32 %v3955_v21, %v3328_v16 }
 0x7af   :  { %3371 = vst.msk [vmem:[#allocation4 + $0x78] sm:$0xff] %vm87_vm5, %v3954_v54 }
 0x7b0   :  { %3369 = vst.msk [vmem:[#allocation4 + $0x68] sm:$0xff] %vm87_vm5, %v3956_v61 }
 0x7b1   :  { %4189 = shalt.err (!%p4186_p4)
}
 0x7b2   :  { %s4190_s30 = scalar_lea.hbm %s6623_s17, 2048 }
 0x7b3   :  { %p4191_p5 = scmp.ne.s32.totalorder %s6623_s17, %s4190_s30  ;;  %p4194_p6 = scmp.lt.u32.totalorder %s4190_s30, %s6623_s17 }
 0x7b5   :  { %p4196_p7 = pnand %p4194_p6, %p4191_p5 }
 0x7b7   :  { %4199 = shalt.err (!%p4196_p7)
}
 0x7b8   :  { %s4211_s8 = smov 128   ;;  %s4212_s4 = smov 8  }
 0x7b9   :  { %3383 = dma.vmem_to_hbm [thread:$0]  %s3378_s6, 2048, %s6623_s17, [#allocation5], %s4211_s8, %s4211_s8, %s4212_s4  }
 0x7ba   :  { %4200 = dma.done.wait [#allocation5], 2048  }
 0x7bb   :  { %4201 = vsyncadd [#allocation5], 4294965248 }
 0x7bc   :  { %3387 = vsyncpa [#allocation5], 1 }

</bundles_post_ra>
